<compile_context>
chip_gen: v7x
topology: tpu7x:2x2x1
jax: 0.10.0
libtpu: 0.0.40
codegen_flags: <defaults>
</compile_context>

<pallas_src>
import functools
import math

import numpy as np

import jax
import jax.numpy as jnp
from jax.experimental import pallas as pl
from jax.experimental.pallas import tpu as pltpu

_HALF_PI = math.pi / 2.0


def _round_up(x, m):
    return ((x + m - 1) // m) * m


def _freq_encoder_kernel_packed(x_ref, g_ref, aux_ref, o_ref, *, include_input):
    """Lane-dense fast path for periodic_fns == (sin, cos).

    x_ref:   (TM, R*d)      input rows packed onto lanes
    g_ref:   (R*d, W) bf16  0/1 lane-selection matrix (block-diagonal)
    aux_ref: (3, W)   f32   rows = [freq scale, sin phase, identity mask]
    o_ref:   (TM, W)        W = R * d_out, already in final output order
    """
    x = x_ref[...].astype(jnp.float32)                      # (TM, R*d)

    # Split x into three bf16 limbs so the 0/1 selection matmul (bf16 MXU,
    # f32 accumulation) reconstructs x exactly (to ~1 ulp f32).
    hi = x.astype(jnp.bfloat16)
    r1 = x - hi.astype(jnp.float32)
    mid = r1.astype(jnp.bfloat16)
    lo = (r1 - mid.astype(jnp.float32)).astype(jnp.bfloat16)

    g = g_ref[...]                                          # (R*d, W) bf16
    gathered = (jnp.dot(hi, g, preferred_element_type=jnp.float32)
                + jnp.dot(mid, g, preferred_element_type=jnp.float32)
                + jnp.dot(lo, g, preferred_element_type=jnp.float32))  # (TM, W)

    scale = aux_ref[0:1, :]                                 # (1, W) freq per column
    phase = aux_ref[1:2, :]                                 # (1, W) 0 or pi/2
    arg = gathered * scale + phase                          # one wide mul + add
    out = jnp.sin(arg)                                      # one wide transcendental
    if include_input:
        # Identity columns have scale=1, phase=0, so arg == x there.
        out = jnp.where(aux_ref[2:3, :] > 0.5, arg, out)
    o_ref[...] = out.astype(o_ref.dtype)                    # single wide store


def _freq_encoder_kernel_generic(x_ref, o_ref, *, freq_bands, periodic_fns,
                                 include_input, input_dim):
    """Exact / generic fallback: arbitrary JAX-traceable periodic fns."""
    d = input_dim
    x = x_ref[...].astype(jnp.float32)                      # (TM, d)
    # One wide argument block per fn (all freqs side by side) -> each
    # transcendental runs at F*d lane width instead of d.
    args = jnp.concatenate([x * jnp.float32(f) for f in freq_bands], axis=-1)
    vals = [p_fn(args) for p_fn in periodic_fns]            # each (TM, F*d)
    parts = [x] if include_input else []
    for k in range(len(freq_bands)):
        for v in vals:
            parts.append(v[:, k * d:(k + 1) * d])
    o_ref[...] = jnp.concatenate(parts, axis=-1).astype(o_ref.dtype)


class FreqEncoder:
    """JAX/Pallas re-implementation of the PyTorch FreqEncoder forward pass."""

    def __init__(self, input_dim, max_freq_log2, N_freqs, log_sampling=True,
                 include_input=True, periodic_fns=(jnp.sin, jnp.cos),
                 block_bytes=2 << 20, use_packed_sincos=None, out_dtype=None):
        self.input_dim = int(input_dim)
        self.include_input = bool(include_input)
        self.periodic_fns = tuple(periodic_fns)
        self.block_bytes = int(block_bytes)
        self.out_dtype = out_dtype

        d = self.input_dim
        self.output_dim = (d if self.include_input else 0)
        self.output_dim += d * N_freqs * len(self.periodic_fns)

        if log_sampling:
            if N_freqs == 1:
                bands = [2.0 ** 0.0]
            else:
                bands = [2.0 ** (max_freq_log2 * i / (N_freqs - 1))
                         for i in range(N_freqs)]
        else:
            lo, hi = 2.0 ** 0.0, 2.0 ** max_freq_log2
            if N_freqs == 1:
                bands = [lo]
            else:
                bands = [lo + (hi - lo) * i / (N_freqs - 1)
                         for i in range(N_freqs)]
        self.freq_bands = bands

        is_sincos = (len(self.periodic_fns) == 2
                     and self.periodic_fns[0] is jnp.sin
                     and self.periodic_fns[1] is jnp.cos)
        if use_packed_sincos is None:
            self.use_packed_sincos = is_sincos
        else:
            self.use_packed_sincos = bool(use_packed_sincos) and is_sincos

        if self.use_packed_sincos:
            self._build_packed_constants()

    # ----- packed-path constants (built once) ------------------------------
    def _build_packed_constants(self):
        d, d_out = self.input_dim, self.output_dim
        r = 128 // math.gcd(d_out, 128)       # smallest R with R*d_out % 128 == 0
        if r * d_out > 4096:                  # bound MXU waste / constant size
            r = max(1, -(-256 // d_out))
        self.pack_r = r
        w = r * d_out
        self.pack_w = w

        # Per-output-column frequency scale, sin phase (cos(z)=sin(z+pi/2))
        # and identity-column mask, tiled over the R packed row slots.
        col_scale = np.ones((d_out,), np.float32)
        col_phase = np.zeros((d_out,), np.float32)
        col_isid = np.zeros((d_out,), np.float32)
        c = 0
        if self.include_input:
            col_isid[:d] = 1.0
            c = d
        for f in self.freq_bands:
            col_scale[c:c + d] = f                    # sin columns
            c += d
            col_scale[c:c + d] = f                    # cos columns
            col_phase[c:c + d] = _HALF_PI
            c += d
        aux = np.stack([np.tile(col_scale, r),
                        np.tile(col_phase, r),
                        np.tile(col_isid, r)])        # (3, W)
        self._aux = jnp.asarray(aux, dtype=jnp.float32)

        # 0/1 lane-selection matrix: output column s*d_out + j reads input
        # lane s*d + (j % d).  Block-diagonal over the R slots; exact in bf16.
        g01 = np.zeros((r * d, w), np.float32)
        for s in range(r):
            for j in range(d_out):
                g01[s * d + (j % d), s * d_out + j] = 1.0
        self._gsel = jnp.asarray(g01, dtype=jnp.bfloat16)   # (R*d, W)

    # ----- call paths --------------------------------------------------------
    def _call_packed(self, x2, n, out_dtype):
        d, d_out = self.input_dim, self.output_dim
        r, w = self.pack_r, self.pack_w

        n_pad = _round_up(n, r)
        if n_pad != n:
            # TODO(synk): ragged n (n % R != 0) costs a small input pad plus one
            # output-sized slice copy; the divisible case has no extra HBM pass.
            x2 = jnp.pad(x2, ((0, n_pad - n), (0, 0)))
        n_p = n_pad // r
        xp = x2.reshape(n_p, r * d)                  # free row-major reshape

        if n_p <= 32:
            tm = n_p                                 # single block == full dim
        else:
            quarter = _round_up(-(-n_p // 4), 8)     # >= ~4 steps (2 TCs on v7x)
            target = max(8, (self.block_bytes // (w * 4)) // 8 * 8)
            tm = max(8, min(quarter, target))
        grid = (pl.cdiv(n_p, tm),)

        kernel = functools.partial(_freq_encoder_kernel_packed,
                                   include_input=self.include_input)
        out = pl.pallas_call(
            kernel,
            out_shape=jax.ShapeDtypeStruct((n_p, w), out_dtype),
            grid_spec=pltpu.PrefetchScalarGridSpec(
                num_scalar_prefetch=0,
                grid=grid,
                in_specs=[
                    pl.BlockSpec((tm, r * d), lambda i: (i, 0)),
                    pl.BlockSpec(self._gsel.shape, lambda i: (0, 0)),
                    pl.BlockSpec(self._aux.shape, lambda i: (0, 0)),
                ],
                out_specs=pl.BlockSpec((tm, w), lambda i: (i, 0)),
            ),
            compiler_params=pltpu.CompilerParams(
                dimension_semantics=("parallel",)),
        )(xp, self._gsel, self._aux)

        out = out.reshape(n_pad, d_out)
        if n_pad != n:
            out = out[:n]
        return out

    def _call_generic(self, x2, n, out_dtype):
        d, d_out = self.input_dim, self.output_dim
        row_bytes = (d + d_out) * 4
        target = max(8, (self.block_bytes // row_bytes) // 8 * 8)
        tm = n if n <= target else target
        grid = (pl.cdiv(n, tm),)

        kernel = functools.partial(_freq_encoder_kernel_generic,
                                   freq_bands=tuple(self.freq_bands),
                                   periodic_fns=self.periodic_fns,
                                   include_input=self.include_input,
                                   input_dim=d)
        return pl.pallas_call(
            kernel,
            out_shape=jax.ShapeDtypeStruct((n, d_out), out_dtype),
            grid_spec=pltpu.PrefetchScalarGridSpec(
                num_scalar_prefetch=0,
                grid=grid,
                in_specs=[pl.BlockSpec((tm, d), lambda i: (i, 0))],
                out_specs=pl.BlockSpec((tm, d_out), lambda i: (i, 0)),
            ),
            compiler_params=pltpu.CompilerParams(
                dimension_semantics=("parallel",)),
        )(x2)

    def __call__(self, x, **kwargs):
        x = jnp.asarray(x)
        assert x.shape[-1] == self.input_dim, x.shape
        lead = x.shape[:-1]
        d_out = self.output_dim
        out_dtype = x.dtype if self.out_dtype is None else self.out_dtype
        n = int(np.prod(lead)) if lead else 1
        if n == 0:
            return jnp.zeros(lead + (d_out,), out_dtype)
        x2 = x.reshape(n, self.input_dim)
        if self.use_packed_sincos:
            out = self._call_packed(x2, n, out_dtype)
        else:
            out = self._call_generic(x2, n, out_dtype)
        return out.reshape(lead + (d_out,))


def _reference(x, freq_bands, include_input, periodic_fns=(jnp.sin, jnp.cos)):
    out = []
    if include_input:
        out.append(x)
    for f in freq_bands:
        for p_fn in periodic_fns:
            out.append(p_fn(x * f))
    return jnp.concatenate(out, axis=-1)


if __name__ == "__main__":
    key = jax.random.PRNGKey(0)
    k1, k2, k3 = jax.random.split(key, 3)

    input_dim, max_freq_log2, n_freqs = 4, 3, 4
    enc = FreqEncoder(input_dim, max_freq_log2, n_freqs,
                      log_sampling=True, include_input=True)

    # 1) ragged batch (n % R != 0): exercises input pad + output slice.
    x = jax.random.normal(k1, (301, input_dim), dtype=jnp.float32)
    out = jax.block_until_ready(enc(x))
    ref = _reference(x, enc.freq_bands, enc.include_input)
    assert out.shape == (301, enc.output_dim), out.shape
    assert jnp.allclose(out, ref, atol=1e-4, rtol=1e-5), "packed (ragged) mismatch"

    # 2) R-divisible batch, multi-step grid with a partial boundary block
    #    (no pad / no output slice).
    xb = jax.random.normal(k2, (1312, input_dim), dtype=jnp.float32)
    outb = jax.block_until_ready(enc(xb))
    refb = _reference(xb, enc.freq_bands, enc.include_input)
    assert outb.shape == (1312, enc.output_dim), outb.shape
    assert jnp.allclose(outb, refb, atol=1e-4, rtol=1e-5), "packed (tiled) mismatch"

    # 3) exact generic-fns fallback path.
    enc_exact = FreqEncoder(input_dim, max_freq_log2, n_freqs,
                            log_sampling=True, include_input=True,
                            use_packed_sincos=False)
    out_exact = jax.block_until_ready(enc_exact(x))
    assert jnp.allclose(out_exact, ref, atol=1e-5, rtol=1e-5), "generic mismatch"

    # 4) arbitrary leading dims, like the PyTorch module.
    x3 = jax.random.normal(k3, (2, 8, input_dim), dtype=jnp.float32)
    out3 = jax.block_until_ready(enc(x3))
    ref3 = _reference(x3, enc.freq_bands, enc.include_input)
    assert out3.shape == (2, 8, enc.output_dim), out3.shape
    assert jnp.allclose(out3, ref3, atol=1e-4, rtol=1e-5), "3-D input mismatch"

    # 5) bf16 output option (halves output HBM traffic).
    enc_bf16 = FreqEncoder(input_dim, max_freq_log2, n_freqs,
                           out_dtype=jnp.bfloat16)
    out16 = jax.block_until_ready(enc_bf16(xb))
    assert out16.dtype == jnp.bfloat16, out16.dtype
    assert jnp.allclose(out16.astype(jnp.float32), refb, atol=5e-2, rtol=5e-2), \
        "bf16 output mismatch"

    print("KERNEL_OK")
</pallas_src>

<mosaic_0001>
module attributes {stable_mosaic.version = 11 : i64} {
  func.func @_freq_encoder_kernel_packed(%arg0: i32, %arg1: memref<10x128xf32, #tpu.memory_space<vmem>>, %arg2: memref<128x1152xbf16, #tpu.memory_space<vmem>>, %arg3: memref<3x1152xf32, #tpu.memory_space<vmem>>, %arg4: memref<10x1152xf32, #tpu.memory_space<vmem>>) attributes {dimension_semantics = [#tpu.dimension_semantics<parallel>], iteration_bounds = array<i64: 1>, scalar_prefetch = 0 : i64, scratch_operands = 0 : i64, tpu.core_type = #tpu.core_type<tc>, window_params = [{transform_indices = @transform_0, window_bounds = array<i64: 10, 128>}, {pipeline_mode = #tpu.pipeline_mode<synchronous>, transform_indices = @transform_1, window_bounds = array<i64: 128, 1152>}, {pipeline_mode = #tpu.pipeline_mode<synchronous>, transform_indices = @transform_2, window_bounds = array<i64: 3, 1152>}, {transform_indices = @transform_3, window_bounds = array<i64: 10, 1152>}]} {
    %c0 = arith.constant 0 : index
    %c0_0 = arith.constant 0 : index
    %0 = vector.load %arg1[%c0, %c0_0] : memref<10x128xf32, #tpu.memory_space<vmem>>, vector<10x128xf32>
    %1 = arith.truncf %0 : vector<10x128xf32> to vector<10x128xbf16>
    %2 = arith.extf %1 : vector<10x128xbf16> to vector<10x128xf32>
    %3 = arith.subf %0, %2 : vector<10x128xf32>
    %4 = arith.truncf %3 : vector<10x128xf32> to vector<10x128xbf16>
    %5 = arith.extf %4 : vector<10x128xbf16> to vector<10x128xf32>
    %6 = arith.subf %3, %5 : vector<10x128xf32>
    %7 = arith.truncf %6 : vector<10x128xf32> to vector<10x128xbf16>
    %c0_1 = arith.constant 0 : index
    %c0_2 = arith.constant 0 : index
    %8 = vector.load %arg2[%c0_1, %c0_2] : memref<128x1152xbf16, #tpu.memory_space<vmem>>, vector<128x1152xbf16>
    %cst = arith.constant dense<0.000000e+00> : vector<10x1152xf32>
    %9 = tpu.matmul %1, %8, %cst {dimension_numbers = #tpu.dot_dimension_numbers<[1], [0], [0], [1], [0, 0, 1, 1], [], []>} : vector<10x128xbf16>, vector<128x1152xbf16>, vector<10x1152xf32> -> vector<10x1152xf32>
    %cst_3 = arith.constant dense<0.000000e+00> : vector<10x1152xf32>
    %10 = tpu.matmul %4, %8, %cst_3 {dimension_numbers = #tpu.dot_dimension_numbers<[1], [0], [0], [1], [0, 0, 1, 1], [], []>} : vector<10x128xbf16>, vector<128x1152xbf16>, vector<10x1152xf32> -> vector<10x1152xf32>
    %11 = arith.addf %9, %10 : vector<10x1152xf32>
    %cst_4 = arith.constant dense<0.000000e+00> : vector<10x1152xf32>
    %12 = tpu.matmul %7, %8, %cst_4 {dimension_numbers = #tpu.dot_dimension_numbers<[1], [0], [0], [1], [0, 0, 1, 1], [], []>} : vector<10x128xbf16>, vector<128x1152xbf16>, vector<10x1152xf32> -> vector<10x1152xf32>
    %13 = arith.addf %11, %12 : vector<10x1152xf32>
    %c0_5 = arith.constant 0 : index
    %c0_6 = arith.constant 0 : index
    %14 = vector.load %arg3[%c0_5, %c0_6] : memref<3x1152xf32, #tpu.memory_space<vmem>>, vector<1x1152xf32>
    %c1 = arith.constant 1 : index
    %c0_7 = arith.constant 0 : index
    %15 = vector.load %arg3[%c1, %c0_7] : memref<3x1152xf32, #tpu.memory_space<vmem>>, vector<1x1152xf32>
    %16 = vector.broadcast %14 : vector<1x1152xf32> to vector<10x1152xf32>
    %17 = arith.mulf %13, %16 : vector<10x1152xf32>
    %18 = vector.broadcast %15 : vector<1x1152xf32> to vector<10x1152xf32>
    %19 = arith.addf %17, %18 : vector<10x1152xf32>
    %20 = math.sin %19 : vector<10x1152xf32>
    %c2 = arith.constant 2 : index
    %c0_8 = arith.constant 0 : index
    %21 = vector.load %arg3[%c2, %c0_8] : memref<3x1152xf32, #tpu.memory_space<vmem>>, vector<1x1152xf32>
    %cst_9 = arith.constant 5.000000e-01 : f32
    %22 = vector.broadcast %cst_9 : f32 to vector<1x1152xf32>
    %23 = arith.cmpf ogt, %21, %22 : vector<1x1152xf32>
    %24 = vector.shape_cast %23 : vector<1x1152xi1> to vector<1x1152xi1>
    %25 = vector.broadcast %24 : vector<1x1152xi1> to vector<10x1152xi1>
    %26 = arith.select %25, %19, %20 : vector<10x1152xi1>, vector<10x1152xf32>
    %c0_10 = arith.constant 0 : index
    %c0_11 = arith.constant 0 : index
    %27 = vector.load %arg4[%c0_10, %c0_11] : memref<10x1152xf32, #tpu.memory_space<vmem>>, vector<10x1152xf32>
    tpu.vector_store %arg4[%c0_10, %c0_11], %26 {strides = array<i32>} : memref<10x1152xf32, #tpu.memory_space<vmem>>, vector<10x1152xf32>,
    return
  }
  func.func @transform_0(%arg0: i32) -> (i32, i32) {
    %c0_i32 = arith.constant 0 : i32
    %c0_i32_0 = arith.constant 0 : i32
    return %arg0, %c0_i32 : i32, i32
  }
  func.func @transform_1(%arg0: i32) -> (i32, i32) {
    %c0_i32 = arith.constant 0 : i32
    %c0_i32_0 = arith.constant 0 : i32
    %c0_i32_1 = arith.constant 0 : i32
    return %c0_i32, %c0_i32_0 : i32, i32
  }
  func.func @transform_2(%arg0: i32) -> (i32, i32) {
    %c0_i32 = arith.constant 0 : i32
    %c0_i32_0 = arith.constant 0 : i32
    %c0_i32_1 = arith.constant 0 : i32
    return %c0_i32, %c0_i32_0 : i32, i32
  }
  func.func @transform_3(%arg0: i32) -> (i32, i32) {
    %c0_i32 = arith.constant 0 : i32
    %c0_i32_0 = arith.constant 0 : i32
    return %arg0, %c0_i32 : i32, i32
  }
}

</mosaic_0001>

<bundles_post_ra>
// kernel: tpu_custom_call.1
= control target key start
LH: loop header
LB: loop body
LE: loop exit
PB: predicated region body
PF: predicated region fallthrough
CT: control target
= control target key end

     0   :  { %8 = vsyncpa [#allocation3], 0  ;;  %s6207_s0 = inlined_call_operand.hbm [shape: f32[10,128], index: 0, kind: input, shape index: {}]   ;;  %s6208_s1 = inlined_call_operand.hbm [shape: bf16[128,1152], index: 1, kind: input, shape index: {}]   ;;  %s6209_s2 = inlined_call_operand.hbm [shape: f32[3,1152], index: 2, kind: input, shape index: {}]   ;;  %s6210_s3 = inlined_call_operand.hbm [shape: f32[10,1152], index: 3, kind: output, shape index: {}]  }
   0x1   :  { %9 = vsyncpa [#allocation6], 0 }
   0x2   :  { %10 = vsyncpa [#allocation4], 0  ;;  %s3923_s12 = smov [#allocation5]   ;;  %s3829_s16 = scalar_lea.hbm %s6208_s1, 9216 }
   0x3   :  { %s28_s13 = sshll.u32 %s3923_s12, 4  ;;  %p3830_p0 = scmp.ne.s32.totalorder %s6208_s1, %s3829_s16  ;;  %s29_s13 = int_to_ptr.vmem [resolvable:$true] %s28_s13 }
   0x4   :  { %p3833_p1 = scmp.lt.u32.totalorder %s3829_s16, %s6208_s1 }
   0x6   :  { %p3835_p2 = pnand %p3833_p1, %p3830_p0 }
   0x8   :  { %3838 = shalt.err (!%p3835_p2)
}
   0x9   :  { %s3839_s21 = scalar_lea.vmem %s29_s13, 9216  ;;  %p3844_p4 = scmp.lt.s32.totalorder %s29_s13, %s29_s13 }
   0xa   :  { %p3840_p3 = scmp.ne.s32.totalorder %s29_s13, %s3839_s21  ;;  %p3845_p5 = scmp.lt.s32.totalorder %s3839_s21, %s3839_s21 }
   0xc   :  { %p3846_p6 = por %p3845_p5, %p3844_p4 }
   0xe   :  { %p3847_p7 = pnand %p3846_p6, %p3840_p3 }
  0x10   :  { %3850 = shalt.err (!%p3847_p7)
}
  0x11   :  { %s3924_s22 = smov 576   ;;  %s3925_s23 = smov 36  }
  0x12   :  { %34 = dma.hbm_to_vmem [thread:$0]  %s6208_s1, 9216, %s29_s13, [#allocation6], %s3924_s22, %s3924_s22, %s3925_s23  }
  0x13   :  { %s3926_s26 = smov [#allocation2]   ;;  %s3851_s30 = scalar_lea.hbm %s6207_s0, 256 }
  0x14   :  { %s16_s27 = sshll.u32 %s3926_s26, 4  ;;  %p3852_p8 = scmp.ne.s32.totalorder %s6207_s0, %s3851_s30  ;;  %s17_s27 = int_to_ptr.vmem [resolvable:$true] %s16_s27 }
  0x15   :  { %p3855_p9 = scmp.lt.u32.totalorder %s3851_s30, %s6207_s0 }
  0x17   :  { %p3857_p10 = pnand %p3855_p9, %p3852_p8 }
  0x19   :  { %3860 = shalt.err (!%p3857_p10)
}
  0x1a   :  { %s3861_s8 = scalar_lea.vmem %s17_s27, 256  ;;  %p3866_p12 = scmp.lt.s32.totalorder %s17_s27, %s17_s27 }
  0x1b   :  { %p3862_p11 = scmp.ne.s32.totalorder %s17_s27, %s3861_s8  ;;  %p3867_p13 = scmp.lt.s32.totalorder %s3861_s8, %s3861_s8 }
  0x1d   :  { %p3868_p0 = por %p3867_p13, %p3866_p12 }
  0x1f   :  { %p3869_p1 = pnand %p3868_p0, %p3862_p11 }
  0x21   :  { %3872 = shalt.err (!%p3869_p1)
}
  0x22   :  { %s3927_s1 = smov 128   ;;  %s3928_s9 = smov 8  }
  0x23   :  { %22 = dma.hbm_to_vmem [thread:$0]  %s6207_s0, 256, %s17_s27, [#allocation3], %s3927_s1, %s3927_s1, %s3928_s9  }
  0x24   :  { %s3929_s12 = smov [#allocation7]   ;;  %s3873_s16 = scalar_lea.hbm %s6209_s2, 576 }
  0x25   :  { %s41_s13 = sshll.u32 %s3929_s12, 4  ;;  %p3874_p2 = scmp.ne.s32.totalorder %s6209_s2, %s3873_s16  ;;  %s42_s13 = int_to_ptr.vmem [resolvable:$true] %s41_s13 }
  0x26   :  { %p3877_p3 = scmp.lt.u32.totalorder %s3873_s16, %s6209_s2 }
  0x28   :  { %p3879_p4 = pnand %p3877_p3, %p3874_p2 }
  0x2a   :  { %3882 = shalt.err (!%p3879_p4)
}
  0x2b   :  { %s3883_s21 = scalar_lea.vmem %s42_s13, 576  ;;  %p3888_p6 = scmp.lt.s32.totalorder %s42_s13, %s42_s13 }
  0x2c   :  { %p3884_p5 = scmp.ne.s32.totalorder %s42_s13, %s3883_s21  ;;  %p3889_p7 = scmp.lt.s32.totalorder %s3883_s21, %s3883_s21 }
  0x2e   :  { %p3890_p8 = por %p3889_p7, %p3888_p6 }
  0x30   :  { %p3891_p9 = pnand %p3890_p8, %p3884_p5 }
  0x32   :  { %3894 = shalt.err (!%p3891_p9)
}
  0x33   :  { %44 = dma.hbm_to_vmem [thread:$0]  %s6209_s2, 576, %s42_s13, [#allocation6]  }
  0x34   :  { %3917 = dma.done.wait [#allocation3], 256  }
  0x35   :  { %3918 = vsyncadd [#allocation3], 4294967040 }
  0x36   :  { %3919 = dma.done.wait [#allocation6], 9792  }
  0x37   :  { %3920 = vsyncadd [#allocation6], 4294957504  ;;  %v6211_v0 = vmov 0   ;;  %v4000_v1 = vld [vmem:[#allocation5 + $0x4] ss:$36 sps:$4 sm:$0xff]   ;;  %v55_v28 = vld [vmem:[#allocation2] sm:$0xff] }
  0x38   :  { %548 = vmatprep.mubr.bf16.mxu1 %v6211_v0  ;;  %634 = vmatprep.mubr.bf16.mxu0 %v6211_v0  ;;  %v4002_v2 = vld [vmem:[#allocation5 + $0x14] ss:$36 sps:$4 sm:$0xff]   ;;  %v4005_v3 = vld [vmem:[#allocation5] ss:$36 sps:$4 sm:$0xff]   ;;  %v4010_v5 = vld [vmem:[#allocation5 + $0x4c] ss:$36 sps:$4 sm:$0xff]  }
  0x39   :  { %516 = vmatprep.subr.bf16.mxu1 %v4000_v1  ;;  %v4007_v4 = vld [vmem:[#allocation5 + $0x10] ss:$36 sps:$4 sm:$0xff]   ;;  %602 = vmatprep.subr.bf16.mxu0 %v4002_v2  ;;  %v4014_v6 = vld [vmem:[#allocation5 + $0x5c] ss:$36 sps:$4 sm:$0xff]   ;;  %v4016_v7 = vld [vmem:[#allocation5 + $0x48] ss:$36 sps:$4 sm:$0xff]  }
  0x3a   :  { %517 = vmatpush1.bf16.msra.mxu1 %v4005_v3  ;;  %603 = vmatpush1.bf16.msra.mxu0 %v4007_v4  ;;  %6237 = vst [vmem:[#allocation12_spill] sm:$0xff] %v4016_v7  ;;  %v4019_v8 = vld [vmem:[#allocation5 + $0x58] ss:$36 sps:$4 sm:$0xff]   ;;  %v4024_v10 = vld [vmem:[#allocation5 + $0xa4] ss:$36 sps:$4 sm:$0xff]   ;;  %v6219_v44 = vmov 0.0  }
  0x3b   :  { %518 = vmatprep.subr.bf16.mxu1 %v4010_v5  ;;  %604 = vmatprep.subr.bf16.mxu0 %v4014_v6  ;;  %v4022_v9 = vld [vmem:[#allocation5 + $0x94] ss:$36 sps:$4 sm:$0xff]   ;;  %v4028_v12 = vld [vmem:[#allocation5 + $0xa0] ss:$36 sps:$4 sm:$0xff]   ;;  %v4036_v14 = vld [vmem:[#allocation5 + $0xec] ss:$36 sps:$4 sm:$0xff]  }
  0x3c   :  { %6238 = vst [vmem:[#allocation13_spill] sm:$0xff] %v4022_v9  ;;  %v4026_v11 = vld [vmem:[#allocation5 + $0x90] ss:$36 sps:$4 sm:$0xff]   ;;  %v4032_v13 = vld [vmem:[#allocation5 + $0xdc] ss:$36 sps:$4 sm:$0xff]   ;;  %vm3932_vm0 = vmmov 0  }
  0x3d   :  { %6239 = vst [vmem:[#allocation14_spill] sm:$0xff] %v4026_v11  ;;  %6240 = vst [vmem:[#allocation15_spill] sm:$0xff] %v4032_v13  ;;  %v4038_v15 = vld [vmem:[#allocation5 + $0xd8] ss:$36 sps:$4 sm:$0xff]   ;;  %v4042_v16 = vld [vmem:[#allocation5 + $0xe8] ss:$36 sps:$4 sm:$0xff]  }
  0x3e   :  { %519 = vmatpush1.bf16.msra.mxu1 %v4016_v7  ;;  %605 = vmatpush1.bf16.msra.mxu0 %v4019_v8  ;;  %6241 = vst [vmem:[#allocation16_spill] sm:$0xff] %v4038_v15  ;;  %v4044_v17 = vld [vmem:[#allocation5 + $0x124] ss:$36 sps:$4 sm:$0xff]   ;;  %v4048_v18 = vld [vmem:[#allocation5 + $0x134] ss:$36 sps:$4 sm:$0xff]   ;;  %s3939_s2 = smov [#allocation8]  }
  0x3f   :  { %520 = vmatprep.subr.bf16.mxu1 %v4022_v9  ;;  %606 = vmatprep.subr.bf16.mxu0 %v4024_v10  ;;  %6242 = vst [vmem:[#allocation17_spill] sm:$0xff] %v4044_v17  ;;  %v4050_v19 = vld [vmem:[#allocation5 + $0x120] ss:$36 sps:$4 sm:$0xff]   ;;  %v4052_v20 = vld [vmem:[#allocation5 + $0x130] ss:$36 sps:$4 sm:$0xff]   ;;  %s3276_s23 = sshll.u32 %s3939_s2, 4  ;;  %s3277_s23 = int_to_ptr.vmem [resolvable:$true] %s3276_s23 }
  0x40   :  { %6243 = vst [vmem:[#allocation18_spill] sm:$0xff] %v4050_v19  ;;  %v4056_v21 = vld [vmem:[#allocation5 + $0x16c] ss:$36 sps:$4 sm:$0xff]   ;;  %v4060_v22 = vld [vmem:[#allocation5 + $0x17c] ss:$36 sps:$4 sm:$0xff]   ;;  %s3895_s24 = scalar_lea.vmem %s3277_s23, 2304  ;;  %p3900_p11 = scmp.lt.s32.totalorder %s3277_s23, %s3277_s23 }
  0x41   :  { %v4062_v23 = vld [vmem:[#allocation5 + $0x168] ss:$36 sps:$4 sm:$0xff]   ;;  %v4066_v24 = vld [vmem:[#allocation5 + $0x178] ss:$36 sps:$4 sm:$0xff]   ;;  %v4074_v27 = vld [vmem:[#allocation5 + $0x1b0] ss:$36 sps:$4 sm:$0xff]   ;;  %p3896_p10 = scmp.ne.s32.totalorder %s3277_s23, %s3895_s24  ;;  %p3901_p12 = scmp.lt.s32.totalorder %s3895_s24, %s3895_s24 }
  0x42   :  { %521 = vmatpush1.bf16.msra.mxu1 %v4026_v11  ;;  %607 = vmatpush1.bf16.msra.mxu0 %v4028_v12  ;;  %v4068_v25 = vld [vmem:[#allocation5 + $0x1b4] ss:$36 sps:$4 sm:$0xff]   ;;  %v4072_v26 = vld [vmem:[#allocation5 + $0x1c4] ss:$36 sps:$4 sm:$0xff]   ;;  %v4084_v32 = vld [vmem:[#allocation5 + $0x1fc] ss:$36 sps:$4 sm:$0xff]  }
  0x43   :  { %522 = vmatprep.subr.bf16.mxu1 %v4032_v13  ;;  %608 = vmatprep.subr.bf16.mxu0 %v4036_v14  ;;  %v56_v29 = vld [vmem:[#allocation2 + $0x8] sm:$0x3]  ;;  %v4078_v30 = vld [vmem:[#allocation5 + $0x1c0] ss:$36 sps:$4 sm:$0xff]   ;;  %v4086_v33 = vld [vmem:[#allocation5 + $0x20c] ss:$36 sps:$4 sm:$0xff]   ;;  %p3902_p13 = por %p3901_p12, %p3900_p11 }
  0x44   :  { %v4080_v31 = vpack.c.bf16 %v56_v29, %v55_v28  ;;  %v4090_v36 = vld [vmem:[#allocation5 + $0x1f8] ss:$36 sps:$4 sm:$0xff]   ;;  %v4094_v37 = vld [vmem:[#allocation5 + $0x208] ss:$36 sps:$4 sm:$0xff]   ;;  %v4112_v43 = vld [vmem:[#allocation5 + $0x20] ss:$36 sps:$4 sm:$0xff]  }
  0x45   :  { %v4102_v40 = vld [vmem:[#allocation5 + $0xc] ss:$36 sps:$4 sm:$0xff]   ;;  %6244 = vst [vmem:[#allocation19_spill] sm:$0xff] %v4112_v43  ;;  %v4116_v45 = vld [vmem:[#allocation5 + $0x54] ss:$36 sps:$4 sm:$0xff]   ;;  %p3903_p0 = pnand %p3902_p13, %p3896_p10 }
  0x46   :  { %523 = vmatpush1.bf16.msra.mxu1 %v4038_v15  ;;  %609 = vmatpush1.bf16.msra.mxu0 %v4042_v16  ;;  %v58_v34 = vunpack.c.l.bf16 %v4080_v31  ;;  %v59_v35 = vunpack.c.h.bf16 %v4080_v31  ;;  %v4110_v42 = vld [vmem:[#allocation5 + $0x8] ss:$36 sps:$4 sm:$0xff]   ;;  %v4120_v46 = vld [vmem:[#allocation5 + $0x50] ss:$36 sps:$4 sm:$0xff]   ;;  %v4128_v48 = vld [vmem:[#allocation5 + $0x9c] ss:$36 sps:$4 sm:$0xff]  }
  0x47   :  { %524 = vmatprep.subr.bf16.mxu1 %v4044_v17  ;;  %610 = vmatprep.subr.bf16.mxu0 %v4048_v18  ;;  %v4124_v47 = vld [vmem:[#allocation5 + $0x68] ss:$36 sps:$4 sm:$0xff]   ;;  %v4133_v49 = vld [vmem:[#allocation5 + $0x98] ss:$36 sps:$4 sm:$0xff]   ;;  %v4137_v50 = vld [vmem:[#allocation5 + $0xb0] ss:$36 sps:$4 sm:$0xff]  }
  0x48   :  { %v4096_v38 = vsub.f32 %v55_v28, %v58_v34  ;;  %v4098_v39 = vsub.f32 %v56_v29, %v59_v35  ;;  %6245 = vst [vmem:[#allocation20_spill] sm:$0xff] %v4124_v47  ;;  %6246 = vst [vmem:[#allocation21_spill] sm:$0xff] %v4137_v50  ;;  %v4141_v51 = vld [vmem:[#allocation5 + $0xe4] ss:$36 sps:$4 sm:$0xff]   ;;  %v4147_v53 = vld [vmem:[#allocation5 + $0xf8] ss:$36 sps:$4 sm:$0xff]  }
  0x49   :  { %v4145_v52 = vld [vmem:[#allocation5 + $0xe0] ss:$36 sps:$4 sm:$0xff]   ;;  %6247 = vst [vmem:[#allocation22_spill] sm:$0xff] %v4147_v53  ;;  %v4151_v54 = vld [vmem:[#allocation5 + $0x12c] ss:$36 sps:$4 sm:$0xff]  }
  0x4a   :  { %525 = vmatpush1.bf16.msra.mxu1 %v4050_v19  ;;  %611 = vmatpush1.bf16.msra.mxu0 %v4052_v20  ;;  %v4106_v41 = vpack.c.bf16 %v4098_v39, %v4096_v38  ;;  %v4155_v55 = vld [vmem:[#allocation5 + $0x128] ss:$36 sps:$4 sm:$0xff]   ;;  %v4157_v56 = vld [vmem:[#allocation5 + $0x140] ss:$36 sps:$4 sm:$0xff]   ;;  %v4161_v57 = vld [vmem:[#allocation5 + $0x174] ss:$36 sps:$4 sm:$0xff]  }
  0x4b   :  { %526 = vmatprep.subr.bf16.mxu1 %v4056_v21  ;;  %612 = vmatprep.subr.bf16.mxu0 %v4060_v22  ;;  %6248 = vst [vmem:[#allocation23_spill] sm:$0xff] %v4157_v56  ;;  %v4165_v58 = vld [vmem:[#allocation5 + $0x170] ss:$36 sps:$4 sm:$0xff]   ;;  %v4167_v59 = vld [vmem:[#allocation5 + $0x188] ss:$36 sps:$4 sm:$0xff]  }
  0x4c   :  { %6249 = vst [vmem:[#allocation24_spill] sm:$0xff] %v4167_v59  ;;  %v4171_v60 = vld [vmem:[#allocation5 + $0x1bc] ss:$36 sps:$4 sm:$0xff]   ;;  %v4177_v62 = vld [vmem:[#allocation5 + $0x1d0] ss:$36 sps:$4 sm:$0xff]   ;;  %v63_v35 = vunpack.c.l.bf16 %v4106_v41 }
  0x4d   :  { %v4175_v61 = vld [vmem:[#allocation5 + $0x1b8] ss:$36 sps:$4 sm:$0xff]   ;;  %6250 = vst [vmem:[#allocation25_spill] sm:$0xff] %v4177_v62  ;;  %v4181_v63 = vld [vmem:[#allocation5 + $0x204] ss:$36 sps:$4 sm:$0xff]  }
  0x4e   :  { %527 = vmatpush1.bf16.msra.mxu1 %v4062_v23  ;;  %613 = vmatpush1.bf16.msra.mxu0 %v4066_v24  ;;  %v4185_v28 = vld [vmem:[#allocation5 + $0x200] ss:$36 sps:$4 sm:$0xff]   ;;  %v4187_v29 = vld [vmem:[#allocation5 + $0x218] ss:$36 sps:$4 sm:$0xff]  }
  0x4f   :  { %528 = vmatprep.subr.bf16.mxu1 %v4068_v25  ;;  %614 = vmatprep.subr.bf16.mxu0 %v4072_v26  ;;  %6251 = vst [vmem:[#allocation26_spill] sm:$0xff] %v4187_v29  ;;  %v4191_v34 = vld [vmem:[#allocation5 + $0x1c] ss:$36 sps:$4 sm:$0xff]  }
  0x52   :  { %529 = vmatpush1.bf16.msra.mxu1 %v4074_v27  ;;  %615 = vmatpush1.bf16.msra.mxu0 %v4078_v30 }
  0x53   :  { %530 = vmatprep.subr.bf16.mxu1 %v4084_v32  ;;  %616 = vmatprep.subr.bf16.mxu0 %v4086_v33 }
  0x56   :  { %531 = vmatpush1.bf16.msra.mxu1 %v4090_v36  ;;  %617 = vmatpush1.bf16.msra.mxu0 %v4094_v37 }
  0x57   :  { %559 = vmatprep.subr.bf16.mxu1 %v4102_v40  ;;  %3460 = vmatprep.subr.bf16.mxu0 %v6219_v44 }
  0x59   :  { %549 = vmatmul.mubr.bf16.vlgmr.msra.gmra.mrb[0].mxu1 %v4106_v41  ;;  %635 = vmatmul.mubr.bf16.vlgmr.msra.gmra.mrb[0].mxu0 %v4106_v41 }
  0x5a   :  { %560 = vmatpush1.bf16.msra.mxu1 %v4110_v42  ;;  %3461 = vmatpush3.bf16.msra.mxu0 %v4112_v43 }
  0x5b   :  { %561 = vmatprep.subr.bf16.mxu1 %v4116_v45  ;;  %3462 = vmatprep.subr.bf16.mxu0 %v6219_v44 }
  0x5c   :  { %591 = vmatprep.mubr.bf16.mxu1 %v6211_v0  ;;  %3476 = vmatprep.mubr.msk.bf16.mxu0 %vm3932_vm0, %v6219_v44  ;;  %v64_v0 = vunpack.c.h.bf16 %v4106_v41 }
  0x5e   :  { %562 = vmatpush1.bf16.msra.mxu1 %v4120_v46  ;;  %3463 = vmatpush3.bf16.msra.mxu0 %v4124_v47 }
  0x5f   :  { %563 = vmatprep.subr.bf16.mxu1 %v4128_v48  ;;  %3464 = vmatprep.subr.bf16.mxu0 %v6219_v44 }
  0x62   :  { %564 = vmatpush1.bf16.msra.mxu1 %v4133_v49  ;;  %3465 = vmatpush3.bf16.msra.mxu0 %v4137_v50 }
  0x63   :  { %565 = vmatprep.subr.bf16.mxu1 %v4141_v51  ;;  %3466 = vmatprep.subr.bf16.mxu0 %v6219_v44 }
  0x66   :  { %566 = vmatpush1.bf16.msra.mxu1 %v4145_v52  ;;  %3467 = vmatpush3.bf16.msra.mxu0 %v4147_v53 }
  0x67   :  { %567 = vmatprep.subr.bf16.mxu1 %v4151_v54  ;;  %3468 = vmatprep.subr.bf16.mxu0 %v6219_v44 }
  0x6a   :  { %568 = vmatpush1.bf16.msra.mxu1 %v4155_v55  ;;  %3469 = vmatpush3.bf16.msra.mxu0 %v4157_v56  ;;  %v66_v56 = vsub.f32 %v4098_v39, %v64_v0  ;;  %v4211_v0 = vld [vmem:[#allocation5 + $0x60] ss:$36 sps:$4 sm:$0xff]   ;;  %v6253_v39 = vmov 0  }
  0x6b   :  { %569 = vmatprep.subr.bf16.mxu1 %v4161_v57  ;;  %3470 = vmatprep.subr.bf16.mxu0 %v6219_v44 }
  0x6e   :  { %570 = vmatpush1.bf16.msra.mxu1 %v4165_v58  ;;  %3471 = vmatpush3.bf16.msra.mxu0 %v4167_v59  ;;  %v65_v59 = vsub.f32 %v4096_v38, %v63_v35  ;;  %v4215_v38 = vld [vmem:[#allocation5 + $0xac] ss:$36 sps:$4 sm:$0xff]  }
  0x6f   :  { %571 = vmatprep.subr.bf16.mxu1 %v4171_v60  ;;  %3472 = vmatprep.subr.bf16.mxu0 %v6219_v44  ;;  %v4229_v35 = vld [vmem:[#allocation5 + $0xf0] ss:$36 sps:$4 sm:$0xff]  }
  0x70   :  { %v4205_v53 = vpack.c.bf16 %v66_v56, %v65_v59  ;;  %v4221_v56 = vld [vmem:[#allocation5 + $0xa8] ss:$36 sps:$4 sm:$0xff]   ;;  %v4225_v59 = vld [vmem:[#allocation5 + $0xf4] ss:$36 sps:$4 sm:$0xff]  }
  0x72   :  { %572 = vmatpush1.bf16.msra.mxu1 %v4175_v61  ;;  %3473 = vmatpush3.bf16.msra.mxu0 %v4177_v62  ;;  %v4199_v62 = vld [vmem:[#allocation5 + $0x18] ss:$36 sps:$4 sm:$0xff]   ;;  %6252 = vst [vmem:[#allocation27_spill] sm:$0xff] %v4205_v53 }
  0x73   :  { %573 = vmatprep.subr.bf16.mxu1 %v4181_v63  ;;  %3474 = vmatprep.subr.bf16.mxu0 %v6219_v44  ;;  %v4203_v44 = vld [vmem:[#allocation5 + $0x64] ss:$36 sps:$4 sm:$0xff]   ;;  %v4233_v53 = vld [vmem:[#allocation5 + $0x13c] ss:$36 sps:$4 sm:$0xff]  }
  0x76   :  { %574 = vmatpush1.bf16.msra.mxu1 %v4185_v28  ;;  %3475 = vmatpush3.bf16.msra.mxu0 %v4187_v29 }
  0x77   :  { %645 = vmatprep.subr.bf16.mxu1 %v4191_v34  ;;  %729 = vmatprep.subr.bf16.mxu0 %v4000_v1 }
  0x79   :  { %592 = vmatmul.mubr.bf16.vlgmr.msra.gmra.mrb[4].mxu1 %v4106_v41  ;;  %3477 = vmatmul.mubr.bf16.vlgmr.msra.gmra.mrb[4].mxu0 %v4106_v41 }
  0x7a   :  { %646 = vmatpush1.bf16.msra.mxu1 %v4199_v62  ;;  %730 = vmatpush1.bf16.msra.mxu0 %v4005_v3 }
  0x7b   :  { %647 = vmatprep.subr.bf16.mxu1 %v4203_v44  ;;  %731 = vmatprep.subr.bf16.mxu0 %v4010_v5 }
  0x7c   :  { %677 = vmatprep.mubr.bf16.mxu1 %v6253_v39  ;;  %761 = vmatprep.mubr.bf16.mxu0 %v6253_v39 }
  0x7e   :  { %648 = vmatpush1.bf16.msra.mxu1 %v4211_v0  ;;  %732 = vmatpush1.bf16.msra.mxu0 %v4016_v7  ;;  %v4237_v7 = vld [vmem:[#allocation5 + $0x138] ss:$36 sps:$4 sm:$0xff]  }
  0x7f   :  { %649 = vmatprep.subr.bf16.mxu1 %v4215_v38  ;;  %733 = vmatprep.subr.bf16.mxu0 %v4022_v9  ;;  %v4241_v9 = vld [vmem:[#allocation5 + $0x184] ss:$36 sps:$4 sm:$0xff]  }
  0x82   :  { %650 = vmatpush1.bf16.msra.mxu1 %v4221_v56  ;;  %734 = vmatpush1.bf16.msra.mxu0 %v4026_v11  ;;  %v4245_v11 = vld [vmem:[#allocation5 + $0x180] ss:$36 sps:$4 sm:$0xff]  }
  0x83   :  { %651 = vmatprep.subr.bf16.mxu1 %v4225_v59  ;;  %735 = vmatprep.subr.bf16.mxu0 %v4032_v13  ;;  %v4249_v13 = vld [vmem:[#allocation5 + $0x1cc] ss:$36 sps:$4 sm:$0xff]  }
  0x86   :  { %652 = vmatpush1.bf16.msra.mxu1 %v4229_v35  ;;  %736 = vmatpush1.bf16.msra.mxu0 %v4038_v15  ;;  %v4253_v15 = vld [vmem:[#allocation5 + $0x1c8] ss:$36 sps:$4 sm:$0xff]  }
  0x87   :  { %653 = vmatprep.subr.bf16.mxu1 %v4233_v53  ;;  %737 = vmatprep.subr.bf16.mxu0 %v4044_v17  ;;  %v4257_v17 = vld [vmem:[#allocation5 + $0x214] ss:$36 sps:$4 sm:$0xff]  }
  0x8a   :  { %654 = vmatpush1.bf16.msra.mxu1 %v4237_v7  ;;  %738 = vmatpush1.bf16.msra.mxu0 %v4050_v19  ;;  %v4261_v19 = vld [vmem:[#allocation5 + $0x210] ss:$36 sps:$4 sm:$0xff]  }
  0x8b   :  { %655 = vmatprep.subr.bf16.mxu1 %v4241_v9  ;;  %739 = vmatprep.subr.bf16.mxu0 %v4056_v21 }
  0x8e   :  { %656 = vmatpush1.bf16.msra.mxu1 %v4245_v11  ;;  %740 = vmatpush1.bf16.msra.mxu0 %v4062_v23 }
  0x8f   :  { %657 = vmatprep.subr.bf16.mxu1 %v4249_v13  ;;  %741 = vmatprep.subr.bf16.mxu0 %v4068_v25 }
  0x92   :  { %658 = vmatpush1.bf16.msra.mxu1 %v4253_v15  ;;  %742 = vmatpush1.bf16.msra.mxu0 %v4074_v27 }
  0x93   :  { %659 = vmatprep.subr.bf16.mxu1 %v4257_v17  ;;  %743 = vmatprep.subr.bf16.mxu0 %v4084_v32 }
  0x96   :  { %660 = vmatpush1.bf16.msra.mxu1 %v4261_v19  ;;  %744 = vmatpush1.bf16.msra.mxu0 %v4090_v36 }
  0x97   :  { %772 = vmatprep.subr.bf16.mxu1 %v4102_v40  ;;  %815 = vmatprep.subr.bf16.mxu0 %v4002_v2 }
  0x99   :  { %678 = vmatmul.mubr.bf16.vlgmr.msra.gmra.mrb[8].mxu1 %v4106_v41  ;;  %762 = vmatmul.mubr.bf16.vlgmr.msra.gmra.mrb[8].mxu0 %v4080_v31  ;;  %v6254_v41 = vmov 0.0  }
  0x9a   :  { %773 = vmatpush1.bf16.msra.mxu1 %v4110_v42  ;;  %816 = vmatpush1.bf16.msra.mxu0 %v4007_v4 }
  0x9b   :  { %774 = vmatprep.subr.bf16.mxu1 %v4116_v45  ;;  %817 = vmatprep.subr.bf16.mxu0 %v4014_v6 }
  0x9c   :  { %804 = vmatprep.mubr.bf16.mxu1 %v6253_v39  ;;  %847 = vmatprep.mubr.bf16.mxu0 %v6253_v39 }
  0x9e   :  { %775 = vmatpush1.bf16.msra.mxu1 %v4120_v46  ;;  %818 = vmatpush1.bf16.msra.mxu0 %v4019_v8 }
  0x9f   :  { %776 = vmatprep.subr.bf16.mxu1 %v4128_v48  ;;  %819 = vmatprep.subr.bf16.mxu0 %v4024_v10 }
  0xa2   :  { %777 = vmatpush1.bf16.msra.mxu1 %v4133_v49  ;;  %820 = vmatpush1.bf16.msra.mxu0 %v4028_v12 }
  0xa3   :  { %778 = vmatprep.subr.bf16.mxu1 %v4141_v51  ;;  %821 = vmatprep.subr.bf16.mxu0 %v4036_v14 }
  0xa6   :  { %779 = vmatpush1.bf16.msra.mxu1 %v4145_v52  ;;  %822 = vmatpush1.bf16.msra.mxu0 %v4042_v16 }
  0xa7   :  { %780 = vmatprep.subr.bf16.mxu1 %v4151_v54  ;;  %823 = vmatprep.subr.bf16.mxu0 %v4048_v18 }
  0xaa   :  { %781 = vmatpush1.bf16.msra.mxu1 %v4155_v55  ;;  %824 = vmatpush1.bf16.msra.mxu0 %v4052_v20 }
  0xab   :  { %782 = vmatprep.subr.bf16.mxu1 %v4161_v57  ;;  %825 = vmatprep.subr.bf16.mxu0 %v4060_v22 }
  0xae   :  { %783 = vmatpush1.bf16.msra.mxu1 %v4165_v58  ;;  %826 = vmatpush1.bf16.msra.mxu0 %v4066_v24 }
  0xaf   :  { %784 = vmatprep.subr.bf16.mxu1 %v4171_v60  ;;  %827 = vmatprep.subr.bf16.mxu0 %v4072_v26 }
  0xb2   :  { %785 = vmatpush1.bf16.msra.mxu1 %v4175_v61  ;;  %828 = vmatpush1.bf16.msra.mxu0 %v4078_v30 }
  0xb3   :  { %786 = vmatprep.subr.bf16.mxu1 %v4181_v63  ;;  %829 = vmatprep.subr.bf16.mxu0 %v4086_v33 }
  0xb6   :  { %787 = vmatpush1.bf16.msra.mxu1 %v4185_v28  ;;  %830 = vmatpush1.bf16.msra.mxu0 %v4094_v37 }
  0xb7   :  { %858 = vmatprep.subr.bf16.mxu1 %v4191_v34  ;;  %3480 = vmatprep.subr.bf16.mxu0 %v6254_v41 }
  0xb9   :  { %805 = vmatmul.mubr.bf16.vlgmr.msra.gmra.mrb[4].mxu1 %v4080_v31  ;;  %848 = vmatmul.mubr.bf16.vlgmr.msra.gmra.mrb[0].mxu0 %v4080_v31 }
  0xba   :  { %859 = vmatpush1.bf16.msra.mxu1 %v4199_v62  ;;  %3481 = vmatpush3.bf16.msra.mxu0 %v4112_v43  ;;  %v6255_v43 = vld [vmem:[#allocation22_spill] sm:$0xff] }
  0xbb   :  { %860 = vmatprep.subr.bf16.mxu1 %v4203_v44  ;;  %3482 = vmatprep.subr.bf16.mxu0 %v6254_v41 }
  0xbc   :  { %890 = vmatprep.mubr.bf16.mxu1 %v6253_v39  ;;  %3496 = vmatprep.mubr.msk.bf16.mxu0 %vm3932_vm0, %v6254_v41 }
  0xbe   :  { %861 = vmatpush1.bf16.msra.mxu1 %v4211_v0  ;;  %3483 = vmatpush3.bf16.msra.mxu0 %v4124_v47  ;;  %v6256_v47 = vld [vmem:[#allocation23_spill] sm:$0xff] }
  0xbf   :  { %862 = vmatprep.subr.bf16.mxu1 %v4215_v38  ;;  %3484 = vmatprep.subr.bf16.mxu0 %v6254_v41 }
  0xc2   :  { %863 = vmatpush1.bf16.msra.mxu1 %v4221_v56  ;;  %3485 = vmatpush3.bf16.msra.mxu0 %v4137_v50  ;;  %v6257_v50 = vld [vmem:[#allocation24_spill] sm:$0xff] }
  0xc3   :  { %864 = vmatprep.subr.bf16.mxu1 %v4225_v59  ;;  %3486 = vmatprep.subr.bf16.mxu0 %v6254_v41 }
  0xc6   :  { %865 = vmatpush1.bf16.msra.mxu1 %v4229_v35  ;;  %3487 = vmatpush3.bf16.msra.mxu0 %v6255_v43  ;;  %v6258_v43 = vld [vmem:[#allocation25_spill] sm:$0xff] }
  0xc7   :  { %866 = vmatprep.subr.bf16.mxu1 %v4233_v53  ;;  %3488 = vmatprep.subr.bf16.mxu0 %v6254_v41 }
  0xca   :  { %867 = vmatpush1.bf16.msra.mxu1 %v4237_v7  ;;  %3489 = vmatpush3.bf16.msra.mxu0 %v6256_v47 }
  0xcb   :  { %868 = vmatprep.subr.bf16.mxu1 %v4241_v9  ;;  %3490 = vmatprep.subr.bf16.mxu0 %v6254_v41 }
  0xce   :  { %869 = vmatpush1.bf16.msra.mxu1 %v4245_v11  ;;  %3491 = vmatpush3.bf16.msra.mxu0 %v6257_v50 }
  0xcf   :  { %870 = vmatprep.subr.bf16.mxu1 %v4249_v13  ;;  %3492 = vmatprep.subr.bf16.mxu0 %v6254_v41 }
  0xd2   :  { %871 = vmatpush1.bf16.msra.mxu1 %v4253_v15  ;;  %3493 = vmatpush3.bf16.msra.mxu0 %v6258_v43 }
  0xd3   :  { %872 = vmatprep.subr.bf16.mxu1 %v4257_v17  ;;  %3494 = vmatprep.subr.bf16.mxu0 %v6254_v41 }
  0xd6   :  { %873 = vmatpush1.bf16.msra.mxu1 %v4261_v19  ;;  %3495 = vmatpush3.bf16.msra.mxu0 %v4187_v29  ;;  %v6259_v29 = vld [vmem:[#allocation12_spill] sm:$0xff] }
  0xd7   :  { %942 = vmatprep.subr.bf16.mxu0 %v4000_v1  ;;  %985 = vmatprep.subr.bf16.mxu1 %v4102_v40  ;;  %v6260_v1 = vld [vmem:[#allocation13_spill] sm:$0xff] }
  0xd8   :  { %v6264_v40 = vld [vmem:[#allocation17_spill] sm:$0xff] }
  0xd9   :  { %891 = vmatmul.mubr.bf16.vlgmr.msra.gmra.mrb[8].mxu1 %v4080_v31  ;;  %3497 = vmatmul.mubr.bf16.vlgmr.msra.gmra.mrb[4].mxu0 %v4080_v31  ;;  %v6261_v31 = vld [vmem:[#allocation14_spill] sm:$0xff] }
  0xda   :  { %943 = vmatpush1.bf16.msra.mxu0 %v4005_v3  ;;  %986 = vmatpush1.bf16.msra.mxu1 %v4110_v42  ;;  %v6262_v3 = vld [vmem:[#allocation15_spill] sm:$0xff]  ;;  %v6265_v42 = vld [vmem:[#allocation18_spill] sm:$0xff] }
  0xdb   :  { %944 = vmatprep.subr.bf16.mxu0 %v4010_v5  ;;  %987 = vmatprep.subr.bf16.mxu1 %v4116_v45  ;;  %v6263_v5 = vld [vmem:[#allocation16_spill] sm:$0xff] }
  0xdc   :  { %974 = vmatprep.mubr.bf16.mxu0 %v6253_v39  ;;  %1017 = vmatprep.mubr.bf16.mxu1 %v6253_v39 }
  0xde   :  { %945 = vmatpush1.bf16.msra.mxu0 %v6259_v29  ;;  %988 = vmatpush1.bf16.msra.mxu1 %v4120_v46 }
  0xdf   :  { %946 = vmatprep.subr.bf16.mxu0 %v6260_v1  ;;  %989 = vmatprep.subr.bf16.mxu1 %v4128_v48 }
  0xe2   :  { %947 = vmatpush1.bf16.msra.mxu0 %v6261_v31  ;;  %990 = vmatpush1.bf16.msra.mxu1 %v4133_v49 }
  0xe3   :  { %948 = vmatprep.subr.bf16.mxu0 %v6262_v3  ;;  %991 = vmatprep.subr.bf16.mxu1 %v4141_v51 }
  0xe6   :  { %949 = vmatpush1.bf16.msra.mxu0 %v6263_v5  ;;  %992 = vmatpush1.bf16.msra.mxu1 %v4145_v52 }
  0xe7   :  { %950 = vmatprep.subr.bf16.mxu0 %v6264_v40  ;;  %993 = vmatprep.subr.bf16.mxu1 %v4151_v54 }
  0xea   :  { %951 = vmatpush1.bf16.msra.mxu0 %v6265_v42  ;;  %994 = vmatpush1.bf16.msra.mxu1 %v4155_v55 }
  0xeb   :  { %952 = vmatprep.subr.bf16.mxu0 %v4056_v21  ;;  %995 = vmatprep.subr.bf16.mxu1 %v4161_v57  ;;  %v6266_v21 = vld [vmem:[#allocation27_spill] sm:$0xff] }
  0xee   :  { %953 = vmatpush1.bf16.msra.mxu0 %v4062_v23  ;;  %996 = vmatpush1.bf16.msra.mxu1 %v4165_v58 }
  0xef   :  { %954 = vmatprep.subr.bf16.mxu0 %v4068_v25  ;;  %997 = vmatprep.subr.bf16.mxu1 %v4171_v60 }
  0xf2   :  { %955 = vmatpush1.bf16.msra.mxu0 %v4074_v27  ;;  %998 = vmatpush1.bf16.msra.mxu1 %v4175_v61 }
  0xf3   :  { %956 = vmatprep.subr.bf16.mxu0 %v4084_v32  ;;  %999 = vmatprep.subr.bf16.mxu1 %v4181_v63 }
  0xf6   :  { %957 = vmatpush1.bf16.msra.mxu0 %v4090_v36  ;;  %1000 = vmatpush1.bf16.msra.mxu1 %v4185_v28 }
  0xf7   :  { %1028 = vmatprep.subr.bf16.mxu0 %v4002_v2  ;;  %1071 = vmatprep.subr.bf16.mxu1 %v4191_v34  ;;  %v6267_v2 = vld [vmem:[#allocation19_spill] sm:$0xff] }
  0xf9   :  { %975 = vmatmul.mubr.bf16.vlgmr.msra.gmra.mrb[8].mxu0 %v6266_v21  ;;  %1018 = vmatmul.mubr.bf16.vlgmr.msra.gmra.mrb[4].mxu1 %v6266_v21 }
  0xfa   :  { %1029 = vmatpush1.bf16.msra.mxu0 %v4007_v4  ;;  %1072 = vmatpush1.bf16.msra.mxu1 %v4199_v62  ;;  %v6268_v4 = vld [vmem:[#allocation20_spill] sm:$0xff] }
  0xfb   :  { %1030 = vmatprep.subr.bf16.mxu0 %v4014_v6  ;;  %1073 = vmatprep.subr.bf16.mxu1 %v4203_v44  ;;  %v6269_v6 = vld [vmem:[#allocation21_spill] sm:$0xff] }
  0xfc   :  { %1060 = vmatprep.mubr.bf16.mxu0 %v6253_v39  ;;  %1103 = vmatprep.mubr.bf16.mxu1 %v6253_v39 }
  0xfe   :  { %1031 = vmatpush1.bf16.msra.mxu0 %v4019_v8  ;;  %1074 = vmatpush1.bf16.msra.mxu1 %v4211_v0 }
  0xff   :  { %1032 = vmatprep.subr.bf16.mxu0 %v4024_v10  ;;  %1075 = vmatprep.subr.bf16.mxu1 %v4215_v38 }
 0x102   :  { %1033 = vmatpush1.bf16.msra.mxu0 %v4028_v12  ;;  %1076 = vmatpush1.bf16.msra.mxu1 %v4221_v56  ;;  %v6271_v12 = vld [vmem:[#allocation26_spill] sm:$0xff] }
 0x103   :  { %1034 = vmatprep.subr.bf16.mxu0 %v4036_v14  ;;  %1077 = vmatprep.subr.bf16.mxu1 %v4225_v59 }
 0x106   :  { %1035 = vmatpush1.bf16.msra.mxu0 %v4042_v16  ;;  %1078 = vmatpush1.bf16.msra.mxu1 %v4229_v35  ;;  %v1173_v16 = vld [vmem:[#allocation7] ss:$4 sm:$0xff] }
 0x107   :  { %1036 = vmatprep.subr.bf16.mxu0 %v4048_v18  ;;  %1079 = vmatprep.subr.bf16.mxu1 %v4233_v53  ;;  %v1177_v18 = vld [vmem:[#allocation7 + $0x1] ss:$4 sm:$0xff] }
 0x10a   :  { %1037 = vmatpush1.bf16.msra.mxu0 %v4052_v20  ;;  %1080 = vmatpush1.bf16.msra.mxu1 %v4237_v7  ;;  %v6270_v7 = vld [vmem:[#allocation22_spill] sm:$0xff] }
 0x10b   :  { %1038 = vmatprep.subr.bf16.mxu0 %v4060_v22  ;;  %1081 = vmatprep.subr.bf16.mxu1 %v4241_v9 }
 0x10e   :  { %1039 = vmatpush1.bf16.msra.mxu0 %v4066_v24  ;;  %1082 = vmatpush1.bf16.msra.mxu1 %v4245_v11 }
 0x10f   :  { %1040 = vmatprep.subr.bf16.mxu0 %v4072_v26  ;;  %1083 = vmatprep.subr.bf16.mxu1 %v4249_v13  ;;  %v1182_v13 = vlaneseq }
 0x111   :  { %v4433_v14 = vshrl.u32 %v1182_v13, 7 }
 0x112   :  { %1041 = vmatpush1.bf16.msra.mxu0 %v4078_v30  ;;  %1084 = vmatpush1.bf16.msra.mxu1 %v4253_v15 }
 0x113   :  { %1042 = vmatprep.subr.bf16.mxu0 %v4086_v33  ;;  %1085 = vmatprep.subr.bf16.mxu1 %v4257_v17  ;;  %v4436_v15 = vsub.s32 2, %v4433_v14  ;;  %v4439_v17 = vsub.s32 0, %v4433_v14  ;;  %v4470_v52 = vsub.s32 3, %v4433_v14 }
 0x115   :  { %v1193_v20 = vrot.slane %v1173_v16, %v4436_v15  ;;  %v4446_v22 = vrot.slane %v1173_v16, %v4439_v17  ;;  %v4449_v23 = vrot.slane %v1177_v18, %v4436_v15  ;;  %v4455_v30 = vrot.slane %v1177_v18, %v4439_v17 }
 0x116   :  { %1043 = vmatpush1.bf16.msra.mxu0 %v4094_v37  ;;  %1086 = vmatpush1.bf16.msra.mxu1 %v4261_v19  ;;  %v4442_v19 = vsub.s32 1, %v4433_v14  ;;  %v4487_v28 = vrot.slane %v1173_v16, %v4470_v52  ;;  %v4496_v3 = vrot.slane %v1177_v18, %v4470_v52 }
 0x117   :  { %3500 = vmatprep.subr.bf16.mxu0 %v6254_v41 }
 0x118   :  { %v4452_v26 = vrot.slane %v1173_v16, %v4442_v19 }
 0x119   :  { %1061 = vmatmul.mubr.bf16.vlgmr.msra.gmra.mrb[0].mxu0 %v6266_v21  ;;  %1104 = vmatmul.mubr.bf16.vlgmr.msra.gmra.mrb[8].mxu1 %v6266_v21 }
 0x11a   :  { %3501 = vmatpush3.bf16.msra.mxu0 %v6267_v2  ;;  %3516 = vmatprep.mubr.msk.bf16.mxu0 %vm3932_vm0, %v6254_v41 }
 0x11b   :  { %3502 = vmatprep.subr.bf16.mxu0 %v6254_v41 }
 0x11e   :  { %3503 = vmatpush3.bf16.msra.mxu0 %v6268_v4 }
 0x11f   :  { %3504 = vmatprep.subr.bf16.mxu0 %v6254_v41 }
 0x122   :  { %3505 = vmatpush3.bf16.msra.mxu0 %v6269_v6 }
 0x123   :  { %3506 = vmatprep.subr.bf16.mxu0 %v6254_v41 }
 0x126   :  { %3507 = vmatpush3.bf16.msra.mxu0 %v6270_v7 }
 0x127   :  { %3508 = vmatprep.subr.bf16.mxu0 %v6254_v41 }
 0x12a   :  { %3509 = vmatpush3.bf16.msra.mxu0 %v6256_v47 }
 0x12b   :  { %3510 = vmatprep.subr.bf16.mxu0 %v6254_v41 }
 0x12c   :  { %v550_v8 = vpop.f32.mrb[0].mxu1 }
 0x12d   :  { %v552_v9 = vpop.f32.mrb[1].mxu1 }
 0x12e   :  { %3511 = vmatpush3.bf16.msra.mxu0 %v6257_v50  ;;  %v554_v10 = vpop.f32.mrb[2].mxu1 }
 0x12f   :  { %3512 = vmatprep.subr.bf16.mxu0 %v6254_v41  ;;  %v556_v11 = vpop.f32.mrb[3].mxu1 }
 0x132   :  { %3513 = vmatpush3.bf16.msra.mxu0 %v6258_v43  ;;  %v4458_v43 = vrot.slane %v1177_v18, %v4442_v19  ;;  %v3933_v18 = vmov 683565275  }
 0x133   :  { %3514 = vmatprep.subr.bf16.mxu0 %v6254_v41 }
 0x136   :  { %3515 = vmatpush3.bf16.msra.mxu0 %v6271_v12 }
 0x139   :  { %3517 = vmatmul.mubr.bf16.vlgmr.msra.gmra.mrb[4].mxu0 %v6266_v21 }
 0x1cc   :  { %v976_v24 = vpop.f32.mrb[8].mxu0  ;;  %v1019_v25 = vpop.f32.mrb[4].mxu1 }
 0x1cd   :  { %v3520_v27 = vadd.f32 %v976_v24, %v550_v8  ;;  %v1229_v32 = vmul.f32 %v1193_v20, %v1019_v25  ;;  %v978_v33 = vpop.f32.mrb[9].mxu0  ;;  %v1021_v36 = vpop.f32.mrb[5].mxu1 }
 0x1ce   :  { %v3521_v37 = vadd.f32 %v978_v33, %v552_v9  ;;  %v980_v44 = vpop.f32.mrb[10].mxu0  ;;  %v1023_v45 = vpop.f32.mrb[6].mxu1  ;;  %v1230_v31 = vmul.f32 %v4487_v28, %v1021_v36  ;;  %v3935_v36 = vmov 2131351028  }
 0x1cf   :  { %v1227_v46 = vmul.f32 %v3520_v27, %v4446_v22  ;;  %v4462_v47 = vadd.f32 %v4449_v23, %v1229_v32  ;;  %v4464_v48 = vadd.f32 %v980_v44, %v554_v10  ;;  %v4466_v49 = vmul.f32 %v1193_v20, %v1023_v45  ;;  %v982_v50 = vpop.f32.mrb[11].mxu0  ;;  %v4492_v56 = vpop.f32.mrb[7].mxu1 }
 0x1d0   :  { %v1228_v51 = vmul.f32 %v3521_v37, %v4452_v26  ;;  %v4472_v53 = vadd.f32 %v982_v50, %v556_v11  ;;  %v4504_v8 = vadd.f32 %v4496_v3, %v1230_v31  ;;  %v3934_v32 = vmov 2475754826  }
 0x1d1   :  { %v4475_v54 = vadd.f32 %v4455_v30, %v1227_v46  ;;  %v1518_v55 = vand.u32 2147483647, %v4462_v47  ;;  %v1521_v57 = vand.u32 2139095040, %v4462_v47  ;;  %v3936_v46 = vmov 2102212464  }
 0x1d2   :  { %v4480_v58 = vadd.f32 %v4458_v43, %v1228_v51  ;;  %v3937_v51 = vmov 920167782  }
 0x1d3   :  { %v1310_v60 = vand.u32 2147483647, %v4475_v54  ;;  %v1313_v61 = vand.u32 2139095040, %v4475_v54  ;;  %v1522_v62 = vshrl.u32 %v1521_v57, 23  ;;  %v1525_v63 = vand.u32 8388607, %v1518_v55 }
 0x1d4   :  { %v1417_v0 = vand.u32 2139095040, %v4480_v58  ;;  %v6235_v42 = vand.u32 2147483647, %v4480_v58  ;;  %vm1312_vm15 = vcmp.lt.s32.totalorder %v4475_v54, 0 }
 0x1d5   :  { %v1314_v29 = vshrl.u32 %v1313_v61, 23  ;;  %v1317_v34 = vand.u32 8388607, %v1310_v60  ;;  %v3369_v38 = vadd.s32 4294967169, %v1522_v62  ;;  %v1526_v41 = vor.u32 8388608, %v1525_v63 }
 0x1d6   :  { %v1418_v35 = vshrl.u32 %v1417_v0, 23  ;;  %v4510_v12 = vand.u32 8388607, %v6235_v42  ;;  %v3938_v0 = vmov 1326507024  }
 0x1d7   :  { %v3361_v59 = vadd.s32 4294967169, %v1314_v29  ;;  %v1528_v1 = vadd.s32 1, %v3369_v38  ;;  %v1318_v5 = vor.u32 8388608, %v1317_v34  ;;  %v4501_v7 = vshll.u32 %v1526_v41, 8 }
 0x1d8   :  { %v3365_v21 = vadd.s32 4294967169, %v1418_v35  ;;  %vm4629_vm0 = vcmp.le.f32.partialorder %v1310_v60, 0.7853982 }
 0x1d9   :  { %v1320_v40 = vadd.s32 1, %v3361_v59  ;;  %vm1529_vm1 = vcmp.gt.s32.totalorder %v1528_v1, 0  ;;  %v4506_v11 = vshll.u32 %v1318_v5, 8 }
 0x1da   :  { %v1530_v2 = vsel %vm1529_vm1, %v1528_v1, 0  ;;  %v4517_v24 = vadd.s32 1, %v3365_v21 }
 0x1db   :  { %vm1321_vm2 = vcmp.gt.s32.totalorder %v1320_v40, 0  ;;  %v4499_v6 = vand.u32 31, %v1530_v2  ;;  %v4512_v13 = vshrl.u32 %v1530_v2, 5 }
 0x1dc   :  { %v1322_v4 = vsel %vm1321_vm2, %v1320_v40, 0  ;;  %vm1425_vm6 = vcmp.gt.s32.totalorder %v4517_v24, 0 }
 0x1dd   :  { %v1323_v9 = vshrl.u32 %v1322_v4, 5  ;;  %v1324_v10 = vand.u32 31, %v1322_v4  ;;  %v1533_v16 = vsub.s32 32, %v4499_v6  ;;  %v1535_v20 = vshll.u32 %v3933_v18, %v4499_v6 }
 0x1de   :  { %v1538_v33 = vshll.u32 %v3934_v32, %v4499_v6  ;;  %v1541_v37 = vshll.u32 %v3935_v36, %v4499_v6  ;;  %vm1550_vm8 = vcmp.lt.s32.totalorder %v4512_v13, 1  ;;  %vm1551_vm9 = vcmp.lt.s32.totalorder %v4512_v13, 2 }
 0x1df   :  { %v1325_v25 = vsub.s32 32, %v1324_v10  ;;  %v1327_v27 = vshll.u32 %v3933_v18, %v1324_v10  ;;  %v1330_v44 = vshll.u32 %v3934_v32, %v1324_v10  ;;  %v1333_v45 = vshll.u32 %v3935_v36, %v1324_v10 }
 0x1e0   :  { %v1336_v50 = vshll.u32 %v3936_v46, %v1324_v10  ;;  %v1339_v57 = vshll.u32 %v3937_v51, %v1324_v10  ;;  %vm1342_vm3 = vcmp.lt.s32.totalorder %v1323_v9, 1  ;;  %vm1344_vm4 = vcmp.lt.s32.totalorder %v1323_v9, 3 }
 0x1e1   :  { %v1328_v61 = vshrl.u32 %v3934_v32, %v1325_v25  ;;  %v1331_v62 = vshrl.u32 %v3935_v36, %v1325_v25  ;;  %v1334_v63 = vshrl.u32 %v3936_v46, %v1325_v25  ;;  %v1326_v29 = vshrl.u32 %v3933_v18, %v1325_v25 }
 0x1e2   :  { %v1337_v34 = vshrl.u32 %v3937_v51, %v1325_v25  ;;  %v1340_v38 = vshrl.u32 %v3938_v0, %v1325_v25  ;;  %vm1345_vm5 = vcmp.lt.s32.totalorder %v1323_v9, 4  ;;  %v1536_v5 = vshrl.u32 %v3934_v32, %v1533_v16 }
 0x1e3   :  { %v1329_v59 = vor.u32 %v1328_v61, %v1327_v27  ;;  %v1332_v35 = vor.u32 %v1331_v62, %v1330_v44  ;;  %v1335_v41 = vor.u32 %v1334_v63, %v1333_v45  ;;  %v1539_v40 = vshrl.u32 %v3935_v36, %v1533_v16 }
 0x1e4   :  { %v1338_v1 = vor.u32 %v1337_v34, %v1336_v50  ;;  %v1341_v31 = vor.u32 %v1340_v38, %v1339_v57  ;;  %vm1343_vm7 = vcmp.lt.s32.totalorder %v1323_v9, 2  ;;  %v1537_v61 = vor.u32 %v1536_v5, %v1535_v20 }
 0x1e5   :  { %v1346_v21 = vsel %vm1342_vm3, %v1326_v29, %v1329_v59  ;;  %v1347_v2 = vsel %vm1345_vm5, %v1335_v41, 2102212464  ;;  %v1350_v4 = vsel %vm1342_vm3, %v1329_v59, %v1332_v35  ;;  %v1354_v10 = vsel %vm1342_vm3, %v1332_v35, %v1335_v41 }
 0x1e6   :  { %v1348_v25 = vsel %vm1344_vm4, %v1332_v35, %v1347_v2  ;;  %v1351_v27 = vsel %vm1345_vm5, %v1338_v1, 920167782  ;;  %v1355_v44 = vsel %vm1345_vm5, %v1341_v31, 1326507024  ;;  %v1540_v34 = vor.u32 %v1539_v40, %v1538_v33 }
 0x1e7   :  { %v1349_v45 = vsel %vm1343_vm7, %v1346_v21, %v1348_v25  ;;  %v1352_v50 = vsel %vm1344_vm4, %v1335_v41, %v1351_v27  ;;  %v1356_v57 = vsel %vm1344_vm4, %v1338_v1, %v1355_v44  ;;  %v1542_v29 = vshrl.u32 %v3936_v46, %v1533_v16  ;;  %v3183_v25 = vld [vmem:[#allocation7 + $0x2] ss:$4 sm:$0xff] }
 0x1e8   :  { %v1353_v62 = vsel %vm1343_vm7, %v1350_v4, %v1352_v50  ;;  %v1357_v63 = vsel %vm1343_vm7, %v1354_v10, %v1356_v57  ;;  %v1534_v31 = vshrl.u32 %v3933_v18, %v1533_v16  ;;  %v1544_v9 = vshll.u32 %v3936_v46, %v4499_v6 }
 0x1e9   :  { %v4545_v38 = vmul.u32.u64.low %v4506_v11, %v1357_v63  ;;  %v4546_v59 = vmul.u32.u64.high %v4506_v11, %v1357_v63, %v4545_v38  ;;  %v4549_v42 = vmul.u32.u64.low %v4506_v11, %v1353_v62  ;;  %v4550_v35 = vmul.u32.u64.high %v4506_v11, %v1353_v62, %v4549_v42 }
 0x1ea   :  { %v1543_v41 = vor.u32 %v1542_v29, %v1541_v37  ;;  %v1545_v20 = vshrl.u32 %v3937_v51, %v1533_v16  ;;  %v1365_v33 = vmul.u32 %v4506_v11, %v1349_v45  ;;  %v1547_v1 = vshll.u32 %v3937_v51, %v4499_v6 }
 0x1eb   :  { %v1548_v5 = vshrl.u32 %v3938_v0, %v1533_v16  ;;  %vm1552_vm10 = vcmp.lt.s32.totalorder %v4512_v13, 3  ;;  %vm1553_vm11 = vcmp.lt.s32.totalorder %v4512_v13, 4  ;;  %vm1367_vm12 = vc.u32 %v4546_v59, %v4549_v42 }
 0x1ec   :  { %v1546_v40 = vor.u32 %v1545_v20, %v1544_v9  ;;  %v1368_v37 = vadd.s32 1, %v4550_v35  ;;  %v1558_v21 = vsel %vm1550_vm8, %v1537_v61, %v1540_v34  ;;  %v1554_v2 = vsel %vm1550_vm8, %v1534_v31, %v1537_v61 }
 0x1ed   :  { %v1549_v11 = vor.u32 %v1548_v5, %v1547_v1  ;;  %v1555_v6 = vsel %vm1553_vm11, %v1543_v41, 2102212464  ;;  %v1562_v16 = vsel %vm1550_vm8, %v1540_v34, %v1543_v41  ;;  %v1426_v45 = vsel %vm1425_vm6, %v4517_v24, 0 }
 0x1ee   :  { %v1559_v4 = vsel %vm1553_vm11, %v1546_v40, 920167782  ;;  %v1369_v10 = vsel %vm1367_vm12, %v1368_v37, %v4550_v35  ;;  %v1556_v57 = vsel %vm1552_vm10, %v1540_v34, %v1555_v6  ;;  %v1625_v24 = vand.u32 2139095040, %v4504_v8 }
 0x1ef   :  { %v1560_v27 = vsel %vm1552_vm10, %v1543_v41, %v1559_v4  ;;  %v1563_v44 = vsel %vm1553_vm11, %v1549_v11, 1326507024  ;;  %v1370_v50 = vadd.s32 %v1369_v10, %v1365_v33  ;;  %vm3186_vm13 = vcmp.gt.f32.partialorder %v3183_v25, 0.5 }
 0x1f0   :  { %v1561_v61 = vsel %vm1551_vm9, %v1558_v21, %v1560_v27  ;;  %v1564_v62 = vsel %vm1552_vm10, %v1546_v40, %v1563_v44  ;;  %v1557_v41 = vsel %vm1551_vm9, %v1554_v2, %v1556_v57  ;;  %v1422_v9 = vor.u32 8388608, %v4510_v12 }
 0x1f1   :  { %v1565_v63 = vsel %vm1551_vm9, %v1562_v16, %v1564_v62  ;;  %v4583_v29 = vmul.u32.u64.low %v4501_v7, %v1561_v61  ;;  %v4584_v38 = vmul.u32.u64.high %v4501_v7, %v1561_v61, %v4583_v29  ;;  %v1371_v35 = vadd.s32 536870912, %v1370_v50 }
 0x1f2   :  { %v4589_v34 = vmul.u32.u64.low %v4501_v7, %v1565_v63  ;;  %v4590_v31 = vmul.u32.u64.high %v4501_v7, %v1565_v63, %v4589_v34  ;;  %v1428_v20 = vand.u32 31, %v1426_v45  ;;  %v4596_v1 = vsel %vm3186_vm13, 1, %v6253_v39 }
 0x1f3   :  { %v1372_v33 = vshrl.u32 %v1371_v35, 30  ;;  %v1576_v5 = vadd.s32 1, %v4584_v38  ;;  %v1626_v37 = vshrl.u32 %v1625_v24, 23  ;;  %v1573_v6 = vmul.u32 %v4501_v7, %v1557_v41 }
 0x1f4   :  { %v1429_v40 = vsub.s32 32, %v1428_v20  ;;  %vm1575_vm14 = vc.u32 %v4590_v31, %v4583_v29  ;;  %v4606_v2 = vshll.u32 %v1422_v9, 8  ;;  %v1622_v4 = vand.u32 2147483647, %v4504_v8 }
 0x1f5   :  { %v1373_v11 = vshll.u32 %v1372_v33, 30  ;;  %v1577_v12 = vsel %vm1575_vm14, %v1576_v5, %v4584_v38  ;;  %v1431_v25 = vshll.u32 %v3933_v18, %v1428_v20  ;;  %v4614_v7 = vshrl.u32 %v1426_v45, 5 }
 0x1f6   :  { %v1432_v13 = vshrl.u32 %v3934_v32, %v1429_v40  ;;  %v1578_v10 = vadd.s32 %v1577_v12, %v1573_v6  ;;  %v1435_v27 = vshrl.u32 %v3935_v36, %v1429_v40  ;;  %v1434_v44 = vshll.u32 %v3934_v32, %v1428_v20 }
 0x1f7   :  { %v4609_v16 = vsub.s32 %v1370_v50, %v1373_v11  ;;  %v1438_v57 = vshrl.u32 %v3936_v46, %v1429_v40  ;;  %v3373_v61 = vadd.s32 4294967169, %v1626_v37  ;;  %v1437_v50 = vshll.u32 %v3935_v36, %v1428_v20 }
 0x1f8   :  { %v1579_v63 = vadd.s32 536870912, %v1578_v10  ;;  %v1433_v38 = vor.u32 %v1432_v13, %v1431_v25  ;;  %v1440_v24 = vshll.u32 %v3936_v46, %v1428_v20  ;;  %v1441_v35 = vshrl.u32 %v3937_v51, %v1429_v40 }
 0x1f9   :  { %v1376_v62 = vsub.s32 0, %v4609_v16  ;;  %v1443_v34 = vshll.u32 %v3937_v51, %v1428_v20  ;;  %v1444_v45 = vshrl.u32 %v3938_v0, %v1429_v40  ;;  %v1436_v5 = vor.u32 %v1435_v27, %v1434_v44 }
 0x1fa   :  { %v1580_v9 = vshrl.u32 %v1579_v63, 30  ;;  %v1439_v11 = vor.u32 %v1438_v57, %v1437_v50  ;;  %v1366_v37 = vadd.s32 %v4549_v42, %v4546_v59  ;;  %v1442_v6 = vor.u32 %v1441_v35, %v1440_v24 }
 0x1fb   :  { %v3362_v41 = vmin.u32 %v1376_v62, %v4609_v16  ;;  %v1445_v12 = vor.u32 %v1444_v45, %v1443_v34  ;;  %v1632_v13 = vadd.s32 1, %v3373_v61  ;;  %v1396_v21 = vsub.s32 4, %v1372_v33 }
 0x1fc   :  { %vm1446_vm1 = vcmp.lt.s32.totalorder %v4614_v7, 1  ;;  %vm1447_vm2 = vcmp.lt.s32.totalorder %v4614_v7, 2  ;;  %v1581_v27 = vshll.u32 %v1580_v9, 30  ;;  %v1430_v44 = vshrl.u32 %v3933_v18, %v1429_v40 }
 0x1fd   :  { %v1378_v20 = vclz %v3362_v41  ;;  %vm1448_vm3 = vcmp.lt.s32.totalorder %v4614_v7, 3  ;;  %vm1449_vm4 = vcmp.lt.s32.totalorder %v4614_v7, 4  ;;  %v1454_v60 = vsel %vm1446_vm1, %v1433_v38, %v1436_v5 }
 0x1fe   :  { %v1455_v59 = vsel %vm1449_vm4, %v1442_v6, 920167782  ;;  %v1458_v57 = vsel %vm1446_vm1, %v1436_v5, %v1439_v11  ;;  %vm1520_vm5 = vcmp.lt.s32.totalorder %v4462_v47, 0  ;;  %v4643_v61 = vsub.s32 %v1578_v10, %v1581_v27 }
 0x1ff   :  { %v3363_v42 = vadd.s32 4294967294, %v1378_v20  ;;  %v1451_v62 = vsel %vm1449_vm4, %v1439_v11, 2102212464  ;;  %v1456_v40 = vsel %vm1448_vm3, %v1439_v11, %v1455_v59  ;;  %v1459_v63 = vsel %vm1449_vm4, %v1445_v12, 1326507024 }
 0x200   :  { %v1397_v50 = vsel %vm1312_vm15, %v1396_v21, %v1372_v33  ;;  %v1450_v24 = vsel %vm1446_vm1, %v1430_v44, %v1433_v38  ;;  %v1460_v35 = vsel %vm1448_vm3, %v1442_v6, %v1459_v63  ;;  %v1584_v45 = vsub.s32 0, %v4643_v61 }
 0x201   :  { %vm3364_vm6 = vcmp.lt.s32.totalorder %v3363_v42, 0  ;;  %v1457_v10 = vsel %vm1447_vm2, %v1454_v60, %v1456_v40  ;;  %v1461_v41 = vsel %vm1447_vm2, %v1458_v57, %v1460_v35  ;;  %v1604_v20 = vsub.s32 4, %v1580_v9 }
 0x202   :  { %v1381_v34 = vsel %vm3364_vm6, 0, %v3363_v42  ;;  %v1452_v33 = vsel %vm1448_vm3, %v1436_v5, %v1451_v62  ;;  %v3370_v38 = vmin.u32 %v1584_v45, %v4643_v61  ;;  %v1399_v57 = vsel %vm4629_vm0, 0, %v1397_v50 }
 0x203   :  { %v1382_v11 = vsub.s32 32, %v1381_v34  ;;  %v1386_v12 = vsub.s32 4294967266, %v1381_v34  ;;  %v1383_v21 = vshll.u32 %v4609_v16, %v1381_v34  ;;  %vm4675_vm7 = vcmp.le.f32.partialorder %v1518_v55, 0.7853982 }
 0x204   :  { %v4663_v6 = vmul.u32.u64.low %v4606_v2, %v1461_v41  ;;  %v4664_v27 = vmul.u32.u64.high %v4606_v2, %v1461_v41, %v4663_v6  ;;  %v4667_v60 = vmul.u32.u64.low %v4606_v2, %v1457_v10  ;;  %v4668_v59 = vmul.u32.u64.high %v4606_v2, %v1457_v10, %v4667_v60 }
 0x205   :  { %v1384_v44 = vshrl.u32 %v1366_v37, %v1382_v11  ;;  %v1387_v42 = vadd.s32 127, %v1386_v12  ;;  %v1586_v5 = vclz %v3370_v38  ;;  %v4681_v62 = vand.u32 8388607, %v1622_v4 }
 0x206   :  { %v1453_v63 = vsel %vm1447_vm2, %v1450_v24, %v1452_v33  ;;  %vm1633_vm8 = vcmp.gt.s32.totalorder %v1632_v13, 0  ;;  %v1574_v50 = vadd.s32 %v4583_v29, %v4590_v31  ;;  %vm1471_vm9 = vc.u32 %v4664_v27, %v4667_v60 }
 0x207   :  { %v1385_v37 = vor.u32 %v1384_v44, %v1383_v21  ;;  %v1388_v40 = vshll.u32 %v1387_v42, 23  ;;  %v3371_v35 = vadd.s32 4294967294, %v1586_v5  ;;  %v1634_v55 = vsel %vm1633_vm8, %v1632_v13, 0  ;;  %v4703_v42 = vpop.f32.mrb[0].mxu0 }
 0x208   :  { %v1403_v45 = vadd.s32 3, %v1399_v57  ;;  %v1605_v10 = vsel %vm1520_vm5, %v1604_v20, %v1580_v9  ;;  %v1472_v41 = vadd.s32 1, %v4668_v59  ;;  %v1469_v7 = vmul.u32 %v4606_v2, %v1453_v63 }
 0x209   :  { %v1389_v34 = vor.u32 4788187, %v1388_v40  ;;  %vm3372_vm10 = vcmp.lt.s32.totalorder %v3371_v35, 0  ;;  %v1636_v24 = vand.u32 31, %v1634_v55  ;;  %v4695_v11 = vmul.f32 %v4464_v48, %v4446_v22  ;;  %v4705_v22 = vpop.f32.mrb[8].mxu1 }
 0x20a   :  { %v1392_v31 = vcvt.s32.f32 %v1385_v37  ;;  %v1589_v12 = vsel %vm3372_vm10, 0, %v3371_v35  ;;  %v1473_v13 = vsel %vm1471_vm9, %v1472_v41, %v4668_v59  ;;  %v1607_v9 = vsel %vm4675_vm7, 0, %v1605_v10 }
 0x20b   :  { %v1390_v29 = vand.u32 2147483647, %v1389_v34  ;;  %v1590_v33 = vsub.s32 32, %v1589_v12  ;;  %v1594_v21 = vsub.s32 4294967266, %v1589_v12  ;;  %v1474_v20 = vadd.s32 %v1473_v13, %v1469_v7 }
 0x20c   :  { %v4700_v6 = vand.u32 3, %v1403_v45  ;;  %v1630_v2 = vor.u32 8388608, %v4681_v62  ;;  %v1637_v44 = vsub.s32 32, %v1636_v24  ;;  %v1591_v48 = vshll.u32 %v4643_v61, %v1589_v12 }
 0x20d   :  { %v1393_v38 = vmul.f32 %v1392_v31, %v1390_v29  ;;  %v1592_v57 = vshrl.u32 %v1574_v50, %v1590_v33  ;;  %v1595_v59 = vadd.s32 127, %v1594_v21  ;;  %v1475_v5 = vadd.s32 536870912, %v1474_v20 }
 0x20e   :  { %v1611_v40 = vadd.s32 3, %v1607_v9  ;;  %v4708_v63 = vshrl.u32 %v1634_v55, 5  ;;  %v1639_v35 = vshll.u32 %v3933_v18, %v1636_v24  ;;  %v1646_v62 = vshrl.u32 %v3936_v46, %v1637_v44 }
 0x20f   :  { %v1394_v37 = vxor.u32 2147483648, %v1393_v38  ;;  %v1593_v34 = vor.u32 %v1592_v57, %v1591_v48  ;;  %v1596_v45 = vshll.u32 %v1595_v59, 23  ;;  %v4711_v10 = vshrl.u32 %v1475_v5, 30 }
 0x210   :  { %v1640_v61 = vshrl.u32 %v3934_v32, %v1637_v44  ;;  %v1642_v50 = vshll.u32 %v3934_v32, %v1636_v24  ;;  %v1643_v7 = vshrl.u32 %v3935_v36, %v1637_v44  ;;  %v1645_v12 = vshll.u32 %v3935_v36, %v1636_v24 }
 0x211   :  { %v1395_v41 = vsel %vm1312_vm15, %v1394_v37, %v1393_v38  ;;  %v1597_v29 = vor.u32 4788187, %v1596_v45  ;;  %v1477_v31 = vshll.u32 %v4711_v10, 30  ;;  %v1600_v13 = vcvt.s32.f32 %v1593_v34 }
 0x212   :  { %v1398_v55 = vsel %vm4629_vm0, %v4475_v54, %v1395_v41  ;;  %v1648_v33 = vshll.u32 %v3936_v46, %v1636_v24  ;;  %v1649_v21 = vshrl.u32 %v3937_v51, %v1637_v44  ;;  %v1647_v48 = vor.u32 %v1646_v62, %v1645_v12 }
 0x213   :  { %3755 = vcosq.f32 %v1398_v55  ;;  %v1598_v9 = vand.u32 2147483647, %v1597_v29  ;;  %v4726_v38 = vsub.s32 %v1474_v20, %v1477_v31  ;;  %v1641_v57 = vor.u32 %v1640_v61, %v1639_v35 }
 0x214   :  { %3757 = vsinq.f32 %v1398_v55  ;;  %v1644_v59 = vor.u32 %v1643_v7, %v1642_v50  ;;  %v1650_v25 = vor.u32 %v1649_v21, %v1648_v33  ;;  %v1652_v5 = vshrl.u32 %v3938_v0, %v1637_v44 }
 0x215   :  { %v1601_v37 = vmul.f32 %v1600_v13, %v1598_v9  ;;  %v3201_v45 = vrot.slane %v4596_v1, %v4436_v15  ;;  %v1480_v34 = vsub.s32 0, %v4726_v38  ;;  %v1651_v41 = vshll.u32 %v3937_v51, %v1636_v24 }
 0x216   :  { %vm1409_vm11 = vcmp.eq.s32.totalorder %v4700_v6, 2  ;;  %v4734_v55 = vand.u32 3, %v1611_v40  ;;  %vm1654_vm12 = vcmp.lt.s32.totalorder %v4708_v63, 1  ;;  %vm1657_vm13 = vcmp.lt.s32.totalorder %v4708_v63, 4 }
 0x217   :  { %v4738_v20 = vshll.u32 %v1630_v2, 8  ;;  %vm1406_vm14 = vcmp.eq.s32.totalorder %v4700_v6, 0  ;;  %v1602_v35 = vxor.u32 2147483648, %v1601_v37  ;;  %v3366_v62 = vmin.u32 %v1480_v34, %v4726_v38 }
 0x218   :  { %v1653_v15 = vor.u32 %v1652_v5, %v1651_v41  ;;  %v1659_v61 = vsel %vm1657_vm13, %v1647_v48, 2102212464  ;;  %vm1405_vm15 = vcmp.lt.s32.totalorder %v4700_v6, 2  ;;  %v6276_v24 = vrot.slane %v4596_v1, %v4439_v17 }
 0x219   :  { %v1638_v2 = vshrl.u32 %v3933_v18, %v1637_v44  ;;  %vm1656_vm1 = vcmp.lt.s32.totalorder %v4708_v63, 3  ;;  %v1662_v50 = vsel %vm1654_vm12, %v1641_v57, %v1644_v59  ;;  %v1663_v7 = vsel %vm1657_vm13, %v1650_v25, 920167782 }
 0x21a   :  { %vm4748_vm0 = vcmp.eq.s32.totalorder %v6276_v24, 1  ;;  %vm1402_vm2 = vweird.f32 %v4475_v54  ;;  %v1603_v29 = vsel %vm1520_vm5, %v1602_v35, %v1601_v37  ;;  %v1482_v31 = vclz %v3366_v62 }
 0x21b   :  { %vm1655_vm3 = vcmp.lt.s32.totalorder %v4708_v63, 2  ;;  %v1664_v12 = vsel %vm1656_vm1, %v1647_v48, %v1663_v7  ;;  %v1606_v44 = vsel %vm4675_vm7, %v4462_v47, %v1603_v29  ;;  %v1658_v13 = vsel %vm1654_vm12, %v1638_v2, %v1641_v57 }
 0x21c   :  { %v1660_v33 = vsel %vm1656_vm1, %v1644_v59, %v1659_v61  ;;  %v1666_v21 = vsel %vm1654_vm12, %v1644_v59, %v1647_v48  ;;  %3759 = vcosq.f32 %v1606_v44  ;;  %v3367_v9 = vadd.s32 4294967294, %v1482_v31 }
 0x21d   :  { %v1665_v5 = vsel %vm1655_vm3, %v1662_v50, %v1664_v12  ;;  %v1667_v37 = vsel %vm1657_vm13, %v1653_v15, 1326507024  ;;  %v3756_v34 = vpop.eup %3755  ;;  %3761 = vsinq.f32 %v1606_v44  ;;  %v1470_v59 = vadd.s32 %v4667_v60, %v4664_v27 }
 0x21e   :  { %v1668_v16 = vsel %vm1656_vm1, %v1650_v25, %v1667_v37  ;;  %v4780_v57 = vmul.u32.u64.low %v4738_v20, %v1665_v5  ;;  %v4781_v41 = vmul.u32.u64.high %v4738_v20, %v1665_v5, %v4780_v57  ;;  %v3758_v35 = vpop.eup %3757  ;;  %v1410_v48 = vxor.u32 2147483648, %v3756_v34 }
 0x21f   :  { %vm3368_vm4 = vcmp.lt.s32.totalorder %v3367_v9, 0  ;;  %v1669_v62 = vsel %vm1655_vm3, %v1666_v21, %v1668_v16  ;;  %v1407_v15 = vxor.u32 2147483648, %v3758_v35  ;;  %v1661_v29 = vsel %vm1655_vm3, %v1658_v13, %v1660_v33 }
 0x220   :  { %v1485_v61 = vsel %vm3368_vm4, 0, %v3367_v9  ;;  %v4789_v24 = vmul.u32.u64.low %v4738_v20, %v1669_v62  ;;  %v4790_v2 = vmul.u32.u64.high %v4738_v20, %v1669_v62, %v4789_v24  ;;  %v1411_v25 = vsel %vm1409_vm11, %v1410_v48, %v3758_v35 }
 0x221   :  { %v1486_v50 = vsub.s32 32, %v1485_v61  ;;  %v1490_v7 = vsub.s32 4294967266, %v1485_v61  ;;  %v1408_v27 = vsel %vm1406_vm14, %v3756_v34, %v1407_v15  ;;  %v1500_v60 = vsub.s32 4, %v4711_v10 }
 0x222   :  { %v1680_v31 = vadd.s32 1, %v4781_v41  ;;  %v4802_v12 = vadd.f32 %v4455_v30, %v4695_v11  ;;  %v1412_v44 = vsel %vm1405_vm15, %v1408_v27, %v1411_v25  ;;  %vm4806_vm5 = vcmp.eq.s32.totalorder %v3201_v45, 1 }
 0x223   :  { %v1487_v63 = vshll.u32 %v4726_v38, %v1485_v61  ;;  %v1488_v13 = vshrl.u32 %v1470_v59, %v1486_v50  ;;  %v1491_v33 = vadd.s32 127, %v1490_v7  ;;  %v1413_v9 = vsel %vm1402_vm2, nan, %v1412_v44  ;;  %v4845_v44 = vpop.f32.mrb[1].mxu0 }
 0x224   :  { %vm1610_vm6 = vweird.f32 %v4462_v47  ;;  %vm1416_vm7 = vcmp.lt.s32.totalorder %v4480_v58, 0  ;;  %v1677_v30 = vmul.u32 %v4738_v20, %v1661_v29  ;;  %vm1679_vm8 = vc.u32 %v4790_v2, %v4780_v57 }
 0x225   :  { %v3235_v11 = vsel %vm4748_vm0, %v4475_v54, %v1413_v9  ;;  %v1489_v6 = vor.u32 %v1488_v13, %v1487_v63  ;;  %v1492_v38 = vshll.u32 %v1491_v33, 23  ;;  %v1681_v45 = vsel %vm1679_vm8, %v1680_v31, %v4781_v41 }
 0x226   :  { %3253 = vst [vmem:[#allocation8] sm:$0xff] %v3235_v11  ;;  %vm1613_vm9 = vcmp.lt.s32.totalorder %v4734_v55, 2  ;;  %v6281_v5 = vand.u32 2147483647, %v4480_v58  ;;  %v1682_v20 = vadd.s32 %v1681_v45, %v1677_v30  ;;  %v2249_v34 = vand.u32 2139095040, %v4802_v12  ;;  %v3760_v16 = vpop.eup %3759 }
 0x227   :  { %v1493_v35 = vor.u32 4788187, %v1492_v38  ;;  %v1501_v54 = vsel %vm1416_vm7, %v1500_v60, %v4711_v10  ;;  %v2246_v41 = vand.u32 2147483647, %v4802_v12  ;;  %v4836_v48 = vadd.f32 %v4449_v23, %v4466_v49  ;;  %v3762_v59 = vpop.eup %3761 }
 0x228   :  { %vm4825_vm10 = vcmp.le.f32.partialorder %v6281_v5, 0.7853982  ;;  %vm1614_vm11 = vcmp.eq.s32.totalorder %v4734_v55, 0  ;;  %v1618_v62 = vxor.u32 2147483648, %v3760_v16  ;;  %v1683_v15 = vadd.s32 536870912, %v1682_v20 }
 0x229   :  { %v2250_v61 = vshrl.u32 %v2249_v34, 23  ;;  %v1615_v24 = vxor.u32 2147483648, %v3762_v59  ;;  %vm1617_vm12 = vcmp.eq.s32.totalorder %v4734_v55, 2  ;;  %v1494_v25 = vand.u32 2147483647, %v1493_v35 }
 0x22a   :  { %v1496_v50 = vcvt.s32.f32 %v1489_v6  ;;  %v1619_v7 = vsel %vm1617_vm12, %v1618_v62, %v3762_v59  ;;  %v1503_v10 = vsel %vm4825_vm10, 0, %v1501_v54  ;;  %v1684_v29 = vshrl.u32 %v1683_v15, 30 }
 0x22b   :  { %v3397_v27 = vadd.s32 4294967169, %v2250_v61  ;;  %v1616_v60 = vsel %vm1614_vm11, %v3760_v16, %v1615_v24  ;;  %v2253_v49 = vand.u32 8388607, %v2246_v41  ;;  %v2457_v31 = vand.u32 2139095040, %v4836_v48 }
 0x22c   :  { %v1497_v23 = vmul.f32 %v1496_v50, %v1494_v25  ;;  %v1620_v63 = vsel %vm1613_vm9, %v1616_v60, %v1619_v7  ;;  %v1685_v13 = vshll.u32 %v1684_v29, 30  ;;  %v1708_v33 = vsub.s32 4, %v1684_v29 }
 0x22d   :  { %v2256_v9 = vadd.s32 1, %v3397_v27  ;;  %v1621_v30 = vsel %vm1610_vm6, nan, %v1620_v63  ;;  %v1507_v6 = vadd.s32 3, %v1503_v10  ;;  %v2458_v38 = vshrl.u32 %v2457_v31, 23 }
 0x22e   :  { %v1498_v11 = vxor.u32 2147483648, %v1497_v23  ;;  %v3237_v45 = vsel %vm4806_vm5, %v4462_v47, %v1621_v30  ;;  %v3197_v5 = vrot.slane %v4596_v1, %v4442_v19  ;;  %v4856_v34 = vsub.s32 %v1682_v20, %v1685_v13 }
 0x22f   :  { %vm2257_vm13 = vcmp.gt.s32.totalorder %v2256_v9, 0  ;;  %3255 = vst [vmem:[#allocation8 + $0x10] sm:$0xff] %v3237_v45  ;;  %vm1624_vm14 = vcmp.lt.s32.totalorder %v4504_v8, 0  ;;  %v2254_v16 = vor.u32 8388608, %v2253_v49  ;;  %v3405_v20 = vadd.s32 4294967169, %v2458_v38 }
 0x230   :  { %v1499_v55 = vsel %vm1416_vm7, %v1498_v11, %v1497_v23  ;;  %v2258_v35 = vsel %vm2257_vm13, %v2256_v9, 0  ;;  %v1688_v47 = vsub.s32 0, %v4856_v34  ;;  %v4867_v19 = vsel %vm1624_vm14, %v1708_v33, %v1684_v29 }
 0x231   :  { %v1502_v54 = vsel %vm4825_vm10, %v4480_v58, %v1499_v55  ;;  %v4869_v59 = vand.u32 3, %v1507_v6  ;;  %vm4873_vm15 = vcmp.le.f32.partialorder %v1622_v4, 0.7853982  ;;  %v2260_v15 = vand.u32 31, %v2258_v35 }
 0x232   :  { %3763 = vcosq.f32 %v1502_v54  ;;  %v1678_v37 = vadd.s32 %v4780_v57, %v4790_v2  ;;  %v3374_v61 = vmin.u32 %v1688_v47, %v4856_v34  ;;  %v2454_v24 = vand.u32 2147483647, %v4836_v48 }
 0x233   :  { %3765 = vsinq.f32 %v1502_v54  ;;  %v1711_v25 = vsel %vm4873_vm15, 0, %v4867_v19  ;;  %v4884_v50 = vshrl.u32 %v2258_v35, 5  ;;  %v2261_v7 = vsub.s32 32, %v2260_v15 }
 0x234   :  { %v4886_v4 = vshll.u32 %v2254_v16, 8  ;;  %v1690_v10 = vclz %v3374_v61  ;;  %v2263_v29 = vshll.u32 %v3933_v18, %v2260_v15  ;;  %v2266_v27 = vshll.u32 %v3934_v32, %v2260_v15 }
 0x235   :  { %v4890_v60 = vadd.s32 1, %v3405_v20  ;;  %vm1513_vm1 = vcmp.eq.s32.totalorder %v4869_v59, 2  ;;  %v2264_v57 = vshrl.u32 %v3934_v32, %v2261_v7  ;;  %v2267_v2 = vshrl.u32 %v3935_v36, %v2261_v7 }
 0x236   :  { %v2269_v23 = vshll.u32 %v3935_v36, %v2260_v15  ;;  %v2270_v49 = vshrl.u32 %v3936_v46, %v2261_v7  ;;  %vm1510_vm2 = vcmp.eq.s32.totalorder %v4869_v59, 0  ;;  %v3375_v31 = vadd.s32 4294967294, %v1690_v10 }
 0x237   :  { %v2272_v63 = vshll.u32 %v3936_v46, %v2260_v15  ;;  %v2273_v13 = vshrl.u32 %v3937_v51, %v2261_v7  ;;  %v2275_v33 = vshll.u32 %v3937_v51, %v2260_v15  ;;  %vm1509_vm3 = vcmp.lt.s32.totalorder %v4869_v59, 2 }
 0x238   :  { %vm4902_vm4 = vcmp.eq.s32.totalorder %v3197_v5, 1  ;;  %v2265_v30 = vor.u32 %v2264_v57, %v2263_v29  ;;  %v2268_v11 = vor.u32 %v2267_v2, %v2266_v27  ;;  %v2271_v6 = vor.u32 %v2270_v49, %v2269_v23 }
 0x239   :  { %v2276_v38 = vshrl.u32 %v3938_v0, %v2261_v7  ;;  %vm1506_vm6 = vweird.f32 %v4480_v58  ;;  %vm3376_vm7 = vcmp.lt.s32.totalorder %v3375_v31, 0  ;;  %v2262_v45 = vshrl.u32 %v3933_v18, %v2261_v7 }
 0x23a   :  { %v2274_v55 = vor.u32 %v2273_v13, %v2272_v63  ;;  %vm2278_vm8 = vcmp.lt.s32.totalorder %v4884_v50, 1  ;;  %v1693_v16 = vsel %vm3376_vm7, 0, %v3375_v31  ;;  %vm2279_vm9 = vcmp.lt.s32.totalorder %v4884_v50, 2  ;;  %v4930_v13 = vpop.f32.mrb[9].mxu1 }
 0x23b   :  { %v2277_v35 = vor.u32 %v2276_v38, %v2275_v33  ;;  %vm2281_vm10 = vcmp.lt.s32.totalorder %v4884_v50, 4  ;;  %v1694_v5 = vsub.s32 32, %v1693_v16  ;;  %v1698_v54 = vsub.s32 4294967266, %v1693_v16 }
 0x23c   :  { %vm2280_vm11 = vcmp.lt.s32.totalorder %v4884_v50, 3  ;;  %v2283_v47 = vsel %vm2281_vm10, %v2271_v6, 2102212464  ;;  %v3764_v20 = vpop.eup %3763  ;;  %v1695_v15 = vshll.u32 %v4856_v34, %v1693_v16  ;;  %v2282_v61 = vsel %vm2278_vm8, %v2262_v45, %v2265_v30 }
 0x23d   :  { %v2286_v7 = vsel %vm2278_vm8, %v2265_v30, %v2268_v11  ;;  %v2287_v10 = vsel %vm2281_vm10, %v2274_v55, 920167782  ;;  %v3766_v29 = vpop.eup %3765  ;;  %v1514_v27 = vxor.u32 2147483648, %v3764_v20  ;;  %v1696_v57 = vshrl.u32 %v1678_v37, %v1694_v5 }
 0x23e   :  { %v1699_v2 = vadd.s32 127, %v1698_v54  ;;  %v2284_v23 = vsel %vm2280_vm11, %v2268_v11, %v2283_v47  ;;  %v1511_v49 = vxor.u32 2147483648, %v3766_v29  ;;  %v2288_v34 = vsel %vm2280_vm11, %v2271_v6, %v2287_v10 }
 0x23f   :  { %v2290_v31 = vsel %vm2278_vm8, %v2268_v11, %v2271_v6  ;;  %v2291_v63 = vsel %vm2281_vm10, %v2277_v35, 1326507024  ;;  %v1515_v33 = vsel %vm1513_vm1, %v1514_v27, %v3766_v29  ;;  %v1697_v37 = vor.u32 %v1696_v57, %v1695_v15 }
 0x240   :  { %v1700_v30 = vshll.u32 %v1699_v2, 23  ;;  %v2289_v38 = vsel %vm2279_vm9, %v2286_v7, %v2288_v34  ;;  %v1512_v45 = vsel %vm1510_vm2, %v3764_v20, %v1511_v49  ;;  %v2292_v16 = vsel %vm2280_vm11, %v2274_v55, %v2291_v63 }
 0x241   :  { %v4941_v11 = vmul.u32.u64.low %v4886_v4, %v2289_v38  ;;  %v4942_v6 = vmul.u32.u64.high %v4886_v4, %v2289_v38, %v4941_v11  ;;  %v1516_v35 = vsel %vm1509_vm3, %v1512_v45, %v1515_v33  ;;  %v2285_v54 = vsel %vm2279_vm9, %v2282_v61, %v2284_v23 }
 0x242   :  { %v1701_v5 = vor.u32 4788187, %v1700_v30  ;;  %v2293_v47 = vsel %vm2279_vm9, %v2290_v31, %v2292_v16  ;;  %v1517_v20 = vsel %vm1506_vm6, nan, %v1516_v35  ;;  %vm2465_vm12 = vcmp.gt.s32.totalorder %v4890_v60, 0 }
 0x243   :  { %v4954_v55 = vmul.u32.u64.low %v4886_v4, %v2293_v47  ;;  %v4955_v15 = vmul.u32.u64.high %v4886_v4, %v2293_v47, %v4954_v55  ;;  %v3236_v59 = vsel %vm4902_vm4, %v4480_v58, %v1517_v20  ;;  %v1704_v10 = vcvt.s32.f32 %v1697_v37 }
 0x244   :  { %v1702_v7 = vand.u32 2147483647, %v1701_v5  ;;  %v2466_v61 = vsel %vm2465_vm12, %v4890_v60, 0  ;;  %3254 = vst [vmem:[#allocation8 + $0x8] sm:$0xff] %v3236_v59  ;;  %v2304_v50 = vadd.s32 1, %v4942_v6  ;;  %v1715_v57 = vadd.s32 3, %v1711_v25 }
 0x245   :  { %v2468_v29 = vand.u32 31, %v2466_v61  ;;  %v3205_v2 = vrot.slane %v4596_v1, %v4470_v52  ;;  %v2461_v58 = vand.u32 8388607, %v2454_v24  ;;  %v2301_v23 = vmul.u32 %v4886_v4, %v2285_v54 }
 0x246   :  { %v1705_v27 = vmul.f32 %v1704_v10, %v1702_v7  ;;  %vm2303_vm13 = vc.u32 %v4955_v15, %v4941_v11  ;;  %v4974_v60 = vshrl.u32 %v2466_v61, 5  ;;  %v1237_v5 = vmul.f32 %v4472_v53, %v4452_v26 }
 0x247   :  { %v2469_v49 = vsub.s32 32, %v2468_v29  ;;  %v2305_v31 = vsel %vm2303_vm13, %v2304_v50, %v4942_v6  ;;  %v2471_v19 = vshll.u32 %v3933_v18, %v2468_v29  ;;  %v2474_v25 = vshll.u32 %v3934_v32, %v2468_v29 }
 0x248   :  { %v1706_v34 = vxor.u32 2147483648, %v1705_v27  ;;  %v2306_v63 = vadd.s32 %v2305_v31, %v2301_v23  ;;  %v2477_v4 = vshll.u32 %v3935_v36, %v2468_v29  ;;  %v2480_v38 = vshll.u32 %v3936_v46, %v2468_v29 }
 0x249   :  { %v2472_v52 = vshrl.u32 %v3934_v32, %v2469_v49  ;;  %v2475_v33 = vshrl.u32 %v3935_v36, %v2469_v49  ;;  %v2478_v30 = vshrl.u32 %v3936_v46, %v2469_v49  ;;  %v2481_v45 = vshrl.u32 %v3937_v51, %v2469_v49 }
 0x24a   :  { %v1707_v37 = vsel %vm1624_vm14, %v1706_v34, %v1705_v27  ;;  %v2307_v6 = vadd.s32 536870912, %v2306_v63  ;;  %vm2248_vm1 = vcmp.lt.s32.totalorder %v4802_v12, 0  ;;  %v2483_v59 = vshll.u32 %v3937_v51, %v2468_v29 }
 0x24b   :  { %v1710_v16 = vsel %vm4873_vm15, %v4504_v8, %v1707_v37  ;;  %v2473_v35 = vor.u32 %v2472_v52, %v2471_v19  ;;  %v2476_v54 = vor.u32 %v2475_v33, %v2474_v25  ;;  %v2479_v47 = vor.u32 %v2478_v30, %v2477_v4 }
 0x24c   :  { %3767 = vcosq.f32 %v1710_v16  ;;  %v2482_v20 = vor.u32 %v2481_v45, %v2480_v38  ;;  %v2308_v55 = vshrl.u32 %v2307_v6, 30  ;;  %v2484_v7 = vshrl.u32 %v3938_v0, %v2469_v49 }
 0x24d   :  { %3769 = vsinq.f32 %v1710_v16  ;;  %v1716_v10 = vand.u32 3, %v1715_v57  ;;  %v2462_v62 = vor.u32 8388608, %v2461_v58  ;;  %v2470_v61 = vshrl.u32 %v3933_v18, %v2469_v49 }
 0x24e   :  { %vm2486_vm14 = vcmp.lt.s32.totalorder %v4974_v60, 1  ;;  %vm4999_vm15 = vcmp.le.f32.partialorder %v2246_v41, 0.7853982  ;;  %v2309_v53 = vshll.u32 %v2308_v55, 30  ;;  %v2485_v50 = vor.u32 %v2484_v7, %v2483_v59 }
 0x24f   :  { %vm2487_vm2 = vcmp.lt.s32.totalorder %v4974_v60, 2  ;;  %vm2489_vm3 = vcmp.lt.s32.totalorder %v4974_v60, 4  ;;  %vm2488_vm6 = vcmp.lt.s32.totalorder %v4974_v60, 3  ;;  %v2494_v27 = vsel %vm2486_vm14, %v2473_v35, %v2476_v54 }
 0x250   :  { %v2491_v29 = vsel %vm2489_vm3, %v2479_v47, 2102212464  ;;  %v2495_v57 = vsel %vm2489_vm3, %v2482_v20, 920167782  ;;  %v5008_v58 = vsub.s32 %v2306_v63, %v2309_v53  ;;  %v2332_v23 = vsub.s32 4, %v2308_v55 }
 0x251   :  { %v2496_v41 = vsel %vm2488_vm6, %v2479_v47, %v2495_v57  ;;  %v2498_v49 = vsel %vm2486_vm14, %v2476_v54, %v2479_v47  ;;  %vm5014_vm7 = vcmp.eq.s32.totalorder %v3205_v2, 1  ;;  %v2499_v19 = vsel %vm2489_vm3, %v2485_v50, 1326507024 }
 0x252   :  { %v2497_v31 = vsel %vm2487_vm2, %v2494_v27, %v2496_v41  ;;  %v2502_v25 = vshll.u32 %v2462_v62, 8  ;;  %v5021_v52 = vadd.f32 %v4458_v43, %v1237_v5  ;;  %v2312_v63 = vsub.s32 0, %v5008_v58 }
 0x253   :  { %v2490_v33 = vsel %vm2486_vm14, %v2470_v61, %v2473_v35  ;;  %v2492_v4 = vsel %vm2488_vm6, %v2476_v54, %v2491_v29  ;;  %v2500_v2 = vsel %vm2488_vm6, %v2482_v20, %v2499_v19  ;;  %vm1717_vm8 = vcmp.lt.s32.totalorder %v1716_v10, 2 }
 0x254   :  { %v2501_v37 = vsel %vm2487_vm2, %v2498_v49, %v2500_v2  ;;  %v5032_v30 = vmul.u32.u64.low %v2502_v25, %v2497_v31  ;;  %v5033_v38 = vmul.u32.u64.high %v2502_v25, %v2497_v31, %v5032_v30  ;;  %v3398_v43 = vmin.u32 %v2312_v63, %v5008_v58 }
 0x255   :  { %v2333_v45 = vsel %vm2248_vm1, %v2332_v23, %v2308_v55  ;;  %v5038_v16 = vmul.u32.u64.low %v2502_v25, %v2501_v37  ;;  %v5039_v6 = vmul.u32.u64.high %v2502_v25, %v2501_v37, %v5038_v16  ;;  %vm1718_vm9 = vcmp.eq.s32.totalorder %v1716_v10, 0 }
 0x256   :  { %v3768_v35 = vpop.eup %3767  ;;  %v2493_v5 = vsel %vm2487_vm2, %v2490_v33, %v2492_v4  ;;  %v2350_v54 = vand.u32 2147483647, %v5021_v52  ;;  %v2353_v47 = vand.u32 2139095040, %v5021_v52  ;;  %vm1721_vm10 = vcmp.eq.s32.totalorder %v1716_v10, 2 }
 0x257   :  { %v3770_v20 = vpop.eup %3769  ;;  %v1722_v59 = vxor.u32 2147483648, %v3768_v35  ;;  %v2314_v7 = vclz %v3398_v43  ;;  %v1239_v62 = vmul.f32 %v4487_v28, %v4492_v56  ;;  %v2335_v61 = vsel %vm4999_vm15, 0, %v2333_v45 }
 0x258   :  { %v1719_v55 = vxor.u32 2147483648, %v3770_v20  ;;  %v2512_v53 = vadd.s32 1, %v5033_v38  ;;  %v2354_v50 = vshrl.u32 %v2353_v47, 23  ;;  %v2509_v27 = vmul.u32 %v2502_v25, %v2493_v5 }
 0x259   :  { %v1723_v60 = vsel %vm1721_vm10, %v1722_v59, %v3770_v20  ;;  %v3399_v29 = vadd.s32 4294967294, %v2314_v7  ;;  %vm2511_vm11 = vc.u32 %v5039_v6, %v5032_v30  ;;  %v2357_v28 = vand.u32 8388607, %v2350_v54 }
 0x25a   :  { %v1720_v57 = vsel %vm1718_vm9, %v3768_v35, %v1719_v55  ;;  %v2513_v23 = vsel %vm2511_vm11, %v2512_v53, %v5033_v38  ;;  %v3401_v41 = vadd.s32 4294967169, %v2354_v50  ;;  %vm1714_vm12 = vweird.f32 %v4504_v8  ;;  %v5066_v35 = vpop.f32.mrb[2].mxu0 }
 0x25b   :  { %v1724_v56 = vsel %vm1717_vm8, %v1720_v57, %v1723_v60  ;;  %vm3400_vm13 = vcmp.lt.s32.totalorder %v3399_v29, 0  ;;  %v2514_v49 = vadd.s32 %v2513_v23, %v2509_v27  ;;  %v2302_v19 = vadd.s32 %v4941_v11, %v4955_v15 }
 0x25c   :  { %v1725_v31 = vsel %vm1714_vm12, nan, %v1724_v56  ;;  %v2317_v25 = vsel %vm3400_vm13, 0, %v3399_v29  ;;  %v2360_v63 = vadd.s32 1, %v3401_v41  ;;  %v2339_v37 = vadd.s32 3, %v2335_v61 }
 0x25d   :  { %v3238_v33 = vsel %vm5014_vm7, %v4504_v8, %v1725_v31  ;;  %v2318_v4 = vsub.s32 32, %v2317_v25  ;;  %v2322_v2 = vsub.s32 4294967266, %v2317_v25  ;;  %v2515_v38 = vadd.s32 536870912, %v2514_v49 }
 0x25e   :  { %3256 = vst [vmem:[#allocation8 + $0x18] sm:$0xff] %v3238_v33  ;;  %v2358_v43 = vor.u32 8388608, %v2357_v28  ;;  %vm2361_vm14 = vcmp.gt.s32.totalorder %v2360_v63, 0  ;;  %v5063_v10 = vadd.f32 %v4496_v3, %v1239_v62  ;;  %v2319_v45 = vshll.u32 %v5008_v58, %v2317_v25 }
 0x25f   :  { %v2320_v16 = vshrl.u32 %v2302_v19, %v2318_v4  ;;  %v2323_v11 = vadd.s32 127, %v2322_v2  ;;  %v2362_v15 = vsel %vm2361_vm14, %v2360_v63, 0  ;;  %v2516_v5 = vshrl.u32 %v2515_v38, 30 }
 0x260   :  { %v2364_v47 = vand.u32 31, %v2362_v15  ;;  %v5068_v59 = vand.u32 3, %v2339_v37  ;;  %vm2456_vm2 = vcmp.lt.s32.totalorder %v4836_v48, 0  ;;  %v2510_v3 = vadd.s32 %v5032_v30, %v5039_v6 }
 0x261   :  { %v2321_v8 = vor.u32 %v2320_v16, %v2319_v45  ;;  %v2324_v20 = vshll.u32 %v2323_v11, 23  ;;  %v2517_v7 = vshll.u32 %v2516_v5, 30  ;;  %v5072_v62 = vshll.u32 %v2358_v43, 8 }
 0x262   :  { %v2365_v55 = vsub.s32 32, %v2364_v47  ;;  %v2558_v58 = vand.u32 2147483647, %v5063_v10  ;;  %v2363_v50 = vshrl.u32 %v2362_v15, 5  ;;  %v2561_v29 = vand.u32 2139095040, %v5063_v10 }
 0x263   :  { %v2325_v61 = vor.u32 4788187, %v2324_v20  ;;  %v5075_v53 = vsub.s32 %v2514_v49, %v2517_v7  ;;  %v2328_v57 = vcvt.s32.f32 %v2321_v8  ;;  %v2540_v30 = vsub.s32 4, %v2516_v5 }
 0x264   :  { %v2368_v60 = vshrl.u32 %v3934_v32, %v2365_v55  ;;  %v2371_v23 = vshrl.u32 %v3935_v36, %v2365_v55  ;;  %v2374_v41 = vshrl.u32 %v3936_v46, %v2365_v55  ;;  %v2367_v6 = vshll.u32 %v3933_v18, %v2364_v47 }
 0x265   :  { %v2326_v27 = vand.u32 2147483647, %v2325_v61  ;;  %v2520_v28 = vsub.s32 0, %v5075_v53  ;;  %v2370_v56 = vshll.u32 %v3934_v32, %v2364_v47  ;;  %v2373_v31 = vshll.u32 %v3935_v36, %v2364_v47 }
 0x266   :  { %v2376_v19 = vshll.u32 %v3936_v46, %v2364_v47  ;;  %v2377_v25 = vshrl.u32 %v3937_v51, %v2365_v55  ;;  %v2369_v33 = vor.u32 %v2368_v60, %v2367_v6  ;;  %v2380_v2 = vshrl.u32 %v3938_v0, %v2365_v55 }
 0x267   :  { %v2329_v49 = vmul.f32 %v2328_v57, %v2326_v27  ;;  %v3406_v63 = vmin.u32 %v2520_v28, %v5075_v53  ;;  %v2372_v4 = vor.u32 %v2371_v23, %v2370_v56  ;;  %v2375_v38 = vor.u32 %v2374_v41, %v2373_v31 }
 0x268   :  { %v2378_v43 = vor.u32 %v2377_v25, %v2376_v19  ;;  %v2379_v45 = vshll.u32 %v3937_v51, %v2364_v47  ;;  %vm5092_vm3 = vcmp.le.f32.partialorder %v2454_v24, 0.7853982  ;;  %v2541_v15 = vsel %vm2456_vm2, %v2540_v30, %v2516_v5 }
 0x269   :  { %v2330_v37 = vxor.u32 2147483648, %v2329_v49  ;;  %v2522_v11 = vclz %v3406_v63  ;;  %v2366_v8 = vshrl.u32 %v3933_v18, %v2365_v55  ;;  %v2562_v20 = vshrl.u32 %v2561_v29, 23 }
 0x26a   :  { %v2381_v61 = vor.u32 %v2380_v2, %v2379_v45  ;;  %vm2382_vm6 = vcmp.lt.s32.totalorder %v2363_v50, 1  ;;  %vm2383_vm8 = vcmp.lt.s32.totalorder %v2363_v50, 2  ;;  %vm2384_vm9 = vcmp.lt.s32.totalorder %v2363_v50, 3 }
 0x26b   :  { %v2331_v7 = vsel %vm2248_vm1, %v2330_v37, %v2329_v49  ;;  %v3407_v47 = vadd.s32 4294967294, %v2522_v11  ;;  %vm2385_vm10 = vcmp.lt.s32.totalorder %v2363_v50, 4  ;;  %v2390_v5 = vsel %vm2382_vm6, %v2369_v33, %v2372_v4 }
 0x26c   :  { %v2334_v24 = vsel %vm4999_vm15, %v4802_v12, %v2331_v7  ;;  %v2387_v60 = vsel %vm2385_vm10, %v2375_v38, 2102212464  ;;  %v2391_v27 = vsel %vm2385_vm10, %v2378_v43, 920167782  ;;  %v2386_v55 = vsel %vm2382_vm6, %v2366_v8, %v2369_v33 }
 0x26d   :  { %3771 = vcosq.f32 %v2334_v24  ;;  %vm3408_vm11 = vcmp.lt.s32.totalorder %v3407_v47, 0  ;;  %v2392_v29 = vsel %vm2384_vm9, %v2375_v38, %v2391_v27  ;;  %v2394_v26 = vsel %vm2382_vm6, %v2372_v4, %v2375_v38 }
 0x26e   :  { %3773 = vsinq.f32 %v2334_v24  ;;  %v2525_v57 = vsel %vm3408_vm11, 0, %v3407_v47  ;;  %v2393_v23 = vsel %vm2383_vm8, %v2390_v5, %v2392_v29  ;;  %v2395_v41 = vsel %vm2385_vm10, %v2381_v61, 1326507024  ;;  %v5138_v61 = vpop.f32.mrb[10].mxu1  ;;  %v5141_v5 = vld [vmem:[#allocation7] ss:$4 sm:$0xff] }
 0x26f   :  { %v2526_v28 = vsub.s32 32, %v2525_v57  ;;  %v2530_v30 = vsub.s32 4294967266, %v2525_v57  ;;  %v2388_v6 = vsel %vm2384_vm9, %v2372_v4, %v2387_v60  ;;  %v2396_v56 = vsel %vm2384_vm9, %v2378_v43, %v2395_v41 }
 0x270   :  { %v2527_v49 = vshll.u32 %v5075_v53, %v2525_v57  ;;  %v2397_v31 = vsel %vm2383_vm8, %v2394_v26, %v2396_v56  ;;  %v5114_v19 = vmul.u32.u64.low %v5072_v62, %v2393_v23  ;;  %v5115_v25 = vmul.u32.u64.high %v5072_v62, %v2393_v23, %v5114_v19 }
 0x271   :  { %v2528_v63 = vshrl.u32 %v2510_v3, %v2526_v28  ;;  %v2531_v33 = vadd.s32 127, %v2530_v30  ;;  %v5119_v2 = vmul.u32.u64.low %v5072_v62, %v2397_v31  ;;  %v5120_v37 = vmul.u32.u64.high %v5072_v62, %v2397_v31, %v5119_v2 }
 0x272   :  { %v2543_v4 = vsel %vm5092_vm3, 0, %v2541_v15  ;;  %v2389_v38 = vsel %vm2383_vm8, %v2386_v55, %v2388_v6  ;;  %v3409_v43 = vadd.s32 4294967169, %v2562_v20  ;;  %v5126_v53 = vsub.s32 4, %v4433_v14 }
 0x273   :  { %vm2338_vm1 = vweird.f32 %v4802_v12  ;;  %v2529_v45 = vor.u32 %v2528_v63, %v2527_v49  ;;  %v2532_v11 = vshll.u32 %v2531_v33, 23  ;;  %vm2341_vm15 = vcmp.lt.s32.totalorder %v5068_v59, 2  ;;  %v5152_v63 = vld [vmem:[#allocation7 + $0x1] ss:$4 sm:$0xff] }
 0x274   :  { %v2408_v3 = vadd.s32 1, %v5115_v25  ;;  %v5133_v8 = vand.u32 8388607, %v2558_v58  ;;  %v2568_v7 = vadd.s32 1, %v3409_v43  ;;  %v2547_v50 = vadd.s32 3, %v2543_v4 }
 0x275   :  { %v2533_v15 = vor.u32 4788187, %v2532_v11  ;;  %v2405_v20 = vmul.u32 %v5072_v62, %v2389_v38  ;;  %vm2407_vm12 = vc.u32 %v5120_v37, %v5114_v19  ;;  %v2536_v47 = vcvt.s32.f32 %v2529_v45 }
 0x276   :  { %v2409_v60 = vsel %vm2407_vm12, %v2408_v3, %v5115_v25  ;;  %vm2569_vm13 = vcmp.gt.s32.totalorder %v2568_v7, 0  ;;  %v5145_v27 = vrot.slane %v5141_v5, %v5126_v53  ;;  %vm2342_vm14 = vcmp.eq.s32.totalorder %v5068_v59, 0 }
 0x277   :  { %v3772_v24 = vpop.eup %3771  ;;  %v2534_v57 = vand.u32 2147483647, %v2533_v15  ;;  %v2410_v62 = vadd.s32 %v2409_v60, %v2405_v20  ;;  %v2570_v23 = vsel %vm2569_vm13, %v2568_v7, 0  ;;  %vm2345_vm6 = vcmp.eq.s32.totalorder %v5068_v59, 2 }
 0x278   :  { %v3774_v55 = vpop.eup %3773  ;;  %v2346_v29 = vxor.u32 2147483648, %v3772_v24  ;;  %v2572_v41 = vand.u32 31, %v2570_v23  ;;  %v5149_v6 = vand.u32 3, %v2547_v50  ;;  %v2566_v31 = vor.u32 8388608, %v5133_v8 }
 0x279   :  { %v2343_v26 = vxor.u32 2147483648, %v3774_v55  ;;  %v2537_v30 = vmul.f32 %v2536_v47, %v2534_v57  ;;  %v2411_v56 = vadd.s32 536870912, %v2410_v62  ;;  %v5156_v33 = vrot.slane %v5152_v63, %v5126_v53 }
 0x27a   :  { %v2347_v28 = vsel %vm2345_vm6, %v2346_v29, %v3774_v55  ;;  %v2573_v25 = vsub.s32 32, %v2572_v41  ;;  %v1231_v43 = vmul.f32 %v5145_v27, %v4703_v42  ;;  %v2575_v11 = vshll.u32 %v3933_v18, %v2572_v41 }
 0x27b   :  { %v2344_v49 = vsel %vm2342_vm14, %v3772_v24, %v2343_v26  ;;  %v2538_v4 = vxor.u32 2147483648, %v2537_v30  ;;  %v2412_v38 = vshrl.u32 %v2411_v56, 30  ;;  %v2578_v50 = vshll.u32 %v3934_v32, %v2572_v41 }
 0x27c   :  { %v2348_v2 = vsel %vm2341_vm15, %v2344_v49, %v2347_v28  ;;  %v2576_v3 = vshrl.u32 %v3934_v32, %v2573_v25  ;;  %v2579_v8 = vshrl.u32 %v3935_v36, %v2573_v25  ;;  %v2571_v20 = vshrl.u32 %v2570_v23, 5 }
 0x27d   :  { %v2349_v45 = vsel %vm2338_vm1, nan, %v2348_v2  ;;  %v2539_v59 = vsel %vm2456_vm2, %v2538_v4, %v2537_v30  ;;  %v2413_v15 = vshll.u32 %v2412_v38, 30  ;;  %v2581_v24 = vshll.u32 %v3935_v36, %v2572_v41 }
 0x27e   :  { %v3244_v7 = vsel %vm4748_vm0, %v4802_v12, %v2349_v45  ;;  %v2542_v42 = vsel %vm5092_vm3, %v4836_v48, %v2539_v59  ;;  %v2582_v47 = vshrl.u32 %v3936_v46, %v2573_v25  ;;  %v2577_v40 = vor.u32 %v2576_v3, %v2575_v11 }
 0x27f   :  { %3262 = vst [vmem:[#allocation8 + $0x48] sm:$0x3] %v3244_v7  ;;  %3775 = vcosq.f32 %v2542_v42  ;;  %v5178_v60 = vsub.s32 %v2410_v62, %v2413_v15  ;;  %v2580_v12 = vor.u32 %v2579_v8, %v2578_v50  ;;  %v2584_v29 = vshll.u32 %v3936_v46, %v2572_v41 }
 0x280   :  { %3777 = vsinq.f32 %v2542_v42  ;;  %v2583_v55 = vor.u32 %v2582_v47, %v2581_v24  ;;  %v2585_v57 = vshrl.u32 %v3937_v51, %v2573_v25  ;;  %vm2352_vm0 = vcmp.lt.s32.totalorder %v5021_v52, 0 }
 0x281   :  { %v2416_v16 = vsub.s32 0, %v5178_v60  ;;  %v2587_v23 = vshll.u32 %v3937_v51, %v2572_v41  ;;  %v2588_v26 = vshrl.u32 %v3938_v0, %v2573_v25  ;;  %vm5188_vm2 = vcmp.le.f32.partialorder %v2350_v54, 0.7853982 }
 0x282   :  { %v2574_v28 = vshrl.u32 %v3933_v18, %v2573_v25  ;;  %v2586_v30 = vor.u32 %v2585_v57, %v2584_v29  ;;  %v2606_v56 = vshll.u32 %v2566_v31, 8  ;;  %v5194_v49 = vadd.f32 %v5156_v33, %v1231_v43 }
 0x283   :  { %vm2553_vm3 = vcmp.eq.s32.totalorder %v5149_v6, 2  ;;  %v3402_v2 = vmin.u32 %v2416_v16, %v5178_v60  ;;  %v2589_v41 = vor.u32 %v2588_v26, %v2587_v23  ;;  %vm2590_vm8 = vcmp.lt.s32.totalorder %v2571_v20, 1 }
 0x284   :  { %vm2593_vm9 = vcmp.lt.s32.totalorder %v2571_v20, 4  ;;  %vm2550_vm10 = vcmp.eq.s32.totalorder %v5149_v6, 0  ;;  %v2436_v54 = vsub.s32 4, %v2412_v38  ;;  %v2598_v45 = vsel %vm2590_vm8, %v2577_v40, %v2580_v12 }
 0x285   :  { %v2595_v4 = vsel %vm2593_vm9, %v2583_v55, 2102212464  ;;  %v2599_v11 = vsel %vm2593_vm9, %v2586_v30, 920167782  ;;  %vm2549_vm11 = vcmp.lt.s32.totalorder %v5149_v6, 2  ;;  %v2418_v25 = vclz %v3402_v2 }
 0x286   :  { %vm2591_vm1 = vcmp.lt.s32.totalorder %v2571_v20, 2  ;;  %vm2592_vm15 = vcmp.lt.s32.totalorder %v2571_v20, 3  ;;  %v2594_v31 = vsel %vm2590_vm8, %v2574_v28, %v2577_v40  ;;  %vm2546_vm12 = vweird.f32 %v4836_v48 }
 0x287   :  { %v2596_v43 = vsel %vm2592_vm15, %v2580_v12, %v2595_v4  ;;  %v2600_v3 = vsel %vm2592_vm15, %v2583_v55, %v2599_v11  ;;  %v2602_v8 = vsel %vm2590_vm8, %v2580_v12, %v2583_v55  ;;  %v2603_v7 = vsel %vm2593_vm9, %v2589_v41, 1326507024 }
 0x288   :  { %v2406_v59 = vadd.s32 %v5114_v19, %v5120_v37  ;;  %v3403_v15 = vadd.s32 4294967294, %v2418_v25  ;;  %v2601_v50 = vsel %vm2591_vm1, %v2598_v45, %v2600_v3  ;;  %v2604_v42 = vsel %vm2592_vm15, %v2586_v30, %v2603_v7 }
 0x289   :  { %v2437_v24 = vsel %vm2352_vm0, %v2436_v54, %v2412_v38  ;;  %v2605_v47 = vsel %vm2591_vm1, %v2602_v8, %v2604_v42  ;;  %v5207_v29 = vmul.u32.u64.low %v2606_v56, %v2601_v50  ;;  %v5208_v40 = vmul.u32.u64.high %v2606_v56, %v2601_v50, %v5207_v29  ;;  %v3776_v57 = vpop.eup %3775 }
 0x28a   :  { %vm3404_vm13 = vcmp.lt.s32.totalorder %v3403_v15, 0  ;;  %v2597_v12 = vsel %vm2591_vm1, %v2594_v31, %v2596_v43  ;;  %v5212_v55 = vmul.u32.u64.low %v2606_v56, %v2605_v47  ;;  %v5213_v16 = vmul.u32.u64.high %v2606_v56, %v2605_v47, %v5212_v55  ;;  %v3778_v19 = vpop.eup %3777 }
 0x28b   :  { %v2554_v37 = vxor.u32 2147483648, %v3776_v57  ;;  %v2421_v23 = vsel %vm3404_vm13, 0, %v3403_v15  ;;  %v1726_v26 = vand.u32 2147483647, %v5194_v49  ;;  %v1729_v38 = vand.u32 2139095040, %v5194_v49 }
 0x28c   :  { %v2551_v28 = vxor.u32 2147483648, %v3778_v19  ;;  %v2422_v30 = vsub.s32 32, %v2421_v23  ;;  %v2426_v2 = vsub.s32 4294967266, %v2421_v23  ;;  %v2439_v41 = vsel %vm5188_vm2, 0, %v2437_v24  ;;  %v5237_v24 = vpop.f32.mrb[3].mxu0 }
 0x28d   :  { %v2555_v20 = vsel %vm2553_vm3, %v2554_v37, %v3778_v19  ;;  %v2613_v54 = vmul.u32 %v2606_v56, %v2597_v12  ;;  %v2616_v4 = vadd.s32 1, %v5208_v40  ;;  %v1730_v45 = vshrl.u32 %v1729_v38, 23 }
 0x28e   :  { %v2552_v11 = vsel %vm2550_vm10, %v3776_v57, %v2551_v28  ;;  %v2423_v25 = vshll.u32 %v5178_v60, %v2421_v23  ;;  %v2424_v31 = vshrl.u32 %v2406_v59, %v2422_v30  ;;  %v2427_v43 = vadd.s32 127, %v2426_v2 }
 0x28f   :  { %v2556_v3 = vsel %vm2549_vm11, %v2552_v11, %v2555_v20  ;;  %vm2615_vm14 = vc.u32 %v5213_v16, %v5207_v29  ;;  %v3377_v8 = vadd.s32 4294967169, %v1730_v45  ;;  %v1733_v56 = vand.u32 8388607, %v1726_v26 }
 0x290   :  { %v2557_v7 = vsel %vm2546_vm12, nan, %v2556_v3  ;;  %v2425_v15 = vor.u32 %v2424_v31, %v2423_v25  ;;  %v2428_v50 = vshll.u32 %v2427_v43, 23  ;;  %v2617_v42 = vsel %vm2615_vm14, %v2616_v4, %v5208_v40 }
 0x291   :  { %v3246_v60 = vsel %vm4806_vm5, %v4836_v48, %v2557_v7  ;;  %v2618_v6 = vadd.s32 %v2617_v42, %v2613_v54  ;;  %v1736_v59 = vadd.s32 1, %v3377_v8  ;;  %v2443_v57 = vadd.s32 3, %v2439_v41 }
 0x292   :  { %3264 = vst [vmem:[#allocation8 + $0x58] sm:$0x3] %v3246_v60  ;;  %v2429_v47 = vor.u32 4788187, %v2428_v50  ;;  %v1734_v55 = vor.u32 8388608, %v1733_v56  ;;  %v5241_v19 = vmul.f32 %v5145_v27, %v5066_v35  ;;  %v2432_v40 = vcvt.s32.f32 %v2425_v15 }
 0x293   :  { %v2619_v12 = vadd.s32 536870912, %v2618_v6  ;;  %vm1737_vm6 = vcmp.gt.s32.totalorder %v1736_v59, 0  ;;  %v5244_v21 = vsub.s32 6, %v4433_v14  ;;  %v5248_v30 = vand.u32 3, %v2443_v57 }
 0x294   :  { %v2430_v37 = vand.u32 2147483647, %v2429_v47  ;;  %v1738_v23 = vsel %vm1737_vm6, %v1736_v59, 0  ;;  %v5251_v54 = vshll.u32 %v1734_v55, 8  ;;  %v5258_v27 = vsub.s32 5, %v4433_v14 }
 0x295   :  { %v5246_v48 = vshrl.u32 %v2619_v12, 30  ;;  %v1740_v38 = vand.u32 31, %v1738_v23  ;;  %v5255_v35 = vrot.slane %v5141_v5, %v5244_v21  ;;  %v1739_v45 = vshrl.u32 %v1738_v23, 5 }
 0x296   :  { %v2433_v28 = vmul.f32 %v2432_v40, %v2430_v37  ;;  %v5265_v25 = vrot.slane %v5152_v63, %v5244_v21  ;;  %vm2446_vm9 = vcmp.eq.s32.totalorder %v5248_v30, 0  ;;  %vm2445_vm10 = vcmp.lt.s32.totalorder %v5248_v30, 2 }
 0x297   :  { %v2621_v2 = vshll.u32 %v5246_v48, 30  ;;  %v1741_v41 = vsub.s32 32, %v1740_v38  ;;  %v1743_v43 = vshll.u32 %v3933_v18, %v1740_v38  ;;  %v1746_v15 = vshll.u32 %v3934_v32, %v1740_v38 }
 0x298   :  { %v2434_v20 = vxor.u32 2147483648, %v2433_v28  ;;  %v1749_v50 = vshll.u32 %v3935_v36, %v1740_v38  ;;  %v1752_v60 = vshll.u32 %v3936_v46, %v1740_v38  ;;  %v1755_v62 = vshll.u32 %v3937_v51, %v1740_v38 }
 0x299   :  { %v5260_v4 = vsub.s32 %v2618_v6, %v2621_v2  ;;  %v1744_v11 = vshrl.u32 %v3934_v32, %v1741_v41  ;;  %v1747_v3 = vshrl.u32 %v3935_v36, %v1741_v41  ;;  %v1750_v8 = vshrl.u32 %v3936_v46, %v1741_v41 }
 0x29a   :  { %v2435_v31 = vsel %vm2352_vm0, %v2434_v20, %v2433_v28  ;;  %v1753_v6 = vshrl.u32 %v3937_v51, %v1741_v41  ;;  %v1756_v55 = vshrl.u32 %v3938_v0, %v1741_v41  ;;  %v1233_v37 = vmul.f32 %v5255_v35, %v4705_v22 }
 0x29b   :  { %v2438_v56 = vsel %vm5188_vm2, %v5021_v52, %v2435_v31  ;;  %v2624_v7 = vsub.s32 0, %v5260_v4  ;;  %v1745_v42 = vor.u32 %v1744_v11, %v1743_v43  ;;  %v1748_v47 = vor.u32 %v1747_v3, %v1746_v15 }
 0x29c   :  { %3779 = vcosq.f32 %v2438_v56  ;;  %v1751_v57 = vor.u32 %v1750_v8, %v1749_v50  ;;  %v1754_v12 = vor.u32 %v1753_v6, %v1752_v60  ;;  %v1742_v23 = vshrl.u32 %v3933_v18, %v1741_v41 }
 0x29d   :  { %3781 = vsinq.f32 %v2438_v56  ;;  %v3410_v59 = vmin.u32 %v2624_v7, %v5260_v4  ;;  %vm1758_vm5 = vcmp.lt.s32.totalorder %v1739_v45, 1  ;;  %v5288_v28 = vrot.slane %v5141_v5, %v5258_v27 }
 0x29e   :  { %vm2449_vm0 = vcmp.eq.s32.totalorder %v5248_v30, 2  ;;  %v1757_v2 = vor.u32 %v1756_v55, %v1755_v62  ;;  %vm1759_vm2 = vcmp.lt.s32.totalorder %v1739_v45, 2  ;;  %vm1760_vm3 = vcmp.lt.s32.totalorder %v1739_v45, 3 }
 0x29f   :  { %v2626_v40 = vclz %v3410_v59  ;;  %vm1761_vm8 = vcmp.lt.s32.totalorder %v1739_v45, 4  ;;  %v1766_v22 = vsel %vm1758_vm5, %v1745_v42, %v1748_v47  ;;  %vm2560_vm11 = vcmp.lt.s32.totalorder %v5063_v10, 0 }
 0x2a0   :  { %v1763_v20 = vsel %vm1761_vm8, %v1751_v57, 2102212464  ;;  %v1767_v11 = vsel %vm1761_vm8, %v1754_v12, 920167782  ;;  %v1762_v41 = vsel %vm1758_vm5, %v1742_v23, %v1745_v42  ;;  %v1770_v43 = vsel %vm1758_vm5, %v1748_v47, %v1751_v57 }
 0x2a1   :  { %v3411_v38 = vadd.s32 4294967294, %v2626_v40  ;;  %v1768_v31 = vsel %vm1760_vm3, %v1751_v57, %v1767_v11  ;;  %v1771_v3 = vsel %vm1761_vm8, %v1757_v2, 1326507024  ;;  %vm2442_vm1 = vweird.f32 %v5021_v52  ;;  %v5319_v2 = vpop.f32.mrb[11].mxu1 }
 0x2a2   :  { %v1764_v8 = vsel %vm1760_vm3, %v1748_v47, %v1763_v20  ;;  %v1769_v56 = vsel %vm1759_vm2, %v1766_v22, %v1768_v31  ;;  %v1772_v7 = vsel %vm1760_vm3, %v1754_v12, %v1771_v3  ;;  %v2614_v6 = vadd.s32 %v5207_v29, %v5213_v16 }
 0x2a3   :  { %vm3412_vm15 = vcmp.lt.s32.totalorder %v3411_v38, 0  ;;  %v1773_v50 = vsel %vm1759_vm2, %v1770_v43, %v1772_v7  ;;  %v5304_v60 = vmul.u32.u64.low %v5251_v54, %v1769_v56  ;;  %v5305_v42 = vmul.u32.u64.high %v5251_v54, %v1769_v56, %v5304_v60 }
 0x2a4   :  { %v2629_v15 = vsel %vm3412_vm15, 0, %v3411_v38  ;;  %v2644_v62 = vsub.s32 4, %v5246_v48  ;;  %v1765_v55 = vsel %vm1759_vm2, %v1762_v41, %v1764_v8  ;;  %v5317_v23 = vadd.f32 %v5265_v25, %v1233_v37 }
 0x2a5   :  { %v2630_v59 = vsub.s32 32, %v2629_v15  ;;  %v2634_v57 = vsub.s32 4294967266, %v2629_v15  ;;  %v5313_v12 = vmul.u32.u64.low %v5251_v54, %v1773_v50  ;;  %v5314_v40 = vmul.u32.u64.high %v5251_v54, %v1773_v50, %v5313_v12 }
 0x2a6   :  { %v3780_v47 = vpop.eup %3779  ;;  %v2631_v29 = vshll.u32 %v5260_v4, %v2629_v15  ;;  %v1784_v31 = vadd.s32 1, %v5305_v42  ;;  %v1232_v45 = vmul.f32 %v5288_v28, %v4845_v44  ;;  %v5327_v41 = vrot.slane %v5152_v63, %v5258_v27 }
 0x2a7   :  { %v3782_v38 = vpop.eup %3781  ;;  %v2450_v20 = vxor.u32 2147483648, %v3780_v47  ;;  %v2632_v16 = vshrl.u32 %v2614_v6, %v2630_v59  ;;  %v2635_v22 = vadd.s32 127, %v2634_v57  ;;  %v1937_v8 = vand.u32 2139095040, %v5317_v23 }
 0x2a8   :  { %v2447_v11 = vxor.u32 2147483648, %v3782_v38  ;;  %v1781_v56 = vmul.u32 %v5251_v54, %v1765_v55  ;;  %vm1783_vm12 = vc.u32 %v5314_v40, %v5304_v60  ;;  %v1934_v44 = vand.u32 2147483647, %v5317_v23 }
 0x2a9   :  { %v2451_v37 = vsel %vm2449_vm0, %v2450_v20, %v3782_v38  ;;  %v2633_v43 = vor.u32 %v2632_v16, %v2631_v29  ;;  %v2636_v3 = vshll.u32 %v2635_v22, 23  ;;  %v2645_v50 = vsel %vm2560_vm11, %v2644_v62, %v5246_v48 }
 0x2aa   :  { %v2448_v4 = vsel %vm2446_vm9, %v3780_v47, %v2447_v11  ;;  %v1785_v6 = vsel %vm1783_vm12, %v1784_v31, %v5305_v42  ;;  %vm5348_vm13 = vcmp.le.f32.partialorder %v2558_v58, 0.7853982  ;;  %v1938_v47 = vshrl.u32 %v1937_v8, 23 }
 0x2ab   :  { %v2452_v7 = vsel %vm2445_vm10, %v2448_v4, %v2451_v37  ;;  %v2637_v15 = vor.u32 4788187, %v2636_v3  ;;  %v1786_v57 = vadd.s32 %v1785_v6, %v1781_v56  ;;  %v2640_v12 = vcvt.s32.f32 %v2633_v43 }
 0x2ac   :  { %v2453_v59 = vsel %vm2442_vm1, nan, %v2452_v7  ;;  %v5356_v48 = vadd.f32 %v5327_v41, %v1232_v45  ;;  %v2647_v42 = vsel %vm5348_vm13, 0, %v2645_v50  ;;  %v3385_v58 = vadd.s32 4294967169, %v1938_v47 }
 0x2ad   :  { %v3245_v30 = vsel %vm4902_vm4, %v5021_v52, %v2453_v59  ;;  %v2638_v55 = vand.u32 2147483647, %v2637_v15  ;;  %v1787_v62 = vadd.s32 536870912, %v1786_v57  ;;  %v1941_v38 = vand.u32 8388607, %v1934_v44 }
 0x2ae   :  { %3263 = vst [vmem:[#allocation8 + $0x50] sm:$0x3] %v3245_v30  ;;  %v1833_v29 = vand.u32 2139095040, %v5356_v48  ;;  %v1944_v9 = vadd.s32 1, %v3385_v58  ;;  %v2651_v22 = vadd.s32 3, %v2647_v42  ;;  %vm1728_vm14 = vcmp.lt.s32.totalorder %v5194_v49, 0 }
 0x2af   :  { %v2641_v20 = vmul.f32 %v2640_v12, %v2638_v55  ;;  %v1788_v16 = vshrl.u32 %v1787_v62, 30  ;;  %v1942_v45 = vor.u32 8388608, %v1941_v38  ;;  %v1830_v8 = vand.u32 2147483647, %v5356_v48 }
 0x2b0   :  { %v1834_v11 = vshrl.u32 %v1833_v29, 23  ;;  %vm1945_vm4 = vcmp.gt.s32.totalorder %v1944_v9, 0  ;;  %v5371_v15 = vand.u32 3, %v2651_v22  ;;  %v1782_v6 = vadd.s32 %v5304_v60, %v5314_v40 }
 0x2b1   :  { %v2642_v52 = vxor.u32 2147483648, %v2641_v20  ;;  %v1789_v31 = vshll.u32 %v1788_v16, 30  ;;  %v1812_v43 = vsub.s32 4, %v1788_v16  ;;  %v1946_v3 = vsel %vm1945_vm4, %v1944_v9, 0 }
 0x2b2   :  { %v3381_v7 = vadd.s32 4294967169, %v1834_v11  ;;  %v1948_v50 = vand.u32 31, %v1946_v3  ;;  %v5377_v47 = vshrl.u32 %v1946_v3, 5  ;;  %v5383_v30 = vshll.u32 %v1942_v45, 8 }
 0x2b3   :  { %v2643_v37 = vsel %vm2560_vm11, %v2642_v52, %v2641_v20  ;;  %v5369_v56 = vsub.s32 %v1786_v57, %v1789_v31  ;;  %v5381_v54 = vsel %vm1728_vm14, %v1812_v43, %v1788_v16  ;;  %v5387_v55 = vand.u32 8388607, %v1830_v8 }
 0x2b4   :  { %v2646_v4 = vsel %vm5348_vm13, %v5063_v10, %v2643_v37  ;;  %v1949_v57 = vsub.s32 32, %v1948_v50  ;;  %v1951_v42 = vshll.u32 %v3933_v18, %v1948_v50  ;;  %v1954_v60 = vshll.u32 %v3934_v32, %v1948_v50 }
 0x2b5   :  { %3783 = vcosq.f32 %v2646_v4  ;;  %v1792_v59 = vsub.s32 0, %v5369_v56  ;;  %v5392_v40 = vadd.s32 1, %v3381_v7  ;;  %vm2657_vm6 = vcmp.eq.s32.totalorder %v5371_v15, 2 }
 0x2b6   :  { %3785 = vsinq.f32 %v2646_v4  ;;  %v1952_v62 = vshrl.u32 %v3934_v32, %v1949_v57  ;;  %v1955_v58 = vshrl.u32 %v3935_v36, %v1949_v57  ;;  %v1957_v38 = vshll.u32 %v3935_v36, %v1948_v50 }
 0x2b7   :  { %v3378_v12 = vmin.u32 %v1792_v59, %v5369_v56  ;;  %v1958_v20 = vshrl.u32 %v3936_v46, %v1949_v57  ;;  %vm2654_vm5 = vcmp.eq.s32.totalorder %v5371_v15, 0  ;;  %v1950_v16 = vshrl.u32 %v3933_v18, %v1949_v57 }
 0x2b8   :  { %v1960_v9 = vshll.u32 %v3936_v46, %v1948_v50  ;;  %vm1966_vm0 = vcmp.lt.s32.totalorder %v5377_v47, 1  ;;  %vm2653_vm2 = vcmp.lt.s32.totalorder %v5371_v15, 2  ;;  %v1953_v52 = vor.u32 %v1952_v62, %v1951_v42 }
 0x2b9   :  { %v1794_v29 = vclz %v3378_v12  ;;  %v1956_v22 = vor.u32 %v1955_v58, %v1954_v60  ;;  %v1959_v11 = vor.u32 %v1958_v20, %v1957_v38  ;;  %v1961_v31 = vshrl.u32 %v3937_v51, %v1949_v57 }
 0x2ba   :  { %vm2650_vm3 = vweird.f32 %v5063_v10  ;;  %vm5408_vm8 = vcmp.le.f32.partialorder %v1726_v26, 0.7853982  ;;  %v1963_v43 = vshll.u32 %v3937_v51, %v1948_v50  ;;  %v1964_v3 = vshrl.u32 %v3938_v0, %v1949_v57 }
 0x2bb   :  { %v3379_v37 = vadd.s32 4294967294, %v1794_v29  ;;  %vm1967_vm9 = vcmp.lt.s32.totalorder %v5377_v47, 2  ;;  %v1962_v4 = vor.u32 %v1961_v31, %v1960_v9  ;;  %vm1968_vm10 = vcmp.lt.s32.totalorder %v5377_v47, 3 }
 0x2bc   :  { %vm1969_vm11 = vcmp.lt.s32.totalorder %v5377_v47, 4  ;;  %v1970_v7 = vsel %vm1966_vm0, %v1950_v16, %v1953_v52  ;;  %v1965_v26 = vor.u32 %v1964_v3, %v1963_v43  ;;  %v1974_v50 = vsel %vm1966_vm0, %v1953_v52, %v1956_v22 }
 0x2bd   :  { %vm3380_vm1 = vcmp.lt.s32.totalorder %v3379_v37, 0  ;;  %v1971_v59 = vsel %vm1969_vm11, %v1959_v11, 2102212464  ;;  %v1975_v60 = vsel %vm1969_vm11, %v1962_v4, 920167782  ;;  %v1978_v62 = vsel %vm1966_vm0, %v1956_v22, %v1959_v11 }
 0x2be   :  { %v1797_v57 = vsel %vm3380_vm1, 0, %v3379_v37  ;;  %v1972_v42 = vsel %vm1968_vm10, %v1956_v22, %v1971_v59  ;;  %vm1841_vm15 = vcmp.gt.s32.totalorder %v5392_v40, 0  ;;  %v1976_v52 = vsel %vm1968_vm10, %v1959_v11, %v1975_v60 }
 0x2bf   :  { %v3784_v12 = vpop.eup %3783  ;;  %v1798_v20 = vsub.s32 32, %v1797_v57  ;;  %v1802_v29 = vsub.s32 4294967266, %v1797_v57  ;;  %v1799_v9 = vshll.u32 %v5369_v56, %v1797_v57  ;;  %v1979_v31 = vsel %vm1969_vm11, %v1965_v26, 1326507024 }
 0x2c0   :  { %v3786_v58 = vpop.eup %3785  ;;  %v2658_v38 = vxor.u32 2147483648, %v3784_v12  ;;  %v1977_v3 = vsel %vm1967_vm9, %v1974_v50, %v1976_v52  ;;  %v1980_v56 = vsel %vm1968_vm10, %v1962_v4, %v1979_v31  ;;  %v1815_v4 = vsel %vm5408_vm8, 0, %v5381_v54 }
 0x2c1   :  { %v2655_v16 = vxor.u32 2147483648, %v3786_v58  ;;  %v1800_v43 = vshrl.u32 %v1782_v6, %v1798_v20  ;;  %v1803_v22 = vadd.s32 127, %v1802_v29  ;;  %v1973_v29 = vsel %vm1967_vm9, %v1970_v7, %v1972_v42 }
 0x2c2   :  { %v2659_v37 = vsel %vm2657_vm6, %v2658_v38, %v3786_v58  ;;  %v5444_v57 = vmul.u32.u64.low %v5383_v30, %v1977_v3  ;;  %v5445_v11 = vmul.u32.u64.high %v5383_v30, %v1977_v3, %v5444_v57  ;;  %v1981_v58 = vsel %vm1967_vm9, %v1978_v62, %v1980_v56 }
 0x2c3   :  { %v2656_v59 = vsel %vm2654_vm5, %v3784_v12, %v2655_v16  ;;  %v1801_v60 = vor.u32 %v1800_v43, %v1799_v9  ;;  %v1804_v6 = vshll.u32 %v1803_v22, 23  ;;  %v1842_v62 = vsel %vm1841_vm15, %v5392_v40, 0 }
 0x2c4   :  { %v2660_v26 = vsel %vm2653_vm2, %v2656_v59, %v2659_v37  ;;  %v5458_v12 = vmul.u32.u64.low %v5383_v30, %v1981_v58  ;;  %v5459_v38 = vmul.u32.u64.high %v5383_v30, %v1981_v58, %v5458_v12  ;;  %v3209_v54 = vrot.slane %v4596_v1, %v5126_v53 }
 0x2c5   :  { %v2661_v50 = vsel %vm2650_vm3, nan, %v2660_v26  ;;  %v1805_v20 = vor.u32 4788187, %v1804_v6  ;;  %v1992_v16 = vadd.s32 1, %v5445_v11  ;;  %v1844_v9 = vand.u32 31, %v1842_v62 }
 0x2c6   :  { %v3247_v15 = vsel %vm5014_vm7, %v5063_v10, %v2661_v50  ;;  %v5473_v52 = vsub.s32 7, %v4433_v14  ;;  %v1808_v10 = vcvt.s32.f32 %v1801_v60  ;;  %v1819_v31 = vadd.s32 3, %v1815_v4 }
 0x2c7   :  { %3265 = vst [vmem:[#allocation8 + $0x60] sm:$0x3] %v3247_v15  ;;  %v1806_v34 = vand.u32 2147483647, %v1805_v20  ;;  %v1838_v47 = vor.u32 8388608, %v5387_v55  ;;  %v1989_v7 = vmul.u32 %v5383_v30, %v1973_v29  ;;  %vm1991_vm7 = vc.u32 %v5459_v38, %v5444_v57 }
 0x2c8   :  { %v1843_v40 = vshrl.u32 %v1842_v62, 5  ;;  %v1845_v42 = vsub.s32 32, %v1844_v9  ;;  %v1993_v43 = vsel %vm1991_vm7, %v1992_v16, %v5445_v11  ;;  %v1847_v22 = vshll.u32 %v3933_v18, %v1844_v9 }
 0x2c9   :  { %v1809_v37 = vmul.f32 %v1808_v10, %v1806_v34  ;;  %v1850_v14 = vshll.u32 %v3934_v32, %v1844_v9  ;;  %v1994_v3 = vadd.s32 %v1993_v43, %v1989_v7  ;;  %v1853_v55 = vshll.u32 %v3935_v36, %v1844_v9 }
 0x2ca   :  { %v1848_v59 = vshrl.u32 %v3934_v32, %v1845_v42  ;;  %v1851_v56 = vshrl.u32 %v3935_v36, %v1845_v42  ;;  %v1854_v26 = vshrl.u32 %v3936_v46, %v1845_v42  ;;  %v1856_v60 = vshll.u32 %v3936_v46, %v1844_v9 }
 0x2cb   :  { %v1810_v30 = vxor.u32 2147483648, %v1809_v37  ;;  %v1857_v6 = vshrl.u32 %v3937_v51, %v1845_v42  ;;  %v1995_v58 = vadd.s32 536870912, %v1994_v3  ;;  %v1859_v4 = vshll.u32 %v3937_v51, %v1844_v9 }
 0x2cc   :  { %v1849_v11 = vor.u32 %v1848_v59, %v1847_v22  ;;  %v1852_v50 = vor.u32 %v1851_v56, %v1850_v14  ;;  %v1855_v15 = vor.u32 %v1854_v26, %v1853_v55  ;;  %v1860_v29 = vshrl.u32 %v3938_v0, %v1845_v42 }
 0x2cd   :  { %v1811_v12 = vsel %vm1728_vm14, %v1810_v30, %v1809_v37  ;;  %v1858_v20 = vor.u32 %v1857_v6, %v1856_v60  ;;  %v1996_v16 = vshrl.u32 %v1995_v58, 30  ;;  %v1878_v34 = vshll.u32 %v1838_v47, 8 }
 0x2ce   :  { %v1814_v62 = vsel %vm5408_vm8, %v5194_v49, %v1811_v12  ;;  %v5497_v10 = vrot.slane %v5141_v5, %v5473_v52  ;;  %v1846_v9 = vshrl.u32 %v3933_v18, %v1845_v42  ;;  %v1861_v7 = vor.u32 %v1860_v29, %v1859_v4 }
 0x2cf   :  { %3787 = vcosq.f32 %v1814_v62  ;;  %v5502_v37 = vrot.slane %v5152_v63, %v5473_v52  ;;  %v1997_v43 = vshll.u32 %v1996_v16, 30  ;;  %vm1862_vm12 = vcmp.lt.s32.totalorder %v1843_v40, 1 }
 0x2d0   :  { %3789 = vsinq.f32 %v1814_v62  ;;  %vm1865_vm13 = vcmp.lt.s32.totalorder %v1843_v40, 4  ;;  %vm1864_vm4 = vcmp.lt.s32.totalorder %v1843_v40, 3  ;;  %v1870_v22 = vsel %vm1862_vm12, %v1849_v11, %v1852_v50 }
 0x2d1   :  { %v1867_v45 = vsel %vm1865_vm13, %v1855_v15, 2102212464  ;;  %v1871_v47 = vsel %vm1865_vm13, %v1858_v20, 920167782  ;;  %v5504_v14 = vsub.s32 %v1994_v3, %v1997_v43  ;;  %vm1863_vm14 = vcmp.lt.s32.totalorder %v1843_v40, 2 }
 0x2d2   :  { %v1872_v5 = vsel %vm1864_vm4, %v1855_v15, %v1871_v47  ;;  %v1874_v59 = vsel %vm1862_vm12, %v1852_v50, %v1855_v15  ;;  %v1866_v56 = vsel %vm1862_vm12, %v1846_v9, %v1849_v11  ;;  %v1868_v42 = vsel %vm1864_vm4, %v1852_v50, %v1867_v45 }
 0x2d3   :  { %v1873_v55 = vsel %vm1863_vm14, %v1870_v22, %v1872_v5  ;;  %v1875_v30 = vsel %vm1865_vm13, %v1861_v7, 1326507024  ;;  %v1820_v26 = vand.u32 3, %v1819_v31  ;;  %v2000_v63 = vsub.s32 0, %v5504_v14 }
 0x2d4   :  { %v2020_v60 = vsub.s32 4, %v1996_v16  ;;  %v1876_v6 = vsel %vm1864_vm4, %v1858_v20, %v1875_v30  ;;  %v5507_v4 = vmul.u32.u64.low %v1878_v34, %v1873_v55  ;;  %v5508_v12 = vmul.u32.u64.high %v1878_v34, %v1873_v55, %v5507_v4 }
 0x2d5   :  { %v1877_v58 = vsel %vm1863_vm14, %v1874_v59, %v1876_v6  ;;  %v1234_v3 = vmul.f32 %v5497_v10, %v4930_v13  ;;  %v3386_v40 = vmin.u32 %v2000_v63, %v5504_v14  ;;  %v1869_v15 = vsel %vm1863_vm14, %v1866_v56, %v1868_v42  ;;  %v5545_v42 = vpop.f32.mrb[4].mxu0 }
 0x2d6   :  { %v5514_v11 = vmul.u32.u64.low %v1878_v34, %v1877_v58  ;;  %v5515_v50 = vmul.u32.u64.high %v1878_v34, %v1877_v58, %v5514_v11  ;;  %vm1818_vm6 = vweird.f32 %v5194_v49  ;;  %vm5521_vm5 = vcmp.eq.s32.totalorder %v3209_v54, 1  ;;  %v3518_v6 = vpop.f32.mrb[5].mxu0 }
 0x2d7   :  { %vm1936_vm0 = vcmp.lt.s32.totalorder %v5317_v23, 0  ;;  %v5527_v20 = vadd.f32 %v5502_v37, %v1234_v3  ;;  %vm1821_vm2 = vcmp.lt.s32.totalorder %v1820_v26, 2  ;;  %vm1822_vm3 = vcmp.eq.s32.totalorder %v1820_v26, 0 }
 0x2d8   :  { %vm5531_vm8 = vcmp.le.f32.partialorder %v1934_v44, 0.7853982  ;;  %v2002_v29 = vclz %v3386_v40  ;;  %v2021_v53 = vsel %vm1936_vm0, %v2020_v60, %v1996_v16  ;;  %v1885_v54 = vmul.u32 %v1878_v34, %v1869_v15 }
 0x2d9   :  { %v3788_v62 = vpop.eup %3787  ;;  %v1888_v9 = vadd.s32 1, %v5508_v12  ;;  %v2041_v7 = vand.u32 2139095040, %v5527_v20  ;;  %vm1887_vm9 = vc.u32 %v5515_v50, %v5507_v4  ;;  %v6236_v44 = vand.u32 2147483647, %v5527_v20 }
 0x2da   :  { %v3790_v43 = vpop.eup %3789  ;;  %v1826_v45 = vxor.u32 2147483648, %v3788_v62  ;;  %v3387_v22 = vadd.s32 4294967294, %v2002_v29  ;;  %vm1825_vm10 = vcmp.eq.s32.totalorder %v1820_v26, 2  ;;  %v1990_v16 = vadd.s32 %v5444_v57, %v5459_v38  ;;  %v5553_v57 = vpop.f32.mrb[6].mxu0 }
 0x2db   :  { %v1823_v47 = vxor.u32 2147483648, %v3790_v43  ;;  %v1889_v5 = vsel %vm1887_vm9, %v1888_v9, %v5508_v12  ;;  %v2042_v59 = vshrl.u32 %v2041_v7, 23  ;;  %v2023_v63 = vsel %vm5531_vm8, 0, %v2021_v53  ;;  %v3519_v29 = vpop.f32.mrb[7].mxu0 }
 0x2dc   :  { %v1827_v56 = vsel %vm1825_vm10, %v1826_v45, %v3790_v43  ;;  %vm3388_vm11 = vcmp.lt.s32.totalorder %v3387_v22, 0  ;;  %v1890_v34 = vadd.s32 %v1889_v5, %v1885_v54  ;;  %v2045_v40 = vand.u32 8388607, %v6236_v44 }
 0x2dd   :  { %v1824_v55 = vsel %vm1822_vm3, %v3788_v62, %v1823_v47  ;;  %v2005_v30 = vsel %vm3388_vm11, 0, %v3387_v22  ;;  %v3389_v60 = vadd.s32 4294967169, %v2042_v59  ;;  %v2027_v9 = vadd.s32 3, %v2023_v63 }
 0x2de   :  { %v1828_v58 = vsel %vm1821_vm2, %v1824_v55, %v1827_v56  ;;  %v2006_v12 = vsub.s32 32, %v2005_v30  ;;  %v2010_v3 = vsub.s32 4294967266, %v2005_v30  ;;  %v1891_v15 = vadd.s32 536870912, %v1890_v34 }
 0x2df   :  { %v1829_v38 = vsel %vm1818_vm6, nan, %v1828_v58  ;;  %v2048_v11 = vadd.s32 1, %v3389_v60  ;;  %v2007_v26 = vshll.u32 %v5504_v14, %v2005_v30  ;;  %v2046_v22 = vor.u32 8388608, %v2045_v40 }
 0x2e0   :  { %v3239_v62 = vsel %vm5521_vm5, %v5194_v49, %v1829_v38  ;;  %v2008_v53 = vshrl.u32 %v1990_v16, %v2006_v12  ;;  %v2011_v54 = vadd.s32 127, %v2010_v3  ;;  %v5561_v7 = vshrl.u32 %v1891_v15, 30 }
 0x2e1   :  { %3257 = vst [vmem:[#allocation8 + $0x20] sm:$0xff] %v3239_v62  ;;  %vm2049_vm1 = vcmp.gt.s32.totalorder %v2048_v11, 0  ;;  %v3217_v49 = vrot.slane %v4596_v1, %v5244_v21  ;;  %v3213_v14 = vrot.slane %v4596_v1, %v5258_v27  ;;  %v5568_v16 = vand.u32 3, %v2027_v9 }
 0x2e2   :  { %v2009_v43 = vor.u32 %v2008_v53, %v2007_v26  ;;  %v2012_v45 = vshll.u32 %v2011_v54, 23  ;;  %v2050_v47 = vsel %vm2049_vm1, %v2048_v11, 0  ;;  %v1893_v5 = vshll.u32 %v5561_v7, 30 }
 0x2e3   :  { %v2052_v59 = vand.u32 31, %v2050_v47  ;;  %v5574_v63 = vadd.f32 %v5156_v33, %v5241_v19  ;;  %v1886_v58 = vadd.s32 %v5507_v4, %v5515_v50  ;;  %v5578_v12 = vshll.u32 %v2046_v22, 8 }
 0x2e4   :  { %v2013_v56 = vor.u32 4788187, %v2012_v45  ;;  %v5570_v55 = vsub.s32 %v1890_v34, %v1893_v5  ;;  %v2016_v6 = vcvt.s32.f32 %v2009_v43  ;;  %v1916_v40 = vsub.s32 4, %v5561_v7 }
 0x2e5   :  { %v2053_v30 = vsub.s32 32, %v2052_v59  ;;  %v2051_v38 = vshrl.u32 %v2050_v47, 5  ;;  %v2055_v11 = vshll.u32 %v3933_v18, %v2052_v59  ;;  %v2058_v4 = vshll.u32 %v3934_v32, %v2052_v59 }
 0x2e6   :  { %v2014_v60 = vand.u32 2147483647, %v2013_v56  ;;  %v1896_v3 = vsub.s32 0, %v5570_v55  ;;  %v2061_v50 = vshll.u32 %v3935_v36, %v2052_v59  ;;  %v2064_v54 = vshll.u32 %v3936_v46, %v2052_v59 }
 0x2e7   :  { %v2056_v34 = vshrl.u32 %v3934_v32, %v2053_v30  ;;  %v2059_v33 = vshrl.u32 %v3935_v36, %v2053_v30  ;;  %v2062_v19 = vshrl.u32 %v3936_v46, %v2053_v30  ;;  %v2065_v62 = vshrl.u32 %v3937_v51, %v2053_v30 }
 0x2e8   :  { %v2017_v15 = vmul.f32 %v2016_v6, %v2014_v60  ;;  %v3382_v29 = vmin.u32 %v1896_v3, %v5570_v55  ;;  %v2054_v53 = vshrl.u32 %v3933_v18, %v2053_v30  ;;  %v2665_v9 = vand.u32 2139095040, %v5574_v63 }
 0x2e9   :  { %v2057_v45 = vor.u32 %v2056_v34, %v2055_v11  ;;  %v2060_v22 = vor.u32 %v2059_v33, %v2058_v4  ;;  %v2063_v47 = vor.u32 %v2062_v19, %v2061_v50  ;;  %v2066_v56 = vor.u32 %v2065_v62, %v2064_v54 }
 0x2ea   :  { %v2018_v26 = vxor.u32 2147483648, %v2017_v15  ;;  %v1898_v43 = vclz %v3382_v29  ;;  %v2067_v60 = vshll.u32 %v3937_v51, %v2052_v59  ;;  %v2068_v6 = vshrl.u32 %v3938_v0, %v2053_v30 }
 0x2eb   :  { %vm2070_vm15 = vcmp.lt.s32.totalorder %v2051_v38, 1  ;;  %vm2071_vm7 = vcmp.lt.s32.totalorder %v2051_v38, 2  ;;  %vm2072_vm12 = vcmp.lt.s32.totalorder %v2051_v38, 3  ;;  %vm2073_vm13 = vcmp.lt.s32.totalorder %v2051_v38, 4 }
 0x2ec   :  { %v2019_v5 = vsel %vm1936_vm0, %v2018_v26, %v2017_v15  ;;  %v3383_v44 = vadd.s32 4294967294, %v1898_v43  ;;  %v2069_v29 = vor.u32 %v2068_v6, %v2067_v60  ;;  %v2074_v34 = vsel %vm2070_vm15, %v2054_v53, %v2057_v45 }
 0x2ed   :  { %v2022_v3 = vsel %vm5531_vm8, %v5317_v23, %v2019_v5  ;;  %v2075_v15 = vsel %vm2073_vm13, %v2063_v47, 2102212464  ;;  %v2078_v30 = vsel %vm2070_vm15, %v2057_v45, %v2060_v22  ;;  %v2079_v33 = vsel %vm2073_vm13, %v2066_v56, 920167782 }
 0x2ee   :  { %3791 = vcosq.f32 %v2022_v3  ;;  %vm3384_vm4 = vcmp.lt.s32.totalorder %v3383_v44, 0  ;;  %v2076_v59 = vsel %vm2072_vm12, %v2060_v22, %v2075_v15  ;;  %v2082_v50 = vsel %vm2070_vm15, %v2060_v22, %v2063_v47 }
 0x2ef   :  { %3793 = vsinq.f32 %v2022_v3  ;;  %v1901_v11 = vsel %vm3384_vm4, 0, %v3383_v44  ;;  %v2077_v62 = vsel %vm2071_vm7, %v2074_v34, %v2076_v59  ;;  %v2080_v26 = vsel %vm2072_vm12, %v2063_v47, %v2079_v33 }
 0x2f0   :  { %v1902_v13 = vsub.s32 32, %v1901_v11  ;;  %v1903_v19 = vshll.u32 %v5570_v55, %v1901_v11  ;;  %v1906_v4 = vsub.s32 4294967266, %v1901_v11  ;;  %v2083_v54 = vsel %vm2073_vm13, %v2069_v29, 1326507024 }
 0x2f1   :  { %v2666_v43 = vshrl.u32 %v2665_v9, 23  ;;  %v2081_v44 = vsel %vm2071_vm7, %v2078_v30, %v2080_v26  ;;  %v2084_v60 = vsel %vm2072_vm12, %v2066_v56, %v2083_v54  ;;  %vm5612_vm14 = vcmp.eq.s32.totalorder %v3217_v49, 1 }
 0x2f2   :  { %v1904_v53 = vshrl.u32 %v1886_v58, %v1902_v13  ;;  %v1907_v5 = vadd.s32 127, %v1906_v4  ;;  %v2085_v45 = vsel %vm2071_vm7, %v2082_v50, %v2084_v60  ;;  %vm2026_vm6 = vweird.f32 %v5317_v23 }
 0x2f3   :  { %v5618_v22 = vmul.u32.u64.low %v5578_v12, %v2081_v44  ;;  %v5619_v47 = vmul.u32.u64.high %v5578_v12, %v2081_v44, %v5618_v22  ;;  %v3413_v58 = vadd.s32 4294967169, %v2666_v43  ;;  %vm5629_vm0 = vcmp.le.f32.partialorder %v1830_v8, 0.7853982 }
 0x2f4   :  { %v1905_v9 = vor.u32 %v1904_v53, %v1903_v19  ;;  %v1908_v6 = vshll.u32 %v1907_v5, 23  ;;  %v5624_v56 = vmul.u32.u64.low %v5578_v12, %v2085_v45  ;;  %v5625_v3 = vmul.u32.u64.high %v5578_v12, %v2085_v45, %v5624_v56 }
 0x2f5   :  { %vm1832_vm2 = vcmp.lt.s32.totalorder %v5356_v48, 0  ;;  %v2672_v49 = vadd.s32 1, %v3413_v58  ;;  %v1242_v38 = vmul.f32 %v5255_v35, %v5138_v61  ;;  %vm2033_vm3 = vcmp.eq.s32.totalorder %v5568_v16, 2 }
 0x2f6   :  { %v1909_v29 = vor.u32 4788187, %v1908_v6  ;;  %v1917_v34 = vsel %vm1832_vm2, %v1916_v40, %v5561_v7  ;;  %v5644_v8 = vmul.f32 %v5497_v10, %v5319_v2  ;;  %v2093_v11 = vmul.u32 %v5578_v12, %v2077_v62 }
 0x2f7   :  { %v2096_v59 = vadd.s32 1, %v5619_v47  ;;  %v2662_v61 = vand.u32 2147483647, %v5574_v63  ;;  %vm2673_vm8 = vcmp.gt.s32.totalorder %v2672_v49, 0  ;;  %v1912_v13 = vcvt.s32.f32 %v1905_v9 }
 0x2f8   :  { %v3792_v15 = vpop.eup %3791  ;;  %v1910_v33 = vand.u32 2147483647, %v1909_v29  ;;  %vm2095_vm9 = vc.u32 %v5625_v3, %v5618_v22  ;;  %v1919_v2 = vsel %vm5629_vm0, 0, %v1917_v34  ;;  %v2674_v40 = vsel %vm2673_vm8, %v2672_v49, 0 }
 0x2f9   :  { %v3794_v35 = vpop.eup %3793  ;;  %v2034_v30 = vxor.u32 2147483648, %v3792_v15  ;;  %v2097_v10 = vsel %vm2095_vm9, %v2096_v59, %v5619_v47  ;;  %vm2030_vm10 = vcmp.eq.s32.totalorder %v5568_v16, 0  ;;  %vm2029_vm11 = vcmp.lt.s32.totalorder %v5568_v16, 2 }
 0x2fa   :  { %v2031_v7 = vxor.u32 2147483648, %v3794_v35  ;;  %v1913_v19 = vmul.f32 %v1912_v13, %v1910_v33  ;;  %v2098_v4 = vadd.s32 %v2097_v10, %v2093_v11  ;;  %v2669_v62 = vand.u32 8388607, %v2662_v61 }
 0x2fb   :  { %v2035_v12 = vsel %vm2033_vm3, %v2034_v30, %v3794_v35  ;;  %v2676_v26 = vand.u32 31, %v2674_v40  ;;  %v1923_v53 = vadd.s32 3, %v1919_v2  ;;  %v5662_v60 = vshrl.u32 %v2674_v40, 5 }
 0x2fc   :  { %v2032_v50 = vsel %vm2030_vm10, %v3792_v15, %v2031_v7  ;;  %v1914_v43 = vxor.u32 2147483648, %v1913_v19  ;;  %v2099_v5 = vadd.s32 536870912, %v2098_v4  ;;  %v5665_v47 = vadd.f32 %v5265_v25, %v1242_v38 }
 0x2fd   :  { %v2036_v54 = vsel %vm2029_vm11, %v2032_v50, %v2035_v12  ;;  %v2677_v45 = vsub.s32 32, %v2676_v26  ;;  %v2679_v6 = vshll.u32 %v3933_v18, %v2676_v26  ;;  %v2682_v25 = vshll.u32 %v3934_v32, %v2676_v26 }
 0x2fe   :  { %v2037_v44 = vsel %vm2026_vm6, nan, %v2036_v54  ;;  %v1915_v58 = vsel %vm1832_vm2, %v1914_v43, %v1913_v19  ;;  %v5672_v9 = vshrl.u32 %v2099_v5, 30  ;;  %v2685_v29 = vshll.u32 %v3935_v36, %v2676_v26 }
 0x2ff   :  { %v3241_v16 = vsel %vm5612_vm14, %v5317_v23, %v2037_v44  ;;  %v1918_v56 = vsel %vm5629_vm0, %v5356_v48, %v1915_v58  ;;  %v2680_v49 = vshrl.u32 %v3934_v32, %v2677_v45  ;;  %v2683_v38 = vshrl.u32 %v3935_v36, %v2677_v45 }
 0x300   :  { %3259 = vst [vmem:[#allocation8 + $0x30] sm:$0xff] %v3241_v16  ;;  %3795 = vcosq.f32 %v1918_v56  ;;  %v2101_v23 = vshll.u32 %v5672_v9, 30  ;;  %v2686_v34 = vshrl.u32 %v3936_v46, %v2677_v45  ;;  %v5684_v15 = vand.u32 3, %v1923_v53 }
 0x301   :  { %3797 = vsinq.f32 %v1918_v56  ;;  %v2681_v11 = vor.u32 %v2680_v49, %v2679_v6  ;;  %v2684_v59 = vor.u32 %v2683_v38, %v2682_v25  ;;  %v2688_v30 = vshll.u32 %v3936_v46, %v2676_v26 }
 0x302   :  { %v5686_v21 = vsub.s32 %v2098_v4, %v2101_v23  ;;  %v2687_v35 = vor.u32 %v2686_v34, %v2685_v29  ;;  %v2689_v33 = vshrl.u32 %v3937_v51, %v2677_v45  ;;  %v2670_v13 = vor.u32 8388608, %v2669_v62 }
 0x303   :  { %v2691_v7 = vshll.u32 %v3937_v51, %v2676_v26  ;;  %v2692_v2 = vshrl.u32 %v3938_v0, %v2677_v45  ;;  %vm2694_vm1 = vcmp.lt.s32.totalorder %v5662_v60, 1  ;;  %v2873_v12 = vand.u32 2139095040, %v5665_v47 }
 0x304   :  { %v2104_v10 = vsub.s32 0, %v5686_v21  ;;  %v2690_v40 = vor.u32 %v2689_v33, %v2688_v30  ;;  %vm1926_vm15 = vcmp.eq.s32.totalorder %v5684_v15, 0  ;;  %vm2040_vm7 = vcmp.lt.s32.totalorder %v5527_v20, 0 }
 0x305   :  { %v2678_v19 = vshrl.u32 %v3933_v18, %v2677_v45  ;;  %v2693_v4 = vor.u32 %v2692_v2, %v2691_v7  ;;  %vm2696_vm12 = vcmp.lt.s32.totalorder %v5662_v60, 3  ;;  %vm2697_vm13 = vcmp.lt.s32.totalorder %v5662_v60, 4 }
 0x306   :  { %vm1925_vm4 = vcmp.lt.s32.totalorder %v5684_v15, 2  ;;  %vm5704_vm6 = vcmp.eq.s32.totalorder %v3213_v14, 1  ;;  %v3390_v62 = vmin.u32 %v2104_v10, %v5686_v21  ;;  %v2699_v26 = vsel %vm2697_vm13, %v2687_v35, 2102212464 }
 0x307   :  { %v2702_v54 = vsel %vm2694_vm1, %v2681_v11, %v2684_v59  ;;  %v2703_v43 = vsel %vm2697_vm13, %v2690_v40, 920167782  ;;  %vm1922_vm0 = vweird.f32 %v5356_v48  ;;  %v2706_v5 = vsel %vm2694_vm1, %v2684_v59, %v2687_v35 }
 0x308   :  { %v2704_v53 = vsel %vm2696_vm12, %v2687_v35, %v2703_v43  ;;  %v2707_v27 = vsel %vm2697_vm13, %v2693_v4, 1326507024  ;;  %v2710_v14 = vshll.u32 %v2670_v13, 8  ;;  %v2106_v44 = vclz %v3390_v62 }
 0x309   :  { %v2124_v45 = vsub.s32 4, %v5672_v9  ;;  %vm2695_vm2 = vcmp.lt.s32.totalorder %v5662_v60, 2  ;;  %v2698_v16 = vsel %vm2694_vm1, %v2678_v19, %v2681_v11  ;;  %v2700_v58 = vsel %vm2696_vm12, %v2684_v59, %v2699_v26 }
 0x30a   :  { %v2705_v6 = vsel %vm2695_vm2, %v2702_v54, %v2704_v53  ;;  %v2708_v56 = vsel %vm2696_vm12, %v2690_v40, %v2707_v27  ;;  %v2874_v49 = vshrl.u32 %v2873_v12, 23  ;;  %v3796_v25 = vpop.eup %3795  ;;  %v3391_v38 = vadd.s32 4294967294, %v2106_v44 }
 0x30b   :  { %v2709_v23 = vsel %vm2695_vm2, %v2706_v5, %v2708_v56  ;;  %v5728_v29 = vmul.u32.u64.low %v2710_v14, %v2705_v6  ;;  %v5729_v34 = vmul.u32.u64.high %v2710_v14, %v2705_v6, %v5728_v29  ;;  %v3798_v11 = vpop.eup %3797  ;;  %vm1929_vm3 = vcmp.eq.s32.totalorder %v5684_v15, 2 }
 0x30c   :  { %v1930_v59 = vxor.u32 2147483648, %v3796_v25  ;;  %v5733_v35 = vmul.u32.u64.low %v2710_v14, %v2709_v23  ;;  %v5734_v30 = vmul.u32.u64.high %v2710_v14, %v2709_v23, %v5733_v35  ;;  %v1927_v33 = vxor.u32 2147483648, %v3798_v11 }
 0x30d   :  { %vm3392_vm8 = vcmp.lt.s32.totalorder %v3391_v38, 0  ;;  %v2701_v13 = vsel %vm2695_vm2, %v2698_v16, %v2700_v58  ;;  %v2870_v7 = vand.u32 2147483647, %v5665_v47  ;;  %v2094_v10 = vadd.s32 %v5618_v22, %v5625_v3 }
 0x30e   :  { %v1931_v2 = vsel %vm1929_vm3, %v1930_v59, %v3798_v11  ;;  %v2109_v40 = vsel %vm3392_vm8, 0, %v3391_v38  ;;  %v3421_v12 = vadd.s32 4294967169, %v2874_v49  ;;  %v1928_v19 = vsel %vm1926_vm15, %v3796_v25, %v1927_v33 }
 0x30f   :  { %v2110_v4 = vsub.s32 32, %v2109_v40  ;;  %v2114_v62 = vsub.s32 4294967266, %v2109_v40  ;;  %v2125_v26 = vsel %vm2040_vm7, %v2124_v45, %v5672_v9  ;;  %v1932_v60 = vsel %vm1925_vm4, %v1928_v19, %v1931_v2 }
 0x310   :  { %v2717_v54 = vmul.u32 %v2710_v14, %v2701_v13  ;;  %vm2719_vm9 = vc.u32 %v5734_v30, %v5728_v29  ;;  %v2720_v22 = vadd.s32 1, %v5729_v34  ;;  %v1933_v3 = vsel %vm1922_vm0, nan, %v1932_v60 }
 0x311   :  { %v2111_v43 = vshll.u32 %v5686_v21, %v2109_v40  ;;  %v2112_v53 = vshrl.u32 %v2094_v10, %v2110_v4  ;;  %v2115_v5 = vadd.s32 127, %v2114_v62  ;;  %v3240_v9 = vsel %vm5704_vm6, %v5356_v48, %v1933_v3 }
 0x312   :  { %v2721_v15 = vsel %vm2719_vm9, %v2720_v22, %v5729_v34  ;;  %v2880_v27 = vadd.s32 1, %v3421_v12  ;;  %3258 = vst [vmem:[#allocation8 + $0x28] sm:$0xff] %v3240_v9  ;;  %v6310_v14 = vand.u32 2147483647, %v5527_v20  ;;  %v1241_v48 = vmul.f32 %v5288_v28, %v5237_v24 }
 0x313   :  { %v2113_v45 = vor.u32 %v2112_v53, %v2111_v43  ;;  %v2116_v16 = vshll.u32 %v2115_v5, 23  ;;  %v2722_v58 = vadd.s32 %v2721_v15, %v2717_v54  ;;  %v2877_v49 = vand.u32 8388607, %v2870_v7 }
 0x314   :  { %vm5760_vm10 = vcmp.le.f32.partialorder %v6310_v14, 0.7853982  ;;  %vm2881_vm11 = vcmp.gt.s32.totalorder %v2880_v27, 0  ;;  %v5774_v59 = vadd.f32 %v5502_v37, %v5644_v8  ;;  %v3221_v33 = vrot.slane %v4596_v1, %v5473_v52 }
 0x315   :  { %v2127_v21 = vsel %vm5760_vm10, 0, %v2125_v26  ;;  %v2117_v6 = vor.u32 4788187, %v2116_v16  ;;  %v2723_v56 = vadd.s32 536870912, %v2722_v58  ;;  %v2882_v25 = vsel %vm2881_vm11, %v2880_v27, 0 }
 0x316   :  { %v2884_v38 = vand.u32 31, %v2882_v25  ;;  %v2120_v34 = vcvt.s32.f32 %v2113_v45  ;;  %v2131_v35 = vadd.s32 3, %v2127_v21  ;;  %v5779_v28 = vadd.f32 %v5327_v41, %v1241_v48 }
 0x317   :  { %v2118_v23 = vand.u32 2147483647, %v2117_v6  ;;  %v5770_v11 = vshrl.u32 %v2723_v56, 30  ;;  %v2878_v10 = vor.u32 8388608, %v2877_v49  ;;  %v2883_v62 = vshrl.u32 %v2882_v25, 5 }
 0x318   :  { %v2885_v24 = vsub.s32 32, %v2884_v38  ;;  %v2887_v40 = vshll.u32 %v3933_v18, %v2884_v38  ;;  %v2890_v19 = vshll.u32 %v3934_v32, %v2884_v38  ;;  %v2893_v41 = vshll.u32 %v3935_v36, %v2884_v38 }
 0x319   :  { %v2121_v13 = vmul.f32 %v2120_v34, %v2118_v23  ;;  %v2725_v2 = vshll.u32 %v5770_v11, 30  ;;  %v2896_v60 = vshll.u32 %v3936_v46, %v2884_v38  ;;  %v2769_v54 = vand.u32 2139095040, %v5779_v28 }
 0x31a   :  { %v2888_v12 = vshrl.u32 %v3934_v32, %v2885_v24  ;;  %v2891_v37 = vshrl.u32 %v3935_v36, %v2885_v24  ;;  %v2894_v8 = vshrl.u32 %v3936_v46, %v2885_v24  ;;  %v2897_v52 = vshrl.u32 %v3937_v51, %v2885_v24 }
 0x31b   :  { %v2122_v4 = vxor.u32 2147483648, %v2121_v13  ;;  %v5787_v1 = vsub.s32 %v2722_v58, %v2725_v2  ;;  %v2899_v15 = vshll.u32 %v3937_v51, %v2884_v38  ;;  %v2900_v27 = vshrl.u32 %v3938_v0, %v2885_v24 }
 0x31c   :  { %v2889_v26 = vor.u32 %v2888_v12, %v2887_v40  ;;  %v2892_v43 = vor.u32 %v2891_v37, %v2890_v19  ;;  %v2895_v53 = vor.u32 %v2894_v8, %v2893_v41  ;;  %v2898_v9 = vor.u32 %v2897_v52, %v2896_v60 }
 0x31d   :  { %v2123_v22 = vsel %vm2040_vm7, %v2122_v4, %v2121_v13  ;;  %v2728_v3 = vsub.s32 0, %v5787_v1  ;;  %v5801_v14 = vand.u32 3, %v2131_v35  ;;  %v5804_v16 = vshll.u32 %v2878_v10, 8 }
 0x31e   :  { %v2126_v5 = vsel %vm5760_vm10, %v5527_v20, %v2123_v22  ;;  %v2886_v58 = vshrl.u32 %v3933_v18, %v2885_v24  ;;  %v2901_v21 = vor.u32 %v2900_v27, %v2899_v15  ;;  %v2770_v48 = vshrl.u32 %v2769_v54, 23 }
 0x31f   :  { %3799 = vcosq.f32 %v2126_v5  ;;  %v3414_v45 = vmin.u32 %v2728_v3, %v5787_v1  ;;  %vm2664_vm1 = vcmp.lt.s32.totalorder %v5574_v63, 0  ;;  %vm2902_vm15 = vcmp.lt.s32.totalorder %v2883_v62, 1 }
 0x320   :  { %3801 = vsinq.f32 %v2126_v5  ;;  %vm2903_vm7 = vcmp.lt.s32.totalorder %v2883_v62, 2  ;;  %vm2905_vm12 = vcmp.lt.s32.totalorder %v2883_v62, 4  ;;  %vm2904_vm13 = vcmp.lt.s32.totalorder %v2883_v62, 3 }
 0x321   :  { %v2730_v44 = vclz %v3414_v45  ;;  %v2907_v6 = vsel %vm2905_vm12, %v2895_v53, 2102212464  ;;  %v2910_v56 = vsel %vm2902_vm15, %v2889_v26, %v2892_v43  ;;  %v2911_v49 = vsel %vm2905_vm12, %v2898_v9, 920167782 }
 0x322   :  { %v2906_v38 = vsel %vm2902_vm15, %v2886_v58, %v2889_v26  ;;  %v2912_v23 = vsel %vm2904_vm13, %v2895_v53, %v2911_v49  ;;  %v2914_v34 = vsel %vm2902_vm15, %v2892_v43, %v2895_v53  ;;  %vm5811_vm4 = vcmp.le.f32.partialorder %v2662_v61, 0.7853982 }
 0x323   :  { %v3415_v25 = vadd.s32 4294967294, %v2730_v44  ;;  %v2908_v24 = vsel %vm2904_vm13, %v2892_v43, %v2907_v6  ;;  %v2913_v13 = vsel %vm2903_vm7, %v2910_v56, %v2912_v23  ;;  %v2915_v2 = vsel %vm2905_vm12, %v2901_v21, 1326507024 }
 0x324   :  { %v3417_v10 = vadd.s32 4294967169, %v2770_v48  ;;  %vm2133_vm0 = vcmp.lt.s32.totalorder %v5801_v14, 2  ;;  %vm5818_vm2 = vcmp.eq.s32.totalorder %v3221_v33, 1  ;;  %v2916_v12 = vsel %vm2904_vm13, %v2898_v9, %v2915_v2 }
 0x325   :  { %vm3416_vm3 = vcmp.lt.s32.totalorder %v3415_v25, 0  ;;  %v5824_v61 = vmul.u32.u64.low %v5804_v16, %v2913_v13  ;;  %v5825_v19 = vmul.u32.u64.high %v5804_v16, %v2913_v13, %v5824_v61  ;;  %vm2134_vm8 = vcmp.eq.s32.totalorder %v5801_v14, 0 }
 0x326   :  { %v2733_v37 = vsel %vm3416_vm3, 0, %v3415_v25  ;;  %v2748_v8 = vsub.s32 4, %v5770_v11  ;;  %v2917_v4 = vsel %vm2903_vm7, %v2914_v34, %v2916_v12  ;;  %v2718_v33 = vadd.s32 %v5728_v29, %v5734_v30 }
 0x327   :  { %v2734_v41 = vsub.s32 32, %v2733_v37  ;;  %v2738_v52 = vsub.s32 4294967266, %v2733_v37  ;;  %v2776_v26 = vadd.s32 1, %v3417_v10  ;;  %v2735_v60 = vshll.u32 %v5787_v1, %v2733_v37 }
 0x328   :  { %v2909_v54 = vsel %vm2903_vm7, %v2906_v38, %v2908_v24  ;;  %v5836_v22 = vmul.u32.u64.low %v5804_v16, %v2917_v4  ;;  %v5837_v3 = vmul.u32.u64.high %v5804_v16, %v2917_v4, %v5836_v22  ;;  %v2928_v9 = vadd.s32 1, %v5825_v19 }
 0x329   :  { %v3800_v43 = vpop.eup %3799  ;;  %v2736_v53 = vshrl.u32 %v2718_v33, %v2734_v41  ;;  %v2739_v5 = vadd.s32 127, %v2738_v52  ;;  %vm2777_vm9 = vcmp.gt.s32.totalorder %v2776_v26, 0  ;;  %vm2137_vm10 = vcmp.eq.s32.totalorder %v5801_v14, 2 }
 0x32a   :  { %v3802_v15 = vpop.eup %3801  ;;  %v2138_v29 = vxor.u32 2147483648, %v3800_v43  ;;  %v2749_v30 = vsel %vm2664_vm1, %v2748_v8, %v5770_v11  ;;  %v2778_v1 = vsel %vm2777_vm9, %v2776_v26, 0  ;;  %v2766_v58 = vand.u32 2147483647, %v5779_v28 }
 0x32b   :  { %v2135_v62 = vxor.u32 2147483648, %v3802_v15  ;;  %v2737_v27 = vor.u32 %v2736_v53, %v2735_v60  ;;  %v2740_v45 = vshll.u32 %v2739_v5, 23  ;;  %v2925_v48 = vmul.u32 %v5804_v16, %v2909_v54 }
 0x32c   :  { %v2139_v21 = vsel %vm2137_vm10, %v2138_v29, %v3802_v15  ;;  %vm2927_vm11 = vc.u32 %v5837_v3, %v5824_v61  ;;  %v2780_v44 = vand.u32 31, %v2778_v1  ;;  %v2751_v11 = vsel %vm5811_vm4, 0, %v2749_v30 }
 0x32d   :  { %v2136_v6 = vsel %vm2134_vm8, %v3800_v43, %v2135_v62  ;;  %v2741_v56 = vor.u32 4788187, %v2740_v45  ;;  %v2929_v49 = vsel %vm2927_vm11, %v2928_v9, %v5825_v19  ;;  %vm2130_vm15 = vweird.f32 %v5527_v20 }
 0x32e   :  { %v2140_v25 = vsel %vm2133_vm0, %v2136_v6, %v2139_v21  ;;  %v2930_v38 = vadd.s32 %v2929_v49, %v2925_v48  ;;  %v2781_v16 = vsub.s32 32, %v2780_v44  ;;  %v2744_v24 = vcvt.s32.f32 %v2737_v27 }
 0x32f   :  { %v2141_v23 = vsel %vm2130_vm15, nan, %v2140_v25  ;;  %v2742_v34 = vand.u32 2147483647, %v2741_v56  ;;  %v2773_v13 = vand.u32 8388607, %v2766_v58  ;;  %v2755_v10 = vadd.s32 3, %v2751_v11 }
 0x330   :  { %v3242_v2 = vsel %vm5818_vm2, %v5527_v20, %v2141_v23  ;;  %v2931_v12 = vadd.s32 536870912, %v2930_v38  ;;  %v2784_v19 = vshrl.u32 %v3934_v32, %v2781_v16  ;;  %v2779_v14 = vshrl.u32 %v2778_v1, 5 }
 0x331   :  { %3260 = vst [vmem:[#allocation8 + $0x38] sm:$0xff] %v3242_v2  ;;  %v2745_v37 = vmul.f32 %v2744_v24, %v2742_v34  ;;  %v2787_v8 = vshrl.u32 %v3935_v36, %v2781_v16  ;;  %v2790_v4 = vshrl.u32 %v3936_v46, %v2781_v16  ;;  %v2783_v41 = vshll.u32 %v3933_v18, %v2780_v44 }
 0x332   :  { %v5864_v33 = vshrl.u32 %v2931_v12, 30  ;;  %v2786_v52 = vshll.u32 %v3934_v32, %v2780_v44  ;;  %v2793_v26 = vshrl.u32 %v3937_v51, %v2781_v16  ;;  %v2789_v60 = vshll.u32 %v3935_v36, %v2780_v44 }
 0x333   :  { %v2746_v20 = vxor.u32 2147483648, %v2745_v37  ;;  %v2792_v54 = vshll.u32 %v3936_v46, %v2780_v44  ;;  %v2796_v22 = vshrl.u32 %v3938_v0, %v2781_v16  ;;  %v2785_v53 = vor.u32 %v2784_v19, %v2783_v41 }
 0x334   :  { %v2933_v43 = vshll.u32 %v5864_v33, 30  ;;  %v2795_v5 = vshll.u32 %v3937_v51, %v2780_v44  ;;  %v2788_v15 = vor.u32 %v2787_v8, %v2786_v52  ;;  %v2791_v29 = vor.u32 %v2790_v4, %v2789_v60 }
 0x335   :  { %v2747_v9 = vsel %vm2664_vm1, %v2746_v20, %v2745_v37  ;;  %v2794_v30 = vor.u32 %v2793_v26, %v2792_v54  ;;  %v5879_v62 = vand.u32 3, %v2755_v10  ;;  %v2774_v21 = vor.u32 8388608, %v2773_v13 }
 0x336   :  { %v2750_v1 = vsel %vm5811_vm4, %v5574_v63, %v2747_v9  ;;  %v5881_v27 = vsub.s32 %v2930_v38, %v2933_v43  ;;  %v2797_v45 = vor.u32 %v2796_v22, %v2795_v5  ;;  %v2782_v48 = vshrl.u32 %v3933_v18, %v2781_v16 }
 0x337   :  { %3803 = vcosq.f32 %v2750_v1  ;;  %vm2798_vm7 = vcmp.lt.s32.totalorder %v2779_v14, 1  ;;  %vm2799_vm1 = vcmp.lt.s32.totalorder %v2779_v14, 2  ;;  %vm2801_vm12 = vcmp.lt.s32.totalorder %v2779_v14, 4 }
 0x338   :  { %3805 = vsinq.f32 %v2750_v1  ;;  %v2936_v44 = vsub.s32 0, %v5881_v27  ;;  %vm2800_vm13 = vcmp.lt.s32.totalorder %v2779_v14, 3  ;;  %v2803_v6 = vsel %vm2801_vm12, %v2791_v29, 2102212464 }
 0x339   :  { %v2806_v35 = vsel %vm2798_vm7, %v2785_v53, %v2788_v15  ;;  %v2807_v56 = vsel %vm2801_vm12, %v2794_v30, 920167782  ;;  %v2810_v25 = vsel %vm2798_vm7, %v2788_v15, %v2791_v29  ;;  %v2811_v38 = vsel %vm2801_vm12, %v2797_v45, 1326507024 }
 0x33a   :  { %v3422_v11 = vmin.u32 %v2936_v44, %v5881_v27  ;;  %v2808_v49 = vsel %vm2800_vm13, %v2791_v29, %v2807_v56  ;;  %v2812_v16 = vsel %vm2800_vm13, %v2794_v30, %v2811_v38  ;;  %v2814_v34 = vshll.u32 %v2774_v21, 8 }
 0x33b   :  { %v2809_v23 = vsel %vm2799_vm1, %v2806_v35, %v2808_v49  ;;  %v2977_v24 = vand.u32 2139095040, %v5774_v59  ;;  %v2956_v2 = vsub.s32 4, %v5864_v33  ;;  %v2802_v10 = vsel %vm2798_vm7, %v2782_v48, %v2785_v53 }
 0x33c   :  { %v2938_v13 = vclz %v3422_v11  ;;  %v2804_v12 = vsel %vm2800_vm13, %v2788_v15, %v2803_v6  ;;  %v2813_v19 = vsel %vm2799_vm1, %v2810_v25, %v2812_v16  ;;  %vm2754_vm4 = vweird.f32 %v5574_v63 }
 0x33d   :  { %v5893_v37 = vmul.u32.u64.low %v2814_v34, %v2809_v23  ;;  %v5894_v8 = vmul.u32.u64.high %v2814_v34, %v2809_v23, %v5893_v37  ;;  %v2978_v4 = vshrl.u32 %v2977_v24, 23  ;;  %vm2872_vm0 = vcmp.lt.s32.totalorder %v5665_v47, 0  ;;  %v1179_v23 = vld [vmem:[#allocation7 + $0x21] ss:$4 sm:$0x1] }
 0x33e   :  { %v3423_v41 = vadd.s32 4294967294, %v2938_v13  ;;  %v5899_v52 = vmul.u32.u64.low %v2814_v34, %v2813_v19  ;;  %v5900_v26 = vmul.u32.u64.high %v2814_v34, %v2813_v19, %v5899_v52  ;;  %vm2757_vm3 = vcmp.lt.s32.totalorder %v5879_v62, 2 }
 0x33f   :  { %vm2758_vm8 = vcmp.eq.s32.totalorder %v5879_v62, 0  ;;  %v2805_v20 = vsel %vm2799_vm1, %v2802_v10, %v2804_v12  ;;  %v3425_v60 = vadd.s32 4294967169, %v2978_v4  ;;  %vm2761_vm9 = vcmp.eq.s32.totalorder %v5879_v62, 2 }
 0x340   :  { %v2926_v54 = vadd.s32 %v5824_v61, %v5837_v3  ;;  %vm3424_vm10 = vcmp.lt.s32.totalorder %v3423_v41, 0  ;;  %v2974_v22 = vand.u32 2147483647, %v5774_v59  ;;  %v2957_v5 = vsel %vm2872_vm0, %v2956_v2, %v5864_v33  ;;  %v1175_v3 = vld [vmem:[#allocation7 + $0x20] ss:$4 sm:$0x1] }
 0x341   :  { %v3804_v43 = vpop.eup %3803  ;;  %v2941_v53 = vsel %vm3424_vm10, 0, %v3423_v41  ;;  %v2824_v9 = vadd.s32 1, %v5894_v8  ;;  %v2984_v15 = vadd.s32 1, %v3425_v60  ;;  %v2821_v45 = vmul.u32 %v2814_v34, %v2805_v20 }
 0x342   :  { %v3806_v14 = vpop.eup %3805  ;;  %v2762_v29 = vxor.u32 2147483648, %v3804_v43  ;;  %v2942_v30 = vsub.s32 32, %v2941_v53  ;;  %v2946_v1 = vsub.s32 4294967266, %v2941_v53  ;;  %v2943_v61 = vshll.u32 %v5881_v27, %v2941_v53 }
 0x343   :  { %v2759_v21 = vxor.u32 2147483648, %v3806_v14  ;;  %vm2823_vm11 = vc.u32 %v5900_v26, %v5893_v37  ;;  %vm2985_vm15 = vcmp.gt.s32.totalorder %v2984_v15, 0  ;;  %v2981_v11 = vand.u32 8388607, %v2974_v22 }
 0x344   :  { %v2763_v48 = vsel %vm2761_vm9, %v2762_v29, %v3806_v14  ;;  %v2944_v33 = vshrl.u32 %v2926_v54, %v2942_v30  ;;  %v2947_v44 = vadd.s32 127, %v2946_v1  ;;  %v2825_v6 = vsel %vm2823_vm11, %v2824_v9, %v5894_v8 }
 0x345   :  { %v2760_v35 = vsel %vm2758_vm8, %v3804_v43, %v2759_v21  ;;  %v2826_v56 = vadd.s32 %v2825_v6, %v2821_v45  ;;  %v2986_v27 = vsel %vm2985_vm15, %v2984_v15, 0  ;;  %v5926_v16 = vrot.slane %v1175_v3, %v4439_v17 }
 0x346   :  { %v2764_v49 = vsel %vm2757_vm3, %v2760_v35, %v2763_v48  ;;  %v2945_v25 = vor.u32 %v2944_v33, %v2943_v61  ;;  %v2948_v38 = vshll.u32 %v2947_v44, 23  ;;  %vm5932_vm7 = vcmp.le.f32.partialorder %v2870_v7, 0.7853982 }
 0x347   :  { %v2765_v34 = vsel %vm2754_vm4, nan, %v2764_v49  ;;  %v2827_v13 = vadd.s32 536870912, %v2826_v56  ;;  %v2988_v2 = vand.u32 31, %v2986_v27  ;;  %v2959_v12 = vsel %vm5932_vm7, 0, %v2957_v5 }
 0x348   :  { %v3248_v62 = vsel %vm5521_vm5, %v5574_v63, %v2765_v34  ;;  %v2949_v10 = vor.u32 4788187, %v2948_v38  ;;  %v2982_v8 = vor.u32 8388608, %v2981_v11  ;;  %v5944_v7 = vrot.slane %v1179_v23, %v4439_v17 }
 0x349   :  { %3266 = vst [vmem:[#allocation8 + $0x68] sm:$0x3] %v3248_v62  ;;  %v5941_v19 = vshrl.u32 %v2827_v13, 30  ;;  %v2989_v4 = vsub.s32 32, %v2988_v2  ;;  %v2952_v52 = vcvt.s32.f32 %v2945_v25  ;;  %v5946_v20 = vshrl.u32 %v2986_v27, 5 }
 0x34a   :  { %v2950_v41 = vand.u32 2147483647, %v2949_v10  ;;  %v1235_v31 = vmul.f32 %v5926_v16, %v5545_v42  ;;  %v2991_v60 = vshll.u32 %v3933_v18, %v2988_v2  ;;  %v2994_v43 = vshll.u32 %v3934_v32, %v2988_v2 }
 0x34b   :  { %v2829_v63 = vshll.u32 %v5941_v19, 30  ;;  %v2992_v54 = vshrl.u32 %v3934_v32, %v2989_v4  ;;  %v2995_v5 = vshrl.u32 %v3935_v36, %v2989_v4  ;;  %v2998_v9 = vshrl.u32 %v3936_v46, %v2989_v4 }
 0x34c   :  { %v2953_v53 = vmul.f32 %v2952_v52, %v2950_v41  ;;  %v3001_v15 = vshrl.u32 %v3937_v51, %v2989_v4  ;;  %v2997_v29 = vshll.u32 %v3935_v36, %v2988_v2  ;;  %v3000_v42 = vshll.u32 %v3936_v46, %v2988_v2 }
 0x34d   :  { %v5957_v14 = vsub.s32 %v2826_v56, %v2829_v63  ;;  %v3004_v30 = vshrl.u32 %v3938_v0, %v2989_v4  ;;  %v2963_v45 = vadd.s32 3, %v2959_v12  ;;  %v2993_v21 = vor.u32 %v2992_v54, %v2991_v60 }
 0x34e   :  { %v2954_v1 = vxor.u32 2147483648, %v2953_v53  ;;  %v2996_v61 = vor.u32 %v2995_v5, %v2994_v43  ;;  %v2999_v48 = vor.u32 %v2998_v9, %v2997_v29  ;;  %v3002_v33 = vor.u32 %v3001_v15, %v3000_v42 }
 0x34f   :  { %v2832_v3 = vsub.s32 0, %v5957_v14  ;;  %v3003_v44 = vshll.u32 %v3937_v51, %v2988_v2  ;;  %vm2768_vm5 = vcmp.lt.s32.totalorder %v5779_v28, 0  ;;  %vm3006_vm1 = vcmp.lt.s32.totalorder %v5946_v20, 1 }
 0x350   :  { %v2955_v6 = vsel %vm2872_vm0, %v2954_v1, %v2953_v53  ;;  %v3022_v35 = vshll.u32 %v2982_v8, 8  ;;  %v5969_v56 = vadd.f32 %v5944_v7, %v1235_v31  ;;  %vm3009_vm12 = vcmp.lt.s32.totalorder %v5946_v20, 4 }
 0x351   :  { %v2958_v11 = vsel %vm5932_vm7, %v5665_v47, %v2955_v6  ;;  %v3418_v27 = vmin.u32 %v2832_v3, %v5957_v14  ;;  %v3005_v49 = vor.u32 %v3004_v30, %v3003_v44  ;;  %v2990_v25 = vshrl.u32 %v3933_v18, %v2989_v4 }
 0x352   :  { %3807 = vcosq.f32 %v2958_v11  ;;  %v3014_v38 = vsel %vm3006_vm1, %v2993_v21, %v2996_v61  ;;  %v3015_v23 = vsel %vm3009_vm12, %v3002_v33, 920167782  ;;  %vm3008_vm13 = vcmp.lt.s32.totalorder %v5946_v20, 3 }
 0x353   :  { %3809 = vsinq.f32 %v2958_v11  ;;  %v2834_v34 = vclz %v3418_v27  ;;  %v3011_v24 = vsel %vm3009_vm12, %v2999_v48, 2102212464  ;;  %v2852_v13 = vsub.s32 4, %v5941_v19 }
 0x354   :  { %vm3007_vm4 = vcmp.lt.s32.totalorder %v5946_v20, 2  ;;  %v3016_v2 = vsel %vm3008_vm13, %v2999_v48, %v3015_v23  ;;  %v3018_v62 = vsel %vm3006_vm1, %v2996_v61, %v2999_v48  ;;  %v3010_v12 = vsel %vm3006_vm1, %v2990_v25, %v2993_v21 }
 0x355   :  { %v3419_v10 = vadd.s32 4294967294, %v2834_v34  ;;  %v3017_v8 = vsel %vm3007_vm4, %v3014_v38, %v3016_v2  ;;  %v3019_v4 = vsel %vm3009_vm12, %v3005_v49, 1326507024  ;;  %v3012_v41 = vsel %vm3008_vm13, %v2996_v61, %v3011_v24 }
 0x356   :  { %v3020_v52 = vsel %vm3008_vm13, %v3002_v33, %v3019_v4  ;;  %v5994_v31 = vmul.u32.u64.low %v3022_v35, %v3017_v8  ;;  %v5995_v63 = vmul.u32.u64.high %v3022_v35, %v3017_v8, %v5994_v31  ;;  %v2964_v60 = vand.u32 3, %v2963_v45 }
 0x357   :  { %v2822_v54 = vadd.s32 %v5893_v37, %v5900_v26  ;;  %vm3420_vm0 = vcmp.lt.s32.totalorder %v3419_v10, 0  ;;  %v3021_v43 = vsel %vm3007_vm4, %v3018_v62, %v3020_v52  ;;  %v2145_v15 = vand.u32 2139095040, %v5969_v56 }
 0x358   :  { %v2837_v53 = vsel %vm3420_vm0, 0, %v3419_v10  ;;  %v6002_v5 = vmul.u32.u64.low %v3022_v35, %v3021_v43  ;;  %v6003_v9 = vmul.u32.u64.high %v3022_v35, %v3021_v43, %v6002_v5  ;;  %v2853_v30 = vsel %vm2768_vm5, %v2852_v13, %v5941_v19 }
 0x359   :  { %v2838_v29 = vsub.s32 32, %v2837_v53  ;;  %v2842_v42 = vsub.s32 4294967266, %v2837_v53  ;;  %v3013_v1 = vsel %vm3007_vm4, %v3010_v12, %v3012_v41  ;;  %vm2962_vm3 = vweird.f32 %v5665_v47 }
 0x35a   :  { %vm6014_vm8 = vcmp.le.f32.partialorder %v2766_v58, 0.7853982  ;;  %v3032_v26 = vadd.s32 1, %v5995_v63  ;;  %v2146_v45 = vshrl.u32 %v2145_v15, 23  ;;  %vm2969_vm9 = vcmp.eq.s32.totalorder %v2964_v60, 2 }
 0x35b   :  { %v2839_v21 = vshll.u32 %v5957_v14, %v2837_v53  ;;  %v2840_v61 = vshrl.u32 %v2822_v54, %v2838_v29  ;;  %v2843_v3 = vadd.s32 127, %v2842_v42  ;;  %v2855_v20 = vsel %vm6014_vm8, 0, %v2853_v30 }
 0x35c   :  { %v3808_v19 = vpop.eup %3807  ;;  %v3029_v48 = vmul.u32 %v3022_v35, %v3013_v1  ;;  %vm3031_vm10 = vc.u32 %v6003_v9, %v5994_v31  ;;  %v3393_v58 = vadd.s32 4294967169, %v2146_v45  ;;  %v2142_v14 = vand.u32 2147483647, %v5969_v56 }
 0x35d   :  { %v3810_v33 = vpop.eup %3809  ;;  %v2970_v44 = vxor.u32 2147483648, %v3808_v19  ;;  %v2841_v6 = vor.u32 %v2840_v61, %v2839_v21  ;;  %v2844_v11 = vshll.u32 %v2843_v3, 23  ;;  %v3033_v27 = vsel %vm3031_vm10, %v3032_v26, %v5995_v63 }
 0x35e   :  { %v2967_v49 = vxor.u32 2147483648, %v3810_v33  ;;  %v3034_v25 = vadd.s32 %v3033_v27, %v3029_v48  ;;  %v2152_v38 = vadd.s32 1, %v3393_v58  ;;  %vm2965_vm11 = vcmp.lt.s32.totalorder %v2964_v60, 2 }
 0x35f   :  { %vm2966_vm15 = vcmp.eq.s32.totalorder %v2964_v60, 0  ;;  %v2971_v23 = vsel %vm2969_vm9, %v2970_v44, %v3810_v33  ;;  %v2845_v35 = vor.u32 4788187, %v2844_v11  ;;  %v2859_v24 = vadd.s32 3, %v2855_v20 }
 0x360   :  { %v2968_v34 = vsel %vm2966_vm15, %v3808_v19, %v2967_v49  ;;  %v3035_v13 = vadd.s32 536870912, %v3034_v25  ;;  %vm2153_vm7 = vcmp.gt.s32.totalorder %v2152_v38, 0  ;;  %v2848_v10 = vcvt.s32.f32 %v2841_v6 }
 0x361   :  { %v2972_v2 = vsel %vm2965_vm11, %v2968_v34, %v2971_v23  ;;  %v2846_v62 = vand.u32 2147483647, %v2845_v35  ;;  %v2154_v12 = vsel %vm2153_vm7, %v2152_v38, 0  ;;  %v2149_v41 = vand.u32 8388607, %v2142_v14 }
 0x362   :  { %v2973_v8 = vsel %vm2962_vm3, nan, %v2972_v2  ;;  %v6029_v4 = vshrl.u32 %v3035_v13, 30  ;;  %v2156_v52 = vand.u32 31, %v2154_v12  ;;  %v6037_v5 = vand.u32 3, %v2859_v24 }
 0x363   :  { %v3250_v63 = vsel %vm5612_vm14, %v5665_v47, %v2973_v8  ;;  %v2849_v60 = vmul.f32 %v2848_v10, %v2846_v62  ;;  %v1244_v15 = vmul.f32 %v5926_v16, %v5553_v57  ;;  %v2150_v42 = vor.u32 8388608, %v2149_v41 }
 0x364   :  { %3268 = vst [vmem:[#allocation8 + $0x78] sm:$0x3] %v3250_v63  ;;  %v3037_v54 = vshll.u32 %v6029_v4, 30  ;;  %v2157_v43 = vsub.s32 32, %v2156_v52  ;;  %v2155_v30 = vshrl.u32 %v2154_v12, 5  ;;  %v2159_v47 = vshll.u32 %v3933_v18, %v2156_v52 }
 0x365   :  { %v2850_v53 = vxor.u32 2147483648, %v2849_v60  ;;  %v2162_v16 = vshll.u32 %v3934_v32, %v2156_v52  ;;  %v2165_v61 = vshll.u32 %v3935_v36, %v2156_v52  ;;  %v2168_v19 = vshll.u32 %v3936_v46, %v2156_v52 }
 0x366   :  { %v6041_v29 = vsub.s32 %v3034_v25, %v3037_v54  ;;  %v2160_v1 = vshrl.u32 %v3934_v32, %v2157_v43  ;;  %v2163_v26 = vshrl.u32 %v3935_v36, %v2157_v43  ;;  %v2166_v45 = vshrl.u32 %v3936_v46, %v2157_v43 }
 0x367   :  { %v2851_v55 = vsel %vm2768_vm5, %v2850_v53, %v2849_v60  ;;  %v2169_v20 = vshrl.u32 %v3937_v51, %v2157_v43  ;;  %v2171_v37 = vshll.u32 %v3937_v51, %v2156_v52  ;;  %v2172_v6 = vshrl.u32 %v3938_v0, %v2157_v43 }
 0x368   :  { %v2854_v21 = vsel %vm6014_vm8, %v5779_v28, %v2851_v55  ;;  %v3040_v57 = vsub.s32 0, %v6041_v29  ;;  %v2161_v3 = vor.u32 %v2160_v1, %v2159_v47  ;;  %v2164_v58 = vor.u32 %v2163_v26, %v2162_v16 }
 0x369   :  { %3811 = vcosq.f32 %v2854_v21  ;;  %v2167_v33 = vor.u32 %v2166_v45, %v2165_v61  ;;  %v2170_v44 = vor.u32 %v2169_v20, %v2168_v19  ;;  %v6060_v11 = vshll.u32 %v2150_v42, 8 }
 0x36a   :  { %3813 = vsinq.f32 %v2854_v21  ;;  %v3426_v48 = vmin.u32 %v3040_v57, %v6041_v29  ;;  %v2158_v49 = vshrl.u32 %v3933_v18, %v2157_v43  ;;  %vm2174_vm14 = vcmp.lt.s32.totalorder %v2155_v30, 1 }
 0x36b   :  { %v6064_v25 = vadd.f32 %v5944_v7, %v1244_v15  ;;  %vm2976_vm5 = vcmp.lt.s32.totalorder %v5774_v59, 0  ;;  %v2173_v38 = vor.u32 %v2172_v6, %v2171_v37  ;;  %vm2175_vm1 = vcmp.lt.s32.totalorder %v2155_v30, 2 }
 0x36c   :  { %v3042_v27 = vclz %v3426_v48  ;;  %vm2176_vm12 = vcmp.lt.s32.totalorder %v2155_v30, 3  ;;  %vm2177_vm13 = vcmp.lt.s32.totalorder %v2155_v30, 4  ;;  %vm2862_vm4 = vcmp.eq.s32.totalorder %v6037_v5, 0 }
 0x36d   :  { %v2179_v35 = vsel %vm2177_vm13, %v2167_v33, 2102212464  ;;  %v2182_v34 = vsel %vm2174_vm14, %v2161_v3, %v2164_v58  ;;  %v2183_v24 = vsel %vm2177_vm13, %v2170_v44, 920167782  ;;  %vm2861_vm0 = vcmp.lt.s32.totalorder %v6037_v5, 2 }
 0x36e   :  { %v3427_v23 = vadd.s32 4294967294, %v3042_v27  ;;  %v2178_v13 = vsel %vm2174_vm14, %v2158_v49, %v2161_v3  ;;  %v2184_v2 = vsel %vm2176_vm12, %v2167_v33, %v2183_v24  ;;  %v2186_v62 = vsel %vm2174_vm14, %v2164_v58, %v2167_v33 }
 0x36f   :  { %v2187_v7 = vsel %vm2177_vm13, %v2173_v38, 1326507024  ;;  %vm2858_vm3 = vweird.f32 %v5779_v28  ;;  %vm6073_vm8 = vcmp.le.f32.partialorder %v2974_v22, 0.7853982  ;;  %v2180_v12 = vsel %vm2176_vm12, %v2164_v58, %v2179_v35 }
 0x370   :  { %vm3428_vm9 = vcmp.lt.s32.totalorder %v3427_v23, 0  ;;  %v2185_v8 = vsel %vm2175_vm1, %v2182_v34, %v2184_v2  ;;  %v2188_v41 = vsel %vm2176_vm12, %v2170_v44, %v2187_v7  ;;  %v3030_v22 = vadd.s32 %v5994_v31, %v6003_v9 }
 0x371   :  { %v3045_v52 = vsel %vm3428_vm9, 0, %v3427_v23  ;;  %v2189_v63 = vsel %vm2175_vm1, %v2186_v62, %v2188_v41  ;;  %v6082_v60 = vmul.u32.u64.low %v6060_v11, %v2185_v8  ;;  %v6083_v54 = vmul.u32.u64.high %v6060_v11, %v2185_v8, %v6082_v60 }
 0x372   :  { %v3046_v43 = vsub.s32 32, %v3045_v52  ;;  %v3050_v53 = vsub.s32 4294967266, %v3045_v52  ;;  %v3060_v15 = vsub.s32 4, %v6029_v4  ;;  %v2181_v1 = vsel %vm2175_vm1, %v2178_v13, %v2180_v12 }
 0x373   :  { %v3812_v42 = vpop.eup %3811  ;;  %v6091_v55 = vmul.u32.u64.low %v6060_v11, %v2189_v63  ;;  %v6092_v47 = vmul.u32.u64.high %v6060_v11, %v2189_v63, %v6091_v55  ;;  %v3081_v26 = vand.u32 2139095040, %v6064_v25  ;;  %v3047_v57 = vshll.u32 %v6041_v29, %v3045_v52 }
 0x374   :  { %v3814_v45 = vpop.eup %3813  ;;  %v2866_v21 = vxor.u32 2147483648, %v3812_v42  ;;  %v3048_v16 = vshrl.u32 %v3030_v22, %v3046_v43  ;;  %v3051_v61 = vadd.s32 127, %v3050_v53  ;;  %vm2865_vm10 = vcmp.eq.s32.totalorder %v6037_v5, 2 }
 0x375   :  { %v2863_v31 = vxor.u32 2147483648, %v3814_v45  ;;  %v2200_v9 = vadd.s32 1, %v6083_v54  ;;  %v3082_v3 = vshrl.u32 %v3081_v26, 23  ;;  %v3061_v48 = vsel %vm2976_vm5, %v3060_v15, %v6029_v4 }
 0x376   :  { %v2867_v30 = vsel %vm2865_vm10, %v2866_v21, %v3814_v45  ;;  %v3049_v19 = vor.u32 %v3048_v16, %v3047_v57  ;;  %v3052_v20 = vshll.u32 %v3051_v61, 23  ;;  %v2197_v29 = vmul.u32 %v6060_v11, %v2181_v1 }
 0x377   :  { %v2864_v58 = vsel %vm2862_vm4, %v3812_v42, %v2863_v31  ;;  %vm2199_vm11 = vc.u32 %v6092_v47, %v6082_v60  ;;  %v3429_v33 = vadd.s32 4294967169, %v3082_v3  ;;  %v3078_v27 = vand.u32 2147483647, %v6064_v25 }
 0x378   :  { %v2868_v44 = vsel %vm2861_vm0, %v2864_v58, %v2867_v30  ;;  %v3053_v37 = vor.u32 4788187, %v3052_v20  ;;  %v2201_v6 = vsel %vm2199_vm11, %v2200_v9, %v6083_v54  ;;  %v3063_v49 = vsel %vm6073_vm8, 0, %v3061_v48 }
 0x379   :  { %v2869_v4 = vsel %vm2858_vm3, nan, %v2868_v44  ;;  %v2202_v38 = vadd.s32 %v2201_v6, %v2197_v29  ;;  %v3088_v11 = vadd.s32 1, %v3429_v33  ;;  %v3056_v5 = vcvt.s32.f32 %v3049_v19 }
 0x37a   :  { %v3249_v23 = vsel %vm5704_vm6, %v5779_v28, %v2869_v4  ;;  %v3054_v35 = vand.u32 2147483647, %v3053_v37  ;;  %v3067_v13 = vadd.s32 3, %v3063_v49  ;;  %v3085_v2 = vand.u32 8388607, %v3078_v27 }
 0x37b   :  { %3267 = vst [vmem:[#allocation8 + $0x70] sm:$0x3] %v3249_v23  ;;  %v2203_v34 = vadd.s32 536870912, %v2202_v38  ;;  %vm3089_vm15 = vcmp.gt.s32.totalorder %v3088_v11, 0  ;;  %vm3066_vm0 = vweird.f32 %v5774_v59  ;;  %vm2143_vm9 = vcmp.le.f32.partialorder %v2142_v14, 0.7853982 }
 0x37c   :  { %v3057_v24 = vmul.f32 %v3056_v5, %v3054_v35  ;;  %v3090_v62 = vsel %vm3089_vm15, %v3088_v11, 0  ;;  %v6124_v28 = vand.u32 3, %v3067_v13  ;;  %v3086_v63 = vor.u32 8388608, %v3085_v2 }
 0x37d   :  { %v6119_v7 = vshrl.u32 %v2203_v34, 30  ;;  %v3092_v12 = vand.u32 31, %v3090_v62  ;;  %v3091_v43 = vshrl.u32 %v3090_v62, 5  ;;  %v2198_v34 = vadd.s32 %v6082_v60, %v6092_v47 }
 0x37e   :  { %v3058_v8 = vxor.u32 2147483648, %v3057_v24  ;;  %vm3073_vm6 = vcmp.eq.s32.totalorder %v6124_v28, 2  ;;  %vm3070_vm7 = vcmp.eq.s32.totalorder %v6124_v28, 0  ;;  %v3126_v19 = vshll.u32 %v3086_v63, 8 }
 0x37f   :  { %v2205_v41 = vshll.u32 %v6119_v7, 30  ;;  %v3093_v52 = vsub.s32 32, %v3092_v12  ;;  %v3095_v53 = vshll.u32 %v3933_v18, %v3092_v12  ;;  %v3098_v42 = vshll.u32 %v3934_v32, %v3092_v12 }
 0x380   :  { %v3059_v50 = vsel %vm2976_vm5, %v3058_v8, %v3057_v24  ;;  %v3101_v26 = vshll.u32 %v3935_v36, %v3092_v12  ;;  %v3104_v57 = vshll.u32 %v3936_v46, %v3092_v12  ;;  %v3107_v3 = vshll.u32 %v3937_v51, %v3092_v12 }
 0x381   :  { %v3062_v54 = vsel %vm6073_vm8, %v5774_v59, %v3059_v50  ;;  %v6129_v22 = vsub.s32 %v2202_v38, %v2205_v41  ;;  %v3096_v15 = vshrl.u32 %v3934_v32, %v3093_v52  ;;  %v3099_v1 = vshrl.u32 %v3935_v36, %v3093_v52 }
 0x382   :  { %3815 = vcosq.f32 %v3062_v54  ;;  %v3102_v10 = vshrl.u32 %v3936_v46, %v3093_v52  ;;  %v3105_v16 = vshrl.u32 %v3937_v51, %v3093_v52  ;;  %v3108_v32 = vshrl.u32 %v3938_v0, %v3093_v52 }
 0x383   :  { %3817 = vsinq.f32 %v3062_v54  ;;  %v2208_v55 = vsub.s32 0, %v6129_v22  ;;  %v3097_v45 = vor.u32 %v3096_v15, %v3095_v53  ;;  %v3100_v21 = vor.u32 %v3099_v1, %v3098_v42 }
 0x384   :  { %v3103_v31 = vor.u32 %v3102_v10, %v3101_v26  ;;  %v3106_v9 = vor.u32 %v3105_v16, %v3104_v57  ;;  %v3094_v30 = vshrl.u32 %v3933_v18, %v3093_v52  ;;  %vm3110_vm14 = vcmp.lt.s32.totalorder %v3091_v43, 1 }
 0x385   :  { %v3394_v61 = vmin.u32 %v2208_v55, %v6129_v22  ;;  %v3109_v46 = vor.u32 %v3108_v32, %v3107_v3  ;;  %vm3112_vm5 = vcmp.lt.s32.totalorder %v3091_v43, 3  ;;  %vm3113_vm1 = vcmp.lt.s32.totalorder %v3091_v43, 4 }
 0x386   :  { %v3118_v20 = vsel %vm3110_vm14, %v3097_v45, %v3100_v21  ;;  %v3115_v58 = vsel %vm3113_vm1, %v3103_v31, 2102212464  ;;  %v3119_v29 = vsel %vm3113_vm1, %v3106_v9, 920167782  ;;  %v3122_v0 = vsel %vm3110_vm14, %v3100_v21, %v3103_v31 }
 0x387   :  { %v2210_v36 = vclz %v3394_v61  ;;  %vm3111_vm12 = vcmp.lt.s32.totalorder %v3091_v43, 2  ;;  %v3114_v33 = vsel %vm3110_vm14, %v3094_v30, %v3097_v45  ;;  %v3120_v44 = vsel %vm3112_vm5, %v3103_v31, %v3119_v29 }
 0x388   :  { %v3123_v37 = vsel %vm3113_vm1, %v3109_v46, 1326507024  ;;  %v3116_v51 = vsel %vm3112_vm5, %v3100_v21, %v3115_v58  ;;  %v3121_v6 = vsel %vm3111_vm12, %v3118_v20, %v3120_v44  ;;  %vm3069_vm4 = vcmp.lt.s32.totalorder %v6124_v28, 2 }
 0x389   :  { %v3395_v48 = vadd.s32 4294967294, %v2210_v36  ;;  %v3124_v4 = vsel %vm3112_vm5, %v3106_v9, %v3123_v37  ;;  %v6148_v11 = vmul.u32.u64.low %v3126_v19, %v3121_v6  ;;  %v6149_v23 = vmul.u32.u64.high %v3126_v19, %v3121_v6, %v6148_v11  ;;  %v3185_v36 = vld [vmem:[#allocation7 + $0x22] ss:$4 sm:$0x1] }
 0x38a   :  { %v3125_v38 = vsel %vm3111_vm12, %v3122_v0, %v3124_v4  ;;  %v3117_v62 = vsel %vm3111_vm12, %v3114_v33, %v3116_v51  ;;  %v2228_v57 = vsub.s32 4, %v6119_v7  ;;  %vm2144_vm8 = vcmp.lt.s32.totalorder %v5969_v56, 0 }
 0x38b   :  { %vm3396_vm13 = vcmp.lt.s32.totalorder %v3395_v48, 0  ;;  %v6154_v12 = vmul.u32.u64.low %v3126_v19, %v3125_v38  ;;  %v6155_v8 = vmul.u32.u64.high %v3126_v19, %v3125_v38, %v6154_v12  ;;  %v3136_v47 = vadd.s32 1, %v6149_v23 }
 0x38c   :  { %v3816_v18 = vpop.eup %3815  ;;  %v2213_v49 = vsel %vm3396_vm13, 0, %v3395_v48  ;;  %v3133_v42 = vmul.u32 %v3126_v19, %v3117_v62  ;;  %v2229_v40 = vsel %vm2144_vm8, %v2228_v57, %v6119_v7  ;;  %vm2234_vm14 = vweird.f32 %v5969_v56 }
 0x38d   :  { %v3818_v35 = vpop.eup %3817  ;;  %v3074_v5 = vxor.u32 2147483648, %v3816_v18  ;;  %v2214_v24 = vsub.s32 32, %v2213_v49  ;;  %v2218_v13 = vsub.s32 4294967266, %v2213_v49  ;;  %v2215_v52 = vshll.u32 %v6129_v22, %v2213_v49 }
 0x38e   :  { %v3071_v2 = vxor.u32 2147483648, %v3818_v35  ;;  %vm3135_vm3 = vc.u32 %v6155_v8, %v6148_v11  ;;  %v2231_v3 = vsel %vm2143_vm9, 0, %v2229_v40  ;;  %v3134_v37 = vadd.s32 %v6148_v11, %v6155_v8 }
 0x38f   :  { %v3075_v41 = vsel %vm3073_vm6, %v3074_v5, %v3818_v35  ;;  %v2216_v50 = vshrl.u32 %v2198_v34, %v2214_v24  ;;  %v2219_v63 = vadd.s32 127, %v2218_v13  ;;  %v3137_v55 = vsel %vm3135_vm3, %v3136_v47, %v6149_v23 }
 0x390   :  { %v3072_v60 = vsel %vm3070_vm7, %v3816_v18, %v3071_v2  ;;  %v3138_v28 = vadd.s32 %v3137_v55, %v3133_v42  ;;  %v2235_v46 = vadd.s32 3, %v2231_v3  ;;  %vm3080_vm5 = vcmp.lt.s32.totalorder %v6064_v25, 0 }
 0x391   :  { %v3076_v54 = vsel %vm3069_vm4, %v3072_v60, %v3075_v41  ;;  %v2217_v43 = vor.u32 %v2216_v50, %v2215_v52  ;;  %v2220_v53 = vshll.u32 %v2219_v63, 23  ;;  %vm3079_vm1 = vcmp.le.f32.partialorder %v3078_v27, 0.7853982 }
 0x392   :  { %v3077_v15 = vsel %vm3066_vm0, nan, %v3076_v54  ;;  %v3139_v45 = vadd.s32 536870912, %v3138_v28  ;;  %v2236_v29 = vand.u32 3, %v2235_v46  ;;  %vm3170_vm0 = vweird.f32 %v6064_v25 }
 0x393   :  { %v3251_v22 = vsel %vm5818_vm2, %v5774_v59, %v3077_v15  ;;  %v2221_v1 = vor.u32 4788187, %v2220_v53  ;;  %v2224_v10 = vcvt.s32.f32 %v2217_v43  ;;  %vm3187_vm2 = vcmp.gt.f32.partialorder %v3185_v36, 0.5 }
 0x394   :  { %3269 = vst [vmem:[#allocation8 + $0x80] sm:$0x3] %v3251_v22  ;;  %v3140_v16 = vshrl.u32 %v3139_v45, 30  ;;  %v3189_v48 = vsel %vm3187_vm2, 1, %v6253_v39  ;;  %vm2238_vm11 = vcmp.eq.s32.totalorder %v2236_v29, 0  ;;  %vm2241_vm15 = vcmp.eq.s32.totalorder %v2236_v29, 2 }
 0x395   :  { %v2222_v26 = vand.u32 2147483647, %v2221_v1  ;;  %v3225_v7 = vrot.slane %v3189_v48, %v4439_v17  ;;  %vm2237_vm6 = vcmp.lt.s32.totalorder %v2236_v29, 2 }
 0x396   :  { %v3141_v31 = vshll.u32 %v3140_v16, 30  ;;  %v3164_v8 = vsub.s32 4, %v3140_v16 }
 0x397   :  { %v2225_v21 = vmul.f32 %v2224_v10, %v2222_v26  ;;  %vm6179_vm7 = vcmp.eq.s32.totalorder %v3225_v7, 1 }
 0x398   :  { %v3142_v9 = vsub.s32 %v3138_v28, %v3141_v31  ;;  %v3165_v50 = vsel %vm3080_vm5, %v3164_v8, %v3140_v16 }
 0x399   :  { %v2226_v61 = vxor.u32 2147483648, %v2225_v21  ;;  %v3167_v60 = vsel %vm3079_vm1, 0, %v3165_v50 }
 0x39a   :  { %v3144_v30 = vsub.s32 0, %v3142_v9 }
 0x39b   :  { %v2227_v59 = vsel %vm2144_vm8, %v2226_v61, %v2225_v21 }
 0x39c   :  { %v2230_v32 = vsel %vm2143_vm9, %v5969_v56, %v2227_v59  ;;  %v3430_v19 = vmin.u32 %v3144_v30, %v3142_v9 }
 0x39d   :  { %3819 = vcosq.f32 %v2230_v32 }
 0x39e   :  { %3821 = vsinq.f32 %v2230_v32  ;;  %v3146_v20 = vclz %v3430_v19 }
 0x3a0   :  { %v3431_v58 = vadd.s32 4294967294, %v3146_v20 }
 0x3a2   :  { %vm3432_vm10 = vcmp.lt.s32.totalorder %v3431_v58, 0 }
 0x3a3   :  { %v3149_v0 = vsel %vm3432_vm10, 0, %v3431_v58 }
 0x3a4   :  { %v3150_v51 = vsub.s32 32, %v3149_v0  ;;  %v3154_v6 = vsub.s32 4294967266, %v3149_v0  ;;  %v3151_v49 = vshll.u32 %v3142_v9, %v3149_v0 }
 0x3a6   :  { %v3152_v38 = vshrl.u32 %v3134_v37, %v3150_v51  ;;  %v3155_v39 = vadd.s32 127, %v3154_v6 }
 0x3a7   :  { %v3820_v14 = vpop.eup %3819 }
 0x3a8   :  { %v3822_v33 = vpop.eup %3821  ;;  %v2242_v44 = vxor.u32 2147483648, %v3820_v14  ;;  %v3153_v5 = vor.u32 %v3152_v38, %v3151_v49  ;;  %v3156_v11 = vshll.u32 %v3155_v39, 23 }
 0x3a9   :  { %v2239_v4 = vxor.u32 2147483648, %v3822_v33 }
 0x3aa   :  { %v2243_v18 = vsel %vm2241_vm15, %v2242_v44, %v3822_v33  ;;  %v3157_v13 = vor.u32 4788187, %v3156_v11  ;;  %v3160_v62 = vcvt.s32.f32 %v3153_v5 }
 0x3ab   :  { %v2240_v23 = vsel %vm2238_vm11, %v3820_v14, %v2239_v4 }
 0x3ac   :  { %v2244_v17 = vsel %vm2237_vm6, %v2240_v23, %v2243_v18  ;;  %v3158_v2 = vand.u32 2147483647, %v3157_v13 }
 0x3ad   :  { %v2245_v34 = vsel %vm2234_vm14, nan, %v2244_v17 }
 0x3ae   :  { %v3243_v24 = vsel %vm6179_vm7, %v5969_v56, %v2245_v34  ;;  %v3161_v12 = vmul.f32 %v3160_v62, %v3158_v2  ;;  %v3171_v56 = vadd.s32 3, %v3167_v60 }
 0x3af   :  { %3261 = vst [vmem:[#allocation8 + $0x40] sm:$0xff] %v3243_v24 }
 0x3b0   :  { %v3162_v41 = vxor.u32 2147483648, %v3161_v12  ;;  %v3172_v47 = vand.u32 3, %v3171_v56 }
 0x3b2   :  { %v3163_v52 = vsel %vm3080_vm5, %v3162_v41, %v3161_v12  ;;  %vm3177_vm12 = vcmp.eq.s32.totalorder %v3172_v47, 2  ;;  %vm3174_vm13 = vcmp.eq.s32.totalorder %v3172_v47, 0  ;;  %vm3173_vm4 = vcmp.lt.s32.totalorder %v3172_v47, 2 }
 0x3b3   :  { %v3166_v63 = vsel %vm3079_vm1, %v6064_v25, %v3163_v52 }
 0x3b4   :  { %3823 = vcosq.f32 %v3166_v63 }
 0x3b5   :  { %3825 = vsinq.f32 %v3166_v63 }
 0x3be   :  { %v3824_v54 = vpop.eup %3823 }
 0x3bf   :  { %v3826_v43 = vpop.eup %3825  ;;  %v3178_v53 = vxor.u32 2147483648, %v3824_v54 }
 0x3c0   :  { %v3175_v15 = vxor.u32 2147483648, %v3826_v43 }
 0x3c1   :  { %v3179_v42 = vsel %vm3177_vm12, %v3178_v53, %v3826_v43 }
 0x3c2   :  { %v3176_v27 = vsel %vm3174_vm13, %v3824_v54, %v3175_v15 }
 0x3c3   :  { %v3180_v22 = vsel %vm3173_vm4, %v3176_v27, %v3179_v42 }
 0x3c4   :  { %v3181_v1 = vsel %vm3170_vm0, nan, %v3180_v22 }
 0x3c5   :  { %v3252_v55 = vsel %vm6179_vm7, %v6064_v25, %v3181_v1 }
 0x3c6   :  { %3270 = vst [vmem:[#allocation8 + $0x88] sm:$0x3] %v3252_v55 }
 0x3c7   :  { %3906 = shalt.err (!%p3903_p0)
}
 0x3c8   :  { %s3907_s27 = scalar_lea.hbm %s6210_s3, 2304 }
 0x3c9   :  { %p3908_p1 = scmp.ne.s32.totalorder %s6210_s3, %s3907_s27  ;;  %p3911_p2 = scmp.lt.u32.totalorder %s3907_s27, %s6210_s3 }
 0x3cb   :  { %p3913_p3 = pnand %p3911_p2, %p3908_p1 }
 0x3cd   :  { %3916 = shalt.err (!%p3913_p3)
}
 0x3ce   :  { %s3940_s5 = smov 1152   ;;  %s3941_s6 = smov 72  }
 0x3cf   :  { %3282 = dma.vmem_to_hbm [thread:$0]  %s3277_s23, 2304, %s6210_s3, [#allocation4], %s3940_s5, %s3940_s5, %s3941_s6  }
 0x3d0   :  { %3921 = dma.done.wait [#allocation4], 2304  }
 0x3d1   :  { %3922 = vsyncadd [#allocation4], 4294964992 }
 0x3d2   :  { %3286 = vsyncpa [#allocation3], 1 }
 0x3d3   :  { %3287 = vsyncpa [#allocation6], 1 }
 0x3d4   :  { %3288 = vsyncpa [#allocation4], 1 }

</bundles_post_ra>
